<compile_context>
chip_gen: v7x
topology: tpu7x:2x2x1
jax: 0.10.0
libtpu: 0.0.40
codegen_flags: <defaults>
</compile_context>

<pallas_src>
import functools

import jax
import jax.numpy as jnp
from jax.experimental import pallas as pl
from jax.experimental.pallas import tpu as pltpu


# ---------------------------------------------------------------------------
# Pallas kernel: KxK stride-1 conv over a pre-padded NHWC input, fused with a
# per-output-channel affine (conv bias or eval-mode BatchNorm) and LeakyReLU.
# ---------------------------------------------------------------------------
def _conv_affine_act_kernel(x_ref, w_ref, scale_ref, bias_ref, o_ref, *,
                            K, apply_act, negative_slope):
    # x_ref:     (1, Hp, Wp, Cin)   padded input tile (one batch element)
    # w_ref:     (K*K, Cin, Cout)   per-tap weight matrices
    # scale_ref: (1, Cout)          fused scale (BN gamma/sqrt(var+eps), or 1)
    # bias_ref:  (1, Cout)          fused bias  (BN beta - mean*scale, or conv bias)
    # o_ref:     (1, Ho, Wo, Cout)
    ho, wo, cout = o_ref.shape[1], o_ref.shape[2], o_ref.shape[3]
    cin = x_ref.shape[3]

    x = x_ref[0]                                      # (Hp, Wp, Cin)
    acc = jnp.zeros((ho * wo, cout), jnp.float32)
    for kh in range(K):                               # unrolled tap loop (K*K taps)
        for kw in range(K):
            patch = x[kh:kh + ho, kw:kw + wo, :]      # static slice (Ho, Wo, Cin)
            patch = patch.reshape(ho * wo, cin)
            acc = acc + jnp.dot(patch, w_ref[kh * K + kw],
                                preferred_element_type=jnp.float32)

    y = acc * scale_ref[...] + bias_ref[...]          # fused bias / BatchNorm affine
    if apply_act:
        y = jnp.where(y >= 0, y, negative_slope * y)  # LeakyReLU(0.2)
    o_ref[0] = y.reshape(ho, wo, cout).astype(o_ref.dtype)   # cast fused at store


def conv2d_affine_act(x_nhwc, w_taps, scale, bias, *, K, Ho, Wo,
                      apply_act, negative_slope=0.2):
    """x_nhwc: (N, Hp, Wp, Cin) pre-padded input; w_taps: (K*K, Cin, Cout)."""
    n, hp, wp, cin = x_nhwc.shape
    kk, cin_w, cout = w_taps.shape
    assert kk == K * K and cin_w == cin

    kernel = functools.partial(_conv_affine_act_kernel, K=K,
                               apply_act=apply_act,
                               negative_slope=negative_slope)
    return pl.pallas_call(
        kernel,
        out_shape=jax.ShapeDtypeStruct((n, Ho, Wo, cout), x_nhwc.dtype),
        grid_spec=pltpu.PrefetchScalarGridSpec(
            num_scalar_prefetch=0,
            grid=(n,),                      # one batch element per grid step
            in_specs=[
                pl.BlockSpec((1, hp, wp, cin), lambda i: (i, 0, 0, 0)),
                pl.BlockSpec((kk, cin, cout), lambda i: (0, 0, 0)),
                pl.BlockSpec((1, cout), lambda i: (0, 0)),
                pl.BlockSpec((1, cout), lambda i: (0, 0)),
            ],
            out_specs=pl.BlockSpec((1, Ho, Wo, cout), lambda i: (i, 0, 0, 0)),
        ),
        compiler_params=pltpu.CompilerParams(
            dimension_semantics=("parallel",),
        ),
    )(x_nhwc, w_taps, scale, bias)


# ---------------------------------------------------------------------------
# Layer application (wrapper-side layout plumbing only; all compute in Pallas)
# ---------------------------------------------------------------------------
def _apply_layer(x_nhwc, layer):
    w = layer["weight"]                    # (Cout, Cin, 4, 4)  -- PyTorch OIHW
    cout, cin = w.shape[0], w.shape[1]
    stride = layer["stride"]

    # spatial zero padding (padding=1)
    xp = jnp.pad(x_nhwc, ((0, 0), (1, 1), (1, 1), (0, 0)))
    n, hp, wp, _ = xp.shape

    if stride == 2:
        # space-to-depth: 4x4/stride-2 conv == 2x2/stride-1 conv over 4*Cin channels
        xs = xp.reshape(n, hp // 2, 2, wp // 2, 2, cin)
        xs = xs.transpose(0, 1, 3, 2, 4, 5).reshape(n, hp // 2, wp // 2, 4 * cin)
        wt = w.reshape(cout, cin, 2, 2, 2, 2)              # (co, ci, ah, rh, aw, rw)
        wt = wt.transpose(2, 4, 3, 5, 1, 0).reshape(4, 4 * cin, cout)
        K, x_in = 2, xs
        ho, wo = (hp - 4) // 2 + 1, (wp - 4) // 2 + 1
    else:
        wt = w.transpose(2, 3, 1, 0).reshape(16, cin, cout)  # tap = kh*4 + kw
        K, x_in = 4, xp
        ho, wo = hp - 3, wp - 3

    if layer["bn"] is not None:
        gamma, beta, mean, var = layer["bn"]
        scale = gamma / jnp.sqrt(var + 1e-5)
        bias = beta - mean * scale
    else:
        scale = jnp.ones((cout,), jnp.float32)
        bias = layer["bias"] if layer["bias"] is not None else jnp.zeros((cout,), jnp.float32)

    scale = scale.reshape(1, cout).astype(jnp.float32)
    bias = bias.reshape(1, cout).astype(jnp.float32)

    return conv2d_affine_act(x_in, wt, scale, bias, K=K, Ho=ho, Wo=wo,
                             apply_act=layer["act"])


def nlayer_discriminator_forward(x_nchw, params):
    """PatchGAN discriminator forward. Input / output are NCHW like PyTorch."""
    x = jnp.transpose(x_nchw, (0, 2, 3, 1))     # NCHW -> NHWC (channels on lanes)
    for layer in params:
        x = _apply_layer(x, layer)
    return jnp.transpose(x, (0, 3, 1, 2))       # back to NCHW


# ---------------------------------------------------------------------------
# Parameter construction mirroring NLayerDiscriminator(input_nc, ndf, n_layers)
# with norm_layer=BatchNorm2d  (=> use_bias=False on the normed convs).
# ---------------------------------------------------------------------------
def init_discriminator_params(key, input_nc, ndf=64, n_layers=3):
    layers = []
    keys = jax.random.split(key, n_layers + 2)

    def conv_w(k, cout, cin):
        return 0.02 * jax.random.normal(k, (cout, cin, 4, 4), dtype=jnp.float32)

    def bn_params(k, c):
        k1, k2, k3, k4 = jax.random.split(k, 4)
        gamma = 1.0 + 0.1 * jax.random.normal(k1, (c,), jnp.float32)
        beta = 0.1 * jax.random.normal(k2, (c,), jnp.float32)
        mean = 0.1 * jax.random.normal(k3, (c,), jnp.float32)
        var = 0.5 + jax.random.uniform(k4, (c,), jnp.float32)
        return (gamma, beta, mean, var)

    # Conv(input_nc -> ndf, s=2, bias=True) + LeakyReLU
    kw_, kb_ = jax.random.split(keys[0])
    layers.append(dict(weight=conv_w(kw_, ndf, input_nc),
                       bias=0.02 * jax.random.normal(kb_, (ndf,), jnp.float32),
                       bn=None, stride=2, act=True))

    nf_mult = 1
    for i in range(1, n_layers):
        nf_prev, nf_mult = nf_mult, min(2 ** i, 8)
        kw_, kbn_ = jax.random.split(keys[i])
        layers.append(dict(weight=conv_w(kw_, ndf * nf_mult, ndf * nf_prev),
                           bias=None, bn=bn_params(kbn_, ndf * nf_mult),
                           stride=2, act=True))

    nf_prev, nf_mult = nf_mult, min(2 ** n_layers, 8)
    kw_, kbn_ = jax.random.split(keys[n_layers])
    layers.append(dict(weight=conv_w(kw_, ndf * nf_mult, ndf * nf_prev),
                       bias=None, bn=bn_params(kbn_, ndf * nf_mult),
                       stride=1, act=True))

    # Final 1-channel prediction map: Conv(s=1, bias=True), no activation
    kw_, kb_ = jax.random.split(keys[n_layers + 1])
    layers.append(dict(weight=conv_w(kw_, 1, ndf * nf_mult),
                       bias=0.02 * jax.random.normal(kb_, (1,), jnp.float32),
                       bn=None, stride=1, act=False))
    return layers


# ---------------------------------------------------------------------------
# Pure-JAX reference (XLA conv) for correctness checking
# ---------------------------------------------------------------------------
def _reference_forward(x_nchw, params):
    x = x_nchw
    for layer in params:
        w, s = layer["weight"], layer["stride"]
        y = jax.lax.conv_general_dilated(
            x, w, window_strides=(s, s), padding=((1, 1), (1, 1)),
            dimension_numbers=("NCHW", "OIHW", "NCHW"))
        if layer["bn"] is not None:
            gamma, beta, mean, var = layer["bn"]
            rs = lambda v: v.reshape(1, -1, 1, 1)
            y = rs(gamma) * (y - rs(mean)) / jnp.sqrt(rs(var) + 1e-5) + rs(beta)
        elif layer["bias"] is not None:
            y = y + layer["bias"].reshape(1, -1, 1, 1)
        if layer["act"]:
            y = jnp.where(y >= 0, y, 0.2 * y)
        x = y
    return x


if __name__ == "__main__":
    key = jax.random.PRNGKey(0)
    k_x, k_p = jax.random.split(key)

    # Small but valid PatchGAN config: 3-channel 32x32 images, ndf=8, n_layers=3.
    # (Spatial must be >= 32 so the trailing stride-1 4x4 convs have nonzero output.)
    batch, input_nc, spatial = 2, 3, 32
    ndf, n_layers = 8, 3

    x = jax.random.normal(k_x, (batch, input_nc, spatial, spatial), dtype=jnp.float32)
    params = init_discriminator_params(k_p, input_nc, ndf=ndf, n_layers=n_layers)

    fwd = jax.jit(lambda inp: nlayer_discriminator_forward(inp, params))
    out = jax.block_until_ready(fwd(x))

    ref = _reference_forward(x, params)
    assert out.shape == ref.shape, (out.shape, ref.shape)
    max_err = float(jnp.max(jnp.abs(out - ref)))
    assert jnp.allclose(out, ref, atol=1e-3, rtol=1e-3), f"max_err={max_err}"

    print("KERNEL_OK")
</pallas_src>

<mosaic_0001>
module attributes {stable_mosaic.version = 11 : i64} {
  func.func @_conv_affine_act_kernel(%arg0: i32, %arg1: memref<1x17x17x12xf32, #tpu.memory_space<vmem>>, %arg2: memref<4x12x8xf32, #tpu.memory_space<vmem>>, %arg3: memref<1x8xf32, #tpu.memory_space<vmem>>, %arg4: memref<1x8xf32, #tpu.memory_space<vmem>>, %arg5: memref<1x16x16x8xf32, #tpu.memory_space<vmem>>) attributes {dimension_semantics = [#tpu.dimension_semantics<parallel>], iteration_bounds = array<i64: 2>, scalar_prefetch = 0 : i64, scratch_operands = 0 : i64, tpu.core_type = #tpu.core_type<tc>, window_params = [{transform_indices = @transform_0, window_bounds = array<i64: 1, 17, 17, 12>}, {pipeline_mode = #tpu.pipeline_mode<synchronous>, transform_indices = @transform_1, window_bounds = array<i64: 4, 12, 8>}, {pipeline_mode = #tpu.pipeline_mode<synchronous>, transform_indices = @transform_2, window_bounds = array<i64: 1, 8>}, {pipeline_mode = #tpu.pipeline_mode<synchronous>, transform_indices = @transform_3, window_bounds = array<i64: 1, 8>}, {transform_indices = @transform_4, window_bounds = array<i64: 1, 16, 16, 8>}]} {
    %c0 = arith.constant 0 : index
    %c0_0 = arith.constant 0 : index
    %c0_1 = arith.constant 0 : index
    %c0_2 = arith.constant 0 : index
    %0 = vector.load %arg1[%c0, %c0_0, %c0_1, %c0_2] : memref<1x17x17x12xf32, #tpu.memory_space<vmem>>, vector<1x17x17x12xf32>
    %1 = vector.shape_cast %0 : vector<1x17x17x12xf32> to vector<17x17x12xf32>
    %cst = arith.constant 0.000000e+00 : f32
    %2 = vector.broadcast %cst : f32 to vector<256x8xf32>
    %3 = vector.extract_strided_slice %1 {offsets = [0, 0, 0], sizes = [16, 16, 12], strides = [1, 1, 1]} : vector<17x17x12xf32> to vector<16x16x12xf32>
    %4 = vector.shape_cast %3 : vector<16x16x12xf32> to vector<256x12xf32>
    %c0_3 = arith.constant 0 : index
    %c0_4 = arith.constant 0 : index
    %c0_5 = arith.constant 0 : index
    %5 = vector.load %arg2[%c0_3, %c0_4, %c0_5] : memref<4x12x8xf32, #tpu.memory_space<vmem>>, vector<1x12x8xf32>
    %6 = vector.shape_cast %5 : vector<1x12x8xf32> to vector<12x8xf32>
    %cst_6 = arith.constant dense<0.000000e+00> : vector<256x8xf32>
    %7 = tpu.matmul %4, %6, %cst_6 {dimension_numbers = #tpu.dot_dimension_numbers<[1], [0], [0], [1], [0, 0, 1, 1], [], []>} : vector<256x12xf32>, vector<12x8xf32>, vector<256x8xf32> -> vector<256x8xf32>
    %8 = arith.addf %2, %7 : vector<256x8xf32>
    %9 = vector.extract_strided_slice %1 {offsets = [0, 1, 0], sizes = [16, 16, 12], strides = [1, 1, 1]} : vector<17x17x12xf32> to vector<16x16x12xf32>
    %10 = vector.shape_cast %9 : vector<16x16x12xf32> to vector<256x12xf32>
    %c1 = arith.constant 1 : index
    %c0_7 = arith.constant 0 : index
    %c0_8 = arith.constant 0 : index
    %11 = vector.load %arg2[%c1, %c0_7, %c0_8] : memref<4x12x8xf32, #tpu.memory_space<vmem>>, vector<1x12x8xf32>
    %12 = vector.shape_cast %11 : vector<1x12x8xf32> to vector<12x8xf32>
    %cst_9 = arith.constant dense<0.000000e+00> : vector<256x8xf32>
    %13 = tpu.matmul %10, %12, %cst_9 {dimension_numbers = #tpu.dot_dimension_numbers<[1], [0], [0], [1], [0, 0, 1, 1], [], []>} : vector<256x12xf32>, vector<12x8xf32>, vector<256x8xf32> -> vector<256x8xf32>
    %14 = arith.addf %8, %13 : vector<256x8xf32>
    %15 = vector.extract_strided_slice %1 {offsets = [1, 0, 0], sizes = [16, 16, 12], strides = [1, 1, 1]} : vector<17x17x12xf32> to vector<16x16x12xf32>
    %16 = vector.shape_cast %15 : vector<16x16x12xf32> to vector<256x12xf32>
    %c2 = arith.constant 2 : index
    %c0_10 = arith.constant 0 : index
    %c0_11 = arith.constant 0 : index
    %17 = vector.load %arg2[%c2, %c0_10, %c0_11] : memref<4x12x8xf32, #tpu.memory_space<vmem>>, vector<1x12x8xf32>
    %18 = vector.shape_cast %17 : vector<1x12x8xf32> to vector<12x8xf32>
    %cst_12 = arith.constant dense<0.000000e+00> : vector<256x8xf32>
    %19 = tpu.matmul %16, %18, %cst_12 {dimension_numbers = #tpu.dot_dimension_numbers<[1], [0], [0], [1], [0, 0, 1, 1], [], []>} : vector<256x12xf32>, vector<12x8xf32>, vector<256x8xf32> -> vector<256x8xf32>
    %20 = arith.addf %14, %19 : vector<256x8xf32>
    %21 = vector.extract_strided_slice %1 {offsets = [1, 1, 0], sizes = [16, 16, 12], strides = [1, 1, 1]} : vector<17x17x12xf32> to vector<16x16x12xf32>
    %22 = vector.shape_cast %21 : vector<16x16x12xf32> to vector<256x12xf32>
    %c3 = arith.constant 3 : index
    %c0_13 = arith.constant 0 : index
    %c0_14 = arith.constant 0 : index
    %23 = vector.load %arg2[%c3, %c0_13, %c0_14] : memref<4x12x8xf32, #tpu.memory_space<vmem>>, vector<1x12x8xf32>
    %24 = vector.shape_cast %23 : vector<1x12x8xf32> to vector<12x8xf32>
    %cst_15 = arith.constant dense<0.000000e+00> : vector<256x8xf32>
    %25 = tpu.matmul %22, %24, %cst_15 {dimension_numbers = #tpu.dot_dimension_numbers<[1], [0], [0], [1], [0, 0, 1, 1], [], []>} : vector<256x12xf32>, vector<12x8xf32>, vector<256x8xf32> -> vector<256x8xf32>
    %26 = arith.addf %20, %25 : vector<256x8xf32>
    %c0_16 = arith.constant 0 : index
    %c0_17 = arith.constant 0 : index
    %27 = vector.load %arg3[%c0_16, %c0_17] : memref<1x8xf32, #tpu.memory_space<vmem>>, vector<1x8xf32>
    %28 = vector.broadcast %27 : vector<1x8xf32> to vector<256x8xf32>
    %29 = arith.mulf %26, %28 : vector<256x8xf32>
    %c0_18 = arith.constant 0 : index
    %c0_19 = arith.constant 0 : index
    %30 = vector.load %arg4[%c0_18, %c0_19] : memref<1x8xf32, #tpu.memory_space<vmem>>, vector<1x8xf32>
    %31 = vector.broadcast %30 : vector<1x8xf32> to vector<256x8xf32>
    %32 = arith.addf %29, %31 : vector<256x8xf32>
    %cst_20 = arith.constant 0.000000e+00 : f32
    %33 = vector.broadcast %cst_20 : f32 to vector<256x8xf32>
    %34 = arith.cmpf oge, %32, %33 : vector<256x8xf32>
    %cst_21 = arith.constant 2.000000e-01 : f32
    %35 = vector.broadcast %cst_21 : f32 to vector<256x8xf32>
    %36 = arith.mulf %35, %32 : vector<256x8xf32>
    %37 = arith.select %34, %32, %36 : vector<256x8xi1>, vector<256x8xf32>
    %38 = vector.shape_cast %37 : vector<256x8xf32> to vector<16x16x8xf32>
    %c0_22 = arith.constant 0 : index
    %c0_23 = arith.constant 0 : index
    %c0_24 = arith.constant 0 : index
    %c0_25 = arith.constant 0 : index
    %39 = vector.load %arg5[%c0_22, %c0_23, %c0_24, %c0_25] : memref<1x16x16x8xf32, #tpu.memory_space<vmem>>, vector<1x16x16x8xf32>
    %40 = vector.shape_cast %39 : vector<1x16x16x8xf32> to vector<16x16x8xf32>
    %41 = vector.shape_cast %38 : vector<16x16x8xf32> to vector<1x16x16x8xf32>
    tpu.vector_store %arg5[%c0_22, %c0_23, %c0_24, %c0_25], %41 {strides = array<i32>} : memref<1x16x16x8xf32, #tpu.memory_space<vmem>>, vector<1x16x16x8xf32>,
    return
  }
  func.func @transform_0(%arg0: i32) -> (i32, i32, i32, i32) {
    %c0_i32 = arith.constant 0 : i32
    %c0_i32_0 = arith.constant 0 : i32
    %c0_i32_1 = arith.constant 0 : i32
    %c0_i32_2 = arith.constant 0 : i32
    return %arg0, %c0_i32, %c0_i32_0, %c0_i32_1 : i32, i32, i32, i32
  }
  func.func @transform_1(%arg0: i32) -> (i32, i32, i32) {
    %c0_i32 = arith.constant 0 : i32
    %c0_i32_0 = arith.constant 0 : i32
    %c0_i32_1 = arith.constant 0 : i32
    %c0_i32_2 = arith.constant 0 : i32
    return %c0_i32, %c0_i32_0, %c0_i32_1 : i32, i32, i32
  }
  func.func @transform_2(%arg0: i32) -> (i32, i32) {
    %c0_i32 = arith.constant 0 : i32
    %c0_i32_0 = arith.constant 0 : i32
    %c0_i32_1 = arith.constant 0 : i32
    return %c0_i32, %c0_i32_0 : i32, i32
  }
  func.func @transform_3(%arg0: i32) -> (i32, i32) {
    %c0_i32 = arith.constant 0 : i32
    %c0_i32_0 = arith.constant 0 : i32
    %c0_i32_1 = arith.constant 0 : i32
    return %c0_i32, %c0_i32_0 : i32, i32
  }
  func.func @transform_4(%arg0: i32) -> (i32, i32, i32, i32) {
    %c0_i32 = arith.constant 0 : i32
    %c0_i32_0 = arith.constant 0 : i32
    %c0_i32_1 = arith.constant 0 : i32
    %c0_i32_2 = arith.constant 0 : i32
    return %arg0, %c0_i32, %c0_i32_0, %c0_i32_1 : i32, i32, i32, i32
  }
}

module attributes {stable_mosaic.version = 11 : i64} {
  func.func @_conv_affine_act_kernel(%arg0: i32, %arg1: memref<1x9x9x32xf32, #tpu.memory_space<vmem>>, %arg2: memref<4x32x16xf32, #tpu.memory_space<vmem>>, %arg3: memref<1x16xf32, #tpu.memory_space<vmem>>, %arg4: memref<1x16xf32, #tpu.memory_space<vmem>>, %arg5: memref<1x8x8x16xf32, #tpu.memory_space<vmem>>) attributes {dimension_semantics = [#tpu.dimension_semantics<parallel>], iteration_bounds = array<i64: 2>, scalar_prefetch = 0 : i64, scratch_operands = 0 : i64, tpu.core_type = #tpu.core_type<tc>, window_params = [{transform_indices = @transform_0, window_bounds = array<i64: 1, 9, 9, 32>}, {pipeline_mode = #tpu.pipeline_mode<synchronous>, transform_indices = @transform_1, window_bounds = array<i64: 4, 32, 16>}, {pipeline_mode = #tpu.pipeline_mode<synchronous>, transform_indices = @transform_2, window_bounds = array<i64: 1, 16>}, {pipeline_mode = #tpu.pipeline_mode<synchronous>, transform_indices = @transform_3, window_bounds = array<i64: 1, 16>}, {transform_indices = @transform_4, window_bounds = array<i64: 1, 8, 8, 16>}]} {
    %c0 = arith.constant 0 : index
    %c0_0 = arith.constant 0 : index
    %c0_1 = arith.constant 0 : index
    %c0_2 = arith.constant 0 : index
    %0 = vector.load %arg1[%c0, %c0_0, %c0_1, %c0_2] : memref<1x9x9x32xf32, #tpu.memory_space<vmem>>, vector<1x9x9x32xf32>
    %1 = vector.shape_cast %0 : vector<1x9x9x32xf32> to vector<9x9x32xf32>
    %cst = arith.constant 0.000000e+00 : f32
    %2 = vector.broadcast %cst : f32 to vector<64x16xf32>
    %3 = vector.extract_strided_slice %1 {offsets = [0, 0, 0], sizes = [8, 8, 32], strides = [1, 1, 1]} : vector<9x9x32xf32> to vector<8x8x32xf32>
    %4 = vector.shape_cast %3 : vector<8x8x32xf32> to vector<64x32xf32>
    %c0_3 = arith.constant 0 : index
    %c0_4 = arith.constant 0 : index
    %c0_5 = arith.constant 0 : index
    %5 = vector.load %arg2[%c0_3, %c0_4, %c0_5] : memref<4x32x16xf32, #tpu.memory_space<vmem>>, vector<1x32x16xf32>
    %6 = vector.shape_cast %5 : vector<1x32x16xf32> to vector<32x16xf32>
    %cst_6 = arith.constant dense<0.000000e+00> : vector<64x16xf32>
    %7 = tpu.matmul %4, %6, %cst_6 {dimension_numbers = #tpu.dot_dimension_numbers<[1], [0], [0], [1], [0, 0, 1, 1], [], []>} : vector<64x32xf32>, vector<32x16xf32>, vector<64x16xf32> -> vector<64x16xf32>
    %8 = arith.addf %2, %7 : vector<64x16xf32>
    %9 = vector.extract_strided_slice %1 {offsets = [0, 1, 0], sizes = [8, 8, 32], strides = [1, 1, 1]} : vector<9x9x32xf32> to vector<8x8x32xf32>
    %10 = vector.shape_cast %9 : vector<8x8x32xf32> to vector<64x32xf32>
    %c1 = arith.constant 1 : index
    %c0_7 = arith.constant 0 : index
    %c0_8 = arith.constant 0 : index
    %11 = vector.load %arg2[%c1, %c0_7, %c0_8] : memref<4x32x16xf32, #tpu.memory_space<vmem>>, vector<1x32x16xf32>
    %12 = vector.shape_cast %11 : vector<1x32x16xf32> to vector<32x16xf32>
    %cst_9 = arith.constant dense<0.000000e+00> : vector<64x16xf32>
    %13 = tpu.matmul %10, %12, %cst_9 {dimension_numbers = #tpu.dot_dimension_numbers<[1], [0], [0], [1], [0, 0, 1, 1], [], []>} : vector<64x32xf32>, vector<32x16xf32>, vector<64x16xf32> -> vector<64x16xf32>
    %14 = arith.addf %8, %13 : vector<64x16xf32>
    %15 = vector.extract_strided_slice %1 {offsets = [1, 0, 0], sizes = [8, 8, 32], strides = [1, 1, 1]} : vector<9x9x32xf32> to vector<8x8x32xf32>
    %16 = vector.shape_cast %15 : vector<8x8x32xf32> to vector<64x32xf32>
    %c2 = arith.constant 2 : index
    %c0_10 = arith.constant 0 : index
    %c0_11 = arith.constant 0 : index
    %17 = vector.load %arg2[%c2, %c0_10, %c0_11] : memref<4x32x16xf32, #tpu.memory_space<vmem>>, vector<1x32x16xf32>
    %18 = vector.shape_cast %17 : vector<1x32x16xf32> to vector<32x16xf32>
    %cst_12 = arith.constant dense<0.000000e+00> : vector<64x16xf32>
    %19 = tpu.matmul %16, %18, %cst_12 {dimension_numbers = #tpu.dot_dimension_numbers<[1], [0], [0], [1], [0, 0, 1, 1], [], []>} : vector<64x32xf32>, vector<32x16xf32>, vector<64x16xf32> -> vector<64x16xf32>
    %20 = arith.addf %14, %19 : vector<64x16xf32>
    %21 = vector.extract_strided_slice %1 {offsets = [1, 1, 0], sizes = [8, 8, 32], strides = [1, 1, 1]} : vector<9x9x32xf32> to vector<8x8x32xf32>
    %22 = vector.shape_cast %21 : vector<8x8x32xf32> to vector<64x32xf32>
    %c3 = arith.constant 3 : index
    %c0_13 = arith.constant 0 : index
    %c0_14 = arith.constant 0 : index
    %23 = vector.load %arg2[%c3, %c0_13, %c0_14] : memref<4x32x16xf32, #tpu.memory_space<vmem>>, vector<1x32x16xf32>
    %24 = vector.shape_cast %23 : vector<1x32x16xf32> to vector<32x16xf32>
    %cst_15 = arith.constant dense<0.000000e+00> : vector<64x16xf32>
    %25 = tpu.matmul %22, %24, %cst_15 {dimension_numbers = #tpu.dot_dimension_numbers<[1], [0], [0], [1], [0, 0, 1, 1], [], []>} : vector<64x32xf32>, vector<32x16xf32>, vector<64x16xf32> -> vector<64x16xf32>
    %26 = arith.addf %20, %25 : vector<64x16xf32>
    %c0_16 = arith.constant 0 : index
    %c0_17 = arith.constant 0 : index
    %27 = vector.load %arg3[%c0_16, %c0_17] : memref<1x16xf32, #tpu.memory_space<vmem>>, vector<1x16xf32>
    %28 = vector.broadcast %27 : vector<1x16xf32> to vector<64x16xf32>
    %29 = arith.mulf %26, %28 : vector<64x16xf32>
    %c0_18 = arith.constant 0 : index
    %c0_19 = arith.constant 0 : index
    %30 = vector.load %arg4[%c0_18, %c0_19] : memref<1x16xf32, #tpu.memory_space<vmem>>, vector<1x16xf32>
    %31 = vector.broadcast %30 : vector<1x16xf32> to vector<64x16xf32>
    %32 = arith.addf %29, %31 : vector<64x16xf32>
    %cst_20 = arith.constant 0.000000e+00 : f32
    %33 = vector.broadcast %cst_20 : f32 to vector<64x16xf32>
    %34 = arith.cmpf oge, %32, %33 : vector<64x16xf32>
    %cst_21 = arith.constant 2.000000e-01 : f32
    %35 = vector.broadcast %cst_21 : f32 to vector<64x16xf32>
    %36 = arith.mulf %35, %32 : vector<64x16xf32>
    %37 = arith.select %34, %32, %36 : vector<64x16xi1>, vector<64x16xf32>
    %38 = vector.shape_cast %37 : vector<64x16xf32> to vector<8x8x16xf32>
    %c0_22 = arith.constant 0 : index
    %c0_23 = arith.constant 0 : index
    %c0_24 = arith.constant 0 : index
    %c0_25 = arith.constant 0 : index
    %39 = vector.load %arg5[%c0_22, %c0_23, %c0_24, %c0_25] : memref<1x8x8x16xf32, #tpu.memory_space<vmem>>, vector<1x8x8x16xf32>
    %40 = vector.shape_cast %39 : vector<1x8x8x16xf32> to vector<8x8x16xf32>
    %41 = vector.shape_cast %38 : vector<8x8x16xf32> to vector<1x8x8x16xf32>
    tpu.vector_store %arg5[%c0_22, %c0_23, %c0_24, %c0_25], %41 {strides = array<i32>} : memref<1x8x8x16xf32, #tpu.memory_space<vmem>>, vector<1x8x8x16xf32>,
    return
  }
  func.func @transform_0(%arg0: i32) -> (i32, i32, i32, i32) {
    %c0_i32 = arith.constant 0 : i32
    %c0_i32_0 = arith.constant 0 : i32
    %c0_i32_1 = arith.constant 0 : i32
    %c0_i32_2 = arith.constant 0 : i32
    return %arg0, %c0_i32, %c0_i32_0, %c0_i32_1 : i32, i32, i32, i32
  }
  func.func @transform_1(%arg0: i32) -> (i32, i32, i32) {
    %c0_i32 = arith.constant 0 : i32
    %c0_i32_0 = arith.constant 0 : i32
    %c0_i32_1 = arith.constant 0 : i32
    %c0_i32_2 = arith.constant 0 : i32
    return %c0_i32, %c0_i32_0, %c0_i32_1 : i32, i32, i32
  }
  func.func @transform_2(%arg0: i32) -> (i32, i32) {
    %c0_i32 = arith.constant 0 : i32
    %c0_i32_0 = arith.constant 0 : i32
    %c0_i32_1 = arith.constant 0 : i32
    return %c0_i32, %c0_i32_0 : i32, i32
  }
  func.func @transform_3(%arg0: i32) -> (i32, i32) {
    %c0_i32 = arith.constant 0 : i32
    %c0_i32_0 = arith.constant 0 : i32
    %c0_i32_1 = arith.constant 0 : i32
    return %c0_i32, %c0_i32_0 : i32, i32
  }
  func.func @transform_4(%arg0: i32) -> (i32, i32, i32, i32) {
    %c0_i32 = arith.constant 0 : i32
    %c0_i32_0 = arith.constant 0 : i32
    %c0_i32_1 = arith.constant 0 : i32
    %c0_i32_2 = arith.constant 0 : i32
    return %arg0, %c0_i32, %c0_i32_0, %c0_i32_1 : i32, i32, i32, i32
  }
}

module attributes {stable_mosaic.version = 11 : i64} {
  func.func @_conv_affine_act_kernel(%arg0: i32, %arg1: memref<1x5x5x64xf32, #tpu.memory_space<vmem>>, %arg2: memref<4x64x32xf32, #tpu.memory_space<vmem>>, %arg3: memref<1x32xf32, #tpu.memory_space<vmem>>, %arg4: memref<1x32xf32, #tpu.memory_space<vmem>>, %arg5: memref<1x4x4x32xf32, #tpu.memory_space<vmem>>) attributes {dimension_semantics = [#tpu.dimension_semantics<parallel>], iteration_bounds = array<i64: 2>, scalar_prefetch = 0 : i64, scratch_operands = 0 : i64, tpu.core_type = #tpu.core_type<tc>, window_params = [{transform_indices = @transform_0, window_bounds = array<i64: 1, 5, 5, 64>}, {pipeline_mode = #tpu.pipeline_mode<synchronous>, transform_indices = @transform_1, window_bounds = array<i64: 4, 64, 32>}, {pipeline_mode = #tpu.pipeline_mode<synchronous>, transform_indices = @transform_2, window_bounds = array<i64: 1, 32>}, {pipeline_mode = #tpu.pipeline_mode<synchronous>, transform_indices = @transform_3, window_bounds = array<i64: 1, 32>}, {transform_indices = @transform_4, window_bounds = array<i64: 1, 4, 4, 32>}]} {
    %c0 = arith.constant 0 : index
    %c0_0 = arith.constant 0 : index
    %c0_1 = arith.constant 0 : index
    %c0_2 = arith.constant 0 : index
    %0 = vector.load %arg1[%c0, %c0_0, %c0_1, %c0_2] : memref<1x5x5x64xf32, #tpu.memory_space<vmem>>, vector<1x5x5x64xf32>
    %1 = vector.shape_cast %0 : vector<1x5x5x64xf32> to vector<5x5x64xf32>
    %cst = arith.constant 0.000000e+00 : f32
    %2 = vector.broadcast %cst : f32 to vector<16x32xf32>
    %3 = vector.extract_strided_slice %1 {offsets = [0, 0, 0], sizes = [4, 4, 64], strides = [1, 1, 1]} : vector<5x5x64xf32> to vector<4x4x64xf32>
    %4 = vector.shape_cast %3 : vector<4x4x64xf32> to vector<16x64xf32>
    %c0_3 = arith.constant 0 : index
    %c0_4 = arith.constant 0 : index
    %c0_5 = arith.constant 0 : index
    %5 = vector.load %arg2[%c0_3, %c0_4, %c0_5] : memref<4x64x32xf32, #tpu.memory_space<vmem>>, vector<1x64x32xf32>
    %6 = vector.shape_cast %5 : vector<1x64x32xf32> to vector<64x32xf32>
    %cst_6 = arith.constant dense<0.000000e+00> : vector<16x32xf32>
    %7 = tpu.matmul %4, %6, %cst_6 {dimension_numbers = #tpu.dot_dimension_numbers<[1], [0], [0], [1], [0, 0, 1, 1], [], []>} : vector<16x64xf32>, vector<64x32xf32>, vector<16x32xf32> -> vector<16x32xf32>
    %8 = arith.addf %2, %7 : vector<16x32xf32>
    %9 = vector.extract_strided_slice %1 {offsets = [0, 1, 0], sizes = [4, 4, 64], strides = [1, 1, 1]} : vector<5x5x64xf32> to vector<4x4x64xf32>
    %10 = vector.shape_cast %9 : vector<4x4x64xf32> to vector<16x64xf32>
    %c1 = arith.constant 1 : index
    %c0_7 = arith.constant 0 : index
    %c0_8 = arith.constant 0 : index
    %11 = vector.load %arg2[%c1, %c0_7, %c0_8] : memref<4x64x32xf32, #tpu.memory_space<vmem>>, vector<1x64x32xf32>
    %12 = vector.shape_cast %11 : vector<1x64x32xf32> to vector<64x32xf32>
    %cst_9 = arith.constant dense<0.000000e+00> : vector<16x32xf32>
    %13 = tpu.matmul %10, %12, %cst_9 {dimension_numbers = #tpu.dot_dimension_numbers<[1], [0], [0], [1], [0, 0, 1, 1], [], []>} : vector<16x64xf32>, vector<64x32xf32>, vector<16x32xf32> -> vector<16x32xf32>
    %14 = arith.addf %8, %13 : vector<16x32xf32>
    %15 = vector.extract_strided_slice %1 {offsets = [1, 0, 0], sizes = [4, 4, 64], strides = [1, 1, 1]} : vector<5x5x64xf32> to vector<4x4x64xf32>
    %16 = vector.shape_cast %15 : vector<4x4x64xf32> to vector<16x64xf32>
    %c2 = arith.constant 2 : index
    %c0_10 = arith.constant 0 : index
    %c0_11 = arith.constant 0 : index
    %17 = vector.load %arg2[%c2, %c0_10, %c0_11] : memref<4x64x32xf32, #tpu.memory_space<vmem>>, vector<1x64x32xf32>
    %18 = vector.shape_cast %17 : vector<1x64x32xf32> to vector<64x32xf32>
    %cst_12 = arith.constant dense<0.000000e+00> : vector<16x32xf32>
    %19 = tpu.matmul %16, %18, %cst_12 {dimension_numbers = #tpu.dot_dimension_numbers<[1], [0], [0], [1], [0, 0, 1, 1], [], []>} : vector<16x64xf32>, vector<64x32xf32>, vector<16x32xf32> -> vector<16x32xf32>
    %20 = arith.addf %14, %19 : vector<16x32xf32>
    %21 = vector.extract_strided_slice %1 {offsets = [1, 1, 0], sizes = [4, 4, 64], strides = [1, 1, 1]} : vector<5x5x64xf32> to vector<4x4x64xf32>
    %22 = vector.shape_cast %21 : vector<4x4x64xf32> to vector<16x64xf32>
    %c3 = arith.constant 3 : index
    %c0_13 = arith.constant 0 : index
    %c0_14 = arith.constant 0 : index
    %23 = vector.load %arg2[%c3, %c0_13, %c0_14] : memref<4x64x32xf32, #tpu.memory_space<vmem>>, vector<1x64x32xf32>
    %24 = vector.shape_cast %23 : vector<1x64x32xf32> to vector<64x32xf32>
    %cst_15 = arith.constant dense<0.000000e+00> : vector<16x32xf32>
    %25 = tpu.matmul %22, %24, %cst_15 {dimension_numbers = #tpu.dot_dimension_numbers<[1], [0], [0], [1], [0, 0, 1, 1], [], []>} : vector<16x64xf32>, vector<64x32xf32>, vector<16x32xf32> -> vector<16x32xf32>
    %26 = arith.addf %20, %25 : vector<16x32xf32>
    %c0_16 = arith.constant 0 : index
    %c0_17 = arith.constant 0 : index
    %27 = vector.load %arg3[%c0_16, %c0_17] : memref<1x32xf32, #tpu.memory_space<vmem>>, vector<1x32xf32>
    %28 = vector.broadcast %27 : vector<1x32xf32> to vector<16x32xf32>
    %29 = arith.mulf %26, %28 : vector<16x32xf32>
    %c0_18 = arith.constant 0 : index
    %c0_19 = arith.constant 0 : index
    %30 = vector.load %arg4[%c0_18, %c0_19] : memref<1x32xf32, #tpu.memory_space<vmem>>, vector<1x32xf32>
    %31 = vector.broadcast %30 : vector<1x32xf32> to vector<16x32xf32>
    %32 = arith.addf %29, %31 : vector<16x32xf32>
    %cst_20 = arith.constant 0.000000e+00 : f32
    %33 = vector.broadcast %cst_20 : f32 to vector<16x32xf32>
    %34 = arith.cmpf oge, %32, %33 : vector<16x32xf32>
    %cst_21 = arith.constant 2.000000e-01 : f32
    %35 = vector.broadcast %cst_21 : f32 to vector<16x32xf32>
    %36 = arith.mulf %35, %32 : vector<16x32xf32>
    %37 = arith.select %34, %32, %36 : vector<16x32xi1>, vector<16x32xf32>
    %38 = vector.shape_cast %37 : vector<16x32xf32> to vector<4x4x32xf32>
    %c0_22 = arith.constant 0 : index
    %c0_23 = arith.constant 0 : index
    %c0_24 = arith.constant 0 : index
    %c0_25 = arith.constant 0 : index
    %39 = vector.load %arg5[%c0_22, %c0_23, %c0_24, %c0_25] : memref<1x4x4x32xf32, #tpu.memory_space<vmem>>, vector<1x4x4x32xf32>
    %40 = vector.shape_cast %39 : vector<1x4x4x32xf32> to vector<4x4x32xf32>
    %41 = vector.shape_cast %38 : vector<4x4x32xf32> to vector<1x4x4x32xf32>
    tpu.vector_store %arg5[%c0_22, %c0_23, %c0_24, %c0_25], %41 {strides = array<i32>} : memref<1x4x4x32xf32, #tpu.memory_space<vmem>>, vector<1x4x4x32xf32>,
    return
  }
  func.func @transform_0(%arg0: i32) -> (i32, i32, i32, i32) {
    %c0_i32 = arith.constant 0 : i32
    %c0_i32_0 = arith.constant 0 : i32
    %c0_i32_1 = arith.constant 0 : i32
    %c0_i32_2 = arith.constant 0 : i32
    return %arg0, %c0_i32, %c0_i32_0, %c0_i32_1 : i32, i32, i32, i32
  }
  func.func @transform_1(%arg0: i32) -> (i32, i32, i32) {
    %c0_i32 = arith.constant 0 : i32
    %c0_i32_0 = arith.constant 0 : i32
    %c0_i32_1 = arith.constant 0 : i32
    %c0_i32_2 = arith.constant 0 : i32
    return %c0_i32, %c0_i32_0, %c0_i32_1 : i32, i32, i32
  }
  func.func @transform_2(%arg0: i32) -> (i32, i32) {
    %c0_i32 = arith.constant 0 : i32
    %c0_i32_0 = arith.constant 0 : i32
    %c0_i32_1 = arith.constant 0 : i32
    return %c0_i32, %c0_i32_0 : i32, i32
  }
  func.func @transform_3(%arg0: i32) -> (i32, i32) {
    %c0_i32 = arith.constant 0 : i32
    %c0_i32_0 = arith.constant 0 : i32
    %c0_i32_1 = arith.constant 0 : i32
    return %c0_i32, %c0_i32_0 : i32, i32
  }
  func.func @transform_4(%arg0: i32) -> (i32, i32, i32, i32) {
    %c0_i32 = arith.constant 0 : i32
    %c0_i32_0 = arith.constant 0 : i32
    %c0_i32_1 = arith.constant 0 : i32
    %c0_i32_2 = arith.constant 0 : i32
    return %arg0, %c0_i32, %c0_i32_0, %c0_i32_1 : i32, i32, i32, i32
  }
}

module attributes {stable_mosaic.version = 11 : i64} {
  func.func @_conv_affine_act_kernel(%arg0: i32, %arg1: memref<1x6x6x32xf32, #tpu.memory_space<vmem>>, %arg2: memref<16x32x64xf32, #tpu.memory_space<vmem>>, %arg3: memref<1x64xf32, #tpu.memory_space<vmem>>, %arg4: memref<1x64xf32, #tpu.memory_space<vmem>>, %arg5: memref<1x3x3x64xf32, #tpu.memory_space<vmem>>) attributes {dimension_semantics = [#tpu.dimension_semantics<parallel>], iteration_bounds = array<i64: 2>, scalar_prefetch = 0 : i64, scratch_operands = 0 : i64, tpu.core_type = #tpu.core_type<tc>, window_params = [{transform_indices = @transform_0, window_bounds = array<i64: 1, 6, 6, 32>}, {pipeline_mode = #tpu.pipeline_mode<synchronous>, transform_indices = @transform_1, window_bounds = array<i64: 16, 32, 64>}, {pipeline_mode = #tpu.pipeline_mode<synchronous>, transform_indices = @transform_2, window_bounds = array<i64: 1, 64>}, {pipeline_mode = #tpu.pipeline_mode<synchronous>, transform_indices = @transform_3, window_bounds = array<i64: 1, 64>}, {transform_indices = @transform_4, window_bounds = array<i64: 1, 3, 3, 64>}]} {
    %c0 = arith.constant 0 : index
    %c0_0 = arith.constant 0 : index
    %c0_1 = arith.constant 0 : index
    %c0_2 = arith.constant 0 : index
    %0 = vector.load %arg1[%c0, %c0_0, %c0_1, %c0_2] : memref<1x6x6x32xf32, #tpu.memory_space<vmem>>, vector<1x6x6x32xf32>
    %1 = vector.shape_cast %0 : vector<1x6x6x32xf32> to vector<6x6x32xf32>
    %cst = arith.constant 0.000000e+00 : f32
    %2 = vector.broadcast %cst : f32 to vector<9x64xf32>
    %3 = vector.extract_strided_slice %1 {offsets = [0, 0, 0], sizes = [3, 3, 32], strides = [1, 1, 1]} : vector<6x6x32xf32> to vector<3x3x32xf32>
    %4 = vector.shape_cast %3 : vector<3x3x32xf32> to vector<9x32xf32>
    %c0_3 = arith.constant 0 : index
    %c0_4 = arith.constant 0 : index
    %c0_5 = arith.constant 0 : index
    %5 = vector.load %arg2[%c0_3, %c0_4, %c0_5] : memref<16x32x64xf32, #tpu.memory_space<vmem>>, vector<1x32x64xf32>
    %6 = vector.shape_cast %5 : vector<1x32x64xf32> to vector<32x64xf32>
    %cst_6 = arith.constant dense<0.000000e+00> : vector<9x64xf32>
    %7 = tpu.matmul %4, %6, %cst_6 {dimension_numbers = #tpu.dot_dimension_numbers<[1], [0], [0], [1], [0, 0, 1, 1], [], []>} : vector<9x32xf32>, vector<32x64xf32>, vector<9x64xf32> -> vector<9x64xf32>
    %8 = arith.addf %2, %7 : vector<9x64xf32>
    %9 = vector.extract_strided_slice %1 {offsets = [0, 1, 0], sizes = [3, 3, 32], strides = [1, 1, 1]} : vector<6x6x32xf32> to vector<3x3x32xf32>
    %10 = vector.shape_cast %9 : vector<3x3x32xf32> to vector<9x32xf32>
    %c1 = arith.constant 1 : index
    %c0_7 = arith.constant 0 : index
    %c0_8 = arith.constant 0 : index
    %11 = vector.load %arg2[%c1, %c0_7, %c0_8] : memref<16x32x64xf32, #tpu.memory_space<vmem>>, vector<1x32x64xf32>
    %12 = vector.shape_cast %11 : vector<1x32x64xf32> to vector<32x64xf32>
    %cst_9 = arith.constant dense<0.000000e+00> : vector<9x64xf32>
    %13 = tpu.matmul %10, %12, %cst_9 {dimension_numbers = #tpu.dot_dimension_numbers<[1], [0], [0], [1], [0, 0, 1, 1], [], []>} : vector<9x32xf32>, vector<32x64xf32>, vector<9x64xf32> -> vector<9x64xf32>
    %14 = arith.addf %8, %13 : vector<9x64xf32>
    %15 = vector.extract_strided_slice %1 {offsets = [0, 2, 0], sizes = [3, 3, 32], strides = [1, 1, 1]} : vector<6x6x32xf32> to vector<3x3x32xf32>
    %16 = vector.shape_cast %15 : vector<3x3x32xf32> to vector<9x32xf32>
    %c2 = arith.constant 2 : index
    %c0_10 = arith.constant 0 : index
    %c0_11 = arith.constant 0 : index
    %17 = vector.load %arg2[%c2, %c0_10, %c0_11] : memref<16x32x64xf32, #tpu.memory_space<vmem>>, vector<1x32x64xf32>
    %18 = vector.shape_cast %17 : vector<1x32x64xf32> to vector<32x64xf32>
    %cst_12 = arith.constant dense<0.000000e+00> : vector<9x64xf32>
    %19 = tpu.matmul %16, %18, %cst_12 {dimension_numbers = #tpu.dot_dimension_numbers<[1], [0], [0], [1], [0, 0, 1, 1], [], []>} : vector<9x32xf32>, vector<32x64xf32>, vector<9x64xf32> -> vector<9x64xf32>
    %20 = arith.addf %14, %19 : vector<9x64xf32>
    %21 = vector.extract_strided_slice %1 {offsets = [0, 3, 0], sizes = [3, 3, 32], strides = [1, 1, 1]} : vector<6x6x32xf32> to vector<3x3x32xf32>
    %22 = vector.shape_cast %21 : vector<3x3x32xf32> to vector<9x32xf32>
    %c3 = arith.constant 3 : index
    %c0_13 = arith.constant 0 : index
    %c0_14 = arith.constant 0 : index
    %23 = vector.load %arg2[%c3, %c0_13, %c0_14] : memref<16x32x64xf32, #tpu.memory_space<vmem>>, vector<1x32x64xf32>
    %24 = vector.shape_cast %23 : vector<1x32x64xf32> to vector<32x64xf32>
    %cst_15 = arith.constant dense<0.000000e+00> : vector<9x64xf32>
    %25 = tpu.matmul %22, %24, %cst_15 {dimension_numbers = #tpu.dot_dimension_numbers<[1], [0], [0], [1], [0, 0, 1, 1], [], []>} : vector<9x32xf32>, vector<32x64xf32>, vector<9x64xf32> -> vector<9x64xf32>
    %26 = arith.addf %20, %25 : vector<9x64xf32>
    %27 = vector.extract_strided_slice %1 {offsets = [1, 0, 0], sizes = [3, 3, 32], strides = [1, 1, 1]} : vector<6x6x32xf32> to vector<3x3x32xf32>
    %28 = vector.shape_cast %27 : vector<3x3x32xf32> to vector<9x32xf32>
    %c4 = arith.constant 4 : index
    %c0_16 = arith.constant 0 : index
    %c0_17 = arith.constant 0 : index
    %29 = vector.load %arg2[%c4, %c0_16, %c0_17] : memref<16x32x64xf32, #tpu.memory_space<vmem>>, vector<1x32x64xf32>
    %30 = vector.shape_cast %29 : vector<1x32x64xf32> to vector<32x64xf32>
    %cst_18 = arith.constant dense<0.000000e+00> : vector<9x64xf32>
    %31 = tpu.matmul %28, %30, %cst_18 {dimension_numbers = #tpu.dot_dimension_numbers<[1], [0], [0], [1], [0, 0, 1, 1], [], []>} : vector<9x32xf32>, vector<32x64xf32>, vector<9x64xf32> -> vector<9x64xf32>
    %32 = arith.addf %26, %31 : vector<9x64xf32>
    %33 = vector.extract_strided_slice %1 {offsets = [1, 1, 0], sizes = [3, 3, 32], strides = [1, 1, 1]} : vector<6x6x32xf32> to vector<3x3x32xf32>
    %34 = vector.shape_cast %33 : vector<3x3x32xf32> to vector<9x32xf32>
    %c5 = arith.constant 5 : index
    %c0_19 = arith.constant 0 : index
    %c0_20 = arith.constant 0 : index
    %35 = vector.load %arg2[%c5, %c0_19, %c0_20] : memref<16x32x64xf32, #tpu.memory_space<vmem>>, vector<1x32x64xf32>
    %36 = vector.shape_cast %35 : vector<1x32x64xf32> to vector<32x64xf32>
    %cst_21 = arith.constant dense<0.000000e+00> : vector<9x64xf32>
    %37 = tpu.matmul %34, %36, %cst_21 {dimension_numbers = #tpu.dot_dimension_numbers<[1], [0], [0], [1], [0, 0, 1, 1], [], []>} : vector<9x32xf32>, vector<32x64xf32>, vector<9x64xf32> -> vector<9x64xf32>
    %38 = arith.addf %32, %37 : vector<9x64xf32>
    %39 = vector.extract_strided_slice %1 {offsets = [1, 2, 0], sizes = [3, 3, 32], strides = [1, 1, 1]} : vector<6x6x32xf32> to vector<3x3x32xf32>
    %40 = vector.shape_cast %39 : vector<3x3x32xf32> to vector<9x32xf32>
    %c6 = arith.constant 6 : index
    %c0_22 = arith.constant 0 : index
    %c0_23 = arith.constant 0 : index
    %41 = vector.load %arg2[%c6, %c0_22, %c0_23] : memref<16x32x64xf32, #tpu.memory_space<vmem>>, vector<1x32x64xf32>
    %42 = vector.shape_cast %41 : vector<1x32x64xf32> to vector<32x64xf32>
    %cst_24 = arith.constant dense<0.000000e+00> : vector<9x64xf32>
    %43 = tpu.matmul %40, %42, %cst_24 {dimension_numbers = #tpu.dot_dimension_numbers<[1], [0], [0], [1], [0, 0, 1, 1], [], []>} : vector<9x32xf32>, vector<32x64xf32>, vector<9x64xf32> -> vector<9x64xf32>
    %44 = arith.addf %38, %43 : vector<9x64xf32>
    %45 = vector.extract_strided_slice %1 {offsets = [1, 3, 0], sizes = [3, 3, 32], strides = [1, 1, 1]} : vector<6x6x32xf32> to vector<3x3x32xf32>
    %46 = vector.shape_cast %45 : vector<3x3x32xf32> to vector<9x32xf32>
    %c7 = arith.constant 7 : index
    %c0_25 = arith.constant 0 : index
    %c0_26 = arith.constant 0 : index
    %47 = vector.load %arg2[%c7, %c0_25, %c0_26] : memref<16x32x64xf32, #tpu.memory_space<vmem>>, vector<1x32x64xf32>
    %48 = vector.shape_cast %47 : vector<1x32x64xf32> to vector<32x64xf32>
    %cst_27 = arith.constant dense<0.000000e+00> : vector<9x64xf32>
    %49 = tpu.matmul %46, %48, %cst_27 {dimension_numbers = #tpu.dot_dimension_numbers<[1], [0], [0], [1], [0, 0, 1, 1], [], []>} : vector<9x32xf32>, vector<32x64xf32>, vector<9x64xf32> -> vector<9x64xf32>
    %50 = arith.addf %44, %49 : vector<9x64xf32>
    %51 = vector.extract_strided_slice %1 {offsets = [2, 0, 0], sizes = [3, 3, 32], strides = [1, 1, 1]} : vector<6x6x32xf32> to vector<3x3x32xf32>
    %52 = vector.shape_cast %51 : vector<3x3x32xf32> to vector<9x32xf32>
    %c8 = arith.constant 8 : index
    %c0_28 = arith.constant 0 : index
    %c0_29 = arith.constant 0 : index
    %53 = vector.load %arg2[%c8, %c0_28, %c0_29] : memref<16x32x64xf32, #tpu.memory_space<vmem>>, vector<1x32x64xf32>
    %54 = vector.shape_cast %53 : vector<1x32x64xf32> to vector<32x64xf32>
    %cst_30 = arith.constant dense<0.000000e+00> : vector<9x64xf32>
    %55 = tpu.matmul %52, %54, %cst_30 {dimension_numbers = #tpu.dot_dimension_numbers<[1], [0], [0], [1], [0, 0, 1, 1], [], []>} : vector<9x32xf32>, vector<32x64xf32>, vector<9x64xf32> -> vector<9x64xf32>
    %56 = arith.addf %50, %55 : vector<9x64xf32>
    %57 = vector.extract_strided_slice %1 {offsets = [2, 1, 0], sizes = [3, 3, 32], strides = [1, 1, 1]} : vector<6x6x32xf32> to vector<3x3x32xf32>
    %58 = vector.shape_cast %57 : vector<3x3x32xf32> to vector<9x32xf32>
    %c9 = arith.constant 9 : index
    %c0_31 = arith.constant 0 : index
    %c0_32 = arith.constant 0 : index
    %59 = vector.load %arg2[%c9, %c0_31, %c0_32] : memref<16x32x64xf32, #tpu.memory_space<vmem>>, vector<1x32x64xf32>
    %60 = vector.shape_cast %59 : vector<1x32x64xf32> to vector<32x64xf32>
    %cst_33 = arith.constant dense<0.000000e+00> : vector<9x64xf32>
    %61 = tpu.matmul %58, %60, %cst_33 {dimension_numbers = #tpu.dot_dimension_numbers<[1], [0], [0], [1], [0, 0, 1, 1], [], []>} : vector<9x32xf32>, vector<32x64xf32>, vector<9x64xf32> -> vector<9x64xf32>
    %62 = arith.addf %56, %61 : vector<9x64xf32>
    %63 = vector.extract_strided_slice %1 {offsets = [2, 2, 0], sizes = [3, 3, 32], strides = [1, 1, 1]} : vector<6x6x32xf32> to vector<3x3x32xf32>
    %64 = vector.shape_cast %63 : vector<3x3x32xf32> to vector<9x32xf32>
    %c10 = arith.constant 10 : index
    %c0_34 = arith.constant 0 : index
    %c0_35 = arith.constant 0 : index
    %65 = vector.load %arg2[%c10, %c0_34, %c0_35] : memref<16x32x64xf32, #tpu.memory_space<vmem>>, vector<1x32x64xf32>
    %66 = vector.shape_cast %65 : vector<1x32x64xf32> to vector<32x64xf32>
    %cst_36 = arith.constant dense<0.000000e+00> : vector<9x64xf32>
    %67 = tpu.matmul %64, %66, %cst_36 {dimension_numbers = #tpu.dot_dimension_numbers<[1], [0], [0], [1], [0, 0, 1, 1], [], []>} : vector<9x32xf32>, vector<32x64xf32>, vector<9x64xf32> -> vector<9x64xf32>
    %68 = arith.addf %62, %67 : vector<9x64xf32>
    %69 = vector.extract_strided_slice %1 {offsets = [2, 3, 0], sizes = [3, 3, 32], strides = [1, 1, 1]} : vector<6x6x32xf32> to vector<3x3x32xf32>
    %70 = vector.shape_cast %69 : vector<3x3x32xf32> to vector<9x32xf32>
    %c11 = arith.constant 11 : index
    %c0_37 = arith.constant 0 : index
    %c0_38 = arith.constant 0 : index
    %71 = vector.load %arg2[%c11, %c0_37, %c0_38] : memref<16x32x64xf32, #tpu.memory_space<vmem>>, vector<1x32x64xf32>
    %72 = vector.shape_cast %71 : vector<1x32x64xf32> to vector<32x64xf32>
    %cst_39 = arith.constant dense<0.000000e+00> : vector<9x64xf32>
    %73 = tpu.matmul %70, %72, %cst_39 {dimension_numbers = #tpu.dot_dimension_numbers<[1], [0], [0], [1], [0, 0, 1, 1], [], []>} : vector<9x32xf32>, vector<32x64xf32>, vector<9x64xf32> -> vector<9x64xf32>
    %74 = arith.addf %68, %73 : vector<9x64xf32>
    %75 = vector.extract_strided_slice %1 {offsets = [3, 0, 0], sizes = [3, 3, 32], strides = [1, 1, 1]} : vector<6x6x32xf32> to vector<3x3x32xf32>
    %76 = vector.shape_cast %75 : vector<3x3x32xf32> to vector<9x32xf32>
    %c12 = arith.constant 12 : index
    %c0_40 = arith.constant 0 : index
    %c0_41 = arith.constant 0 : index
    %77 = vector.load %arg2[%c12, %c0_40, %c0_41] : memref<16x32x64xf32, #tpu.memory_space<vmem>>, vector<1x32x64xf32>
    %78 = vector.shape_cast %77 : vector<1x32x64xf32> to vector<32x64xf32>
    %cst_42 = arith.constant dense<0.000000e+00> : vector<9x64xf32>
    %79 = tpu.matmul %76, %78, %cst_42 {dimension_numbers = #tpu.dot_dimension_numbers<[1], [0], [0], [1], [0, 0, 1, 1], [], []>} : vector<9x32xf32>, vector<32x64xf32>, vector<9x64xf32> -> vector<9x64xf32>
    %80 = arith.addf %74, %79 : vector<9x64xf32>
    %81 = vector.extract_strided_slice %1 {offsets = [3, 1, 0], sizes = [3, 3, 32], strides = [1, 1, 1]} : vector<6x6x32xf32> to vector<3x3x32xf32>
    %82 = vector.shape_cast %81 : vector<3x3x32xf32> to vector<9x32xf32>
    %c13 = arith.constant 13 : index
    %c0_43 = arith.constant 0 : index
    %c0_44 = arith.constant 0 : index
    %83 = vector.load %arg2[%c13, %c0_43, %c0_44] : memref<16x32x64xf32, #tpu.memory_space<vmem>>, vector<1x32x64xf32>
    %84 = vector.shape_cast %83 : vector<1x32x64xf32> to vector<32x64xf32>
    %cst_45 = arith.constant dense<0.000000e+00> : vector<9x64xf32>
    %85 = tpu.matmul %82, %84, %cst_45 {dimension_numbers = #tpu.dot_dimension_numbers<[1], [0], [0], [1], [0, 0, 1, 1], [], []>} : vector<9x32xf32>, vector<32x64xf32>, vector<9x64xf32> -> vector<9x64xf32>
    %86 = arith.addf %80, %85 : vector<9x64xf32>
    %87 = vector.extract_strided_slice %1 {offsets = [3, 2, 0], sizes = [3, 3, 32], strides = [1, 1, 1]} : vector<6x6x32xf32> to vector<3x3x32xf32>
    %88 = vector.shape_cast %87 : vector<3x3x32xf32> to vector<9x32xf32>
    %c14 = arith.constant 14 : index
    %c0_46 = arith.constant 0 : index
    %c0_47 = arith.constant 0 : index
    %89 = vector.load %arg2[%c14, %c0_46, %c0_47] : memref<16x32x64xf32, #tpu.memory_space<vmem>>, vector<1x32x64xf32>
    %90 = vector.shape_cast %89 : vector<1x32x64xf32> to vector<32x64xf32>
    %cst_48 = arith.constant dense<0.000000e+00> : vector<9x64xf32>
    %91 = tpu.matmul %88, %90, %cst_48 {dimension_numbers = #tpu.dot_dimension_numbers<[1], [0], [0], [1], [0, 0, 1, 1], [], []>} : vector<9x32xf32>, vector<32x64xf32>, vector<9x64xf32> -> vector<9x64xf32>
    %92 = arith.addf %86, %91 : vector<9x64xf32>
    %93 = vector.extract_strided_slice %1 {offsets = [3, 3, 0], sizes = [3, 3, 32], strides = [1, 1, 1]} : vector<6x6x32xf32> to vector<3x3x32xf32>
    %94 = vector.shape_cast %93 : vector<3x3x32xf32> to vector<9x32xf32>
    %c15 = arith.constant 15 : index
    %c0_49 = arith.constant 0 : index
    %c0_50 = arith.constant 0 : index
    %95 = vector.load %arg2[%c15, %c0_49, %c0_50] : memref<16x32x64xf32, #tpu.memory_space<vmem>>, vector<1x32x64xf32>
    %96 = vector.shape_cast %95 : vector<1x32x64xf32> to vector<32x64xf32>
    %cst_51 = arith.constant dense<0.000000e+00> : vector<9x64xf32>
    %97 = tpu.matmul %94, %96, %cst_51 {dimension_numbers = #tpu.dot_dimension_numbers<[1], [0], [0], [1], [0, 0, 1, 1], [], []>} : vector<9x32xf32>, vector<32x64xf32>, vector<9x64xf32> -> vector<9x64xf32>
    %98 = arith.addf %92, %97 : vector<9x64xf32>
    %c0_52 = arith.constant 0 : index
    %c0_53 = arith.constant 0 : index
    %99 = vector.load %arg3[%c0_52, %c0_53] : memref<1x64xf32, #tpu.memory_space<vmem>>, vector<1x64xf32>
    %100 = vector.broadcast %99 : vector<1x64xf32> to vector<9x64xf32>
    %101 = arith.mulf %98, %100 : vector<9x64xf32>
    %c0_54 = arith.constant 0 : index
    %c0_55 = arith.constant 0 : index
    %102 = vector.load %arg4[%c0_54, %c0_55] : memref<1x64xf32, #tpu.memory_space<vmem>>, vector<1x64xf32>
    %103 = vector.broadcast %102 : vector<1x64xf32> to vector<9x64xf32>
    %104 = arith.addf %101, %103 : vector<9x64xf32>
    %cst_56 = arith.constant 0.000000e+00 : f32
    %105 = vector.broadcast %cst_56 : f32 to vector<9x64xf32>
    %106 = arith.cmpf oge, %104, %105 : vector<9x64xf32>
    %cst_57 = arith.constant 2.000000e-01 : f32
    %107 = vector.broadcast %cst_57 : f32 to vector<9x64xf32>
    %108 = arith.mulf %107, %104 : vector<9x64xf32>
    %109 = arith.select %106, %104, %108 : vector<9x64xi1>, vector<9x64xf32>
    %110 = vector.shape_cast %109 : vector<9x64xf32> to vector<3x3x64xf32>
    %c0_58 = arith.constant 0 : index
    %c0_59 = arith.constant 0 : index
    %c0_60 = arith.constant 0 : index
    %c0_61 = arith.constant 0 : index
    %111 = vector.load %arg5[%c0_58, %c0_59, %c0_60, %c0_61] : memref<1x3x3x64xf32, #tpu.memory_space<vmem>>, vector<1x3x3x64xf32>
    %112 = vector.shape_cast %111 : vector<1x3x3x64xf32> to vector<3x3x64xf32>
    %113 = vector.shape_cast %110 : vector<3x3x64xf32> to vector<1x3x3x64xf32>
    tpu.vector_store %arg5[%c0_58, %c0_59, %c0_60, %c0_61], %113 {strides = array<i32>} : memref<1x3x3x64xf32, #tpu.memory_space<vmem>>, vector<1x3x3x64xf32>,
    return
  }
  func.func @transform_0(%arg0: i32) -> (i32, i32, i32, i32) {
    %c0_i32 = arith.constant 0 : i32
    %c0_i32_0 = arith.constant 0 : i32
    %c0_i32_1 = arith.constant 0 : i32
    %c0_i32_2 = arith.constant 0 : i32
    return %arg0, %c0_i32, %c0_i32_0, %c0_i32_1 : i32, i32, i32, i32
  }
  func.func @transform_1(%arg0: i32) -> (i32, i32, i32) {
    %c0_i32 = arith.constant 0 : i32
    %c0_i32_0 = arith.constant 0 : i32
    %c0_i32_1 = arith.constant 0 : i32
    %c0_i32_2 = arith.constant 0 : i32
    return %c0_i32, %c0_i32_0, %c0_i32_1 : i32, i32, i32
  }
  func.func @transform_2(%arg0: i32) -> (i32, i32) {
    %c0_i32 = arith.constant 0 : i32
    %c0_i32_0 = arith.constant 0 : i32
    %c0_i32_1 = arith.constant 0 : i32
    return %c0_i32, %c0_i32_0 : i32, i32
  }
  func.func @transform_3(%arg0: i32) -> (i32, i32) {
    %c0_i32 = arith.constant 0 : i32
    %c0_i32_0 = arith.constant 0 : i32
    %c0_i32_1 = arith.constant 0 : i32
    return %c0_i32, %c0_i32_0 : i32, i32
  }
  func.func @transform_4(%arg0: i32) -> (i32, i32, i32, i32) {
    %c0_i32 = arith.constant 0 : i32
    %c0_i32_0 = arith.constant 0 : i32
    %c0_i32_1 = arith.constant 0 : i32
    %c0_i32_2 = arith.constant 0 : i32
    return %arg0, %c0_i32, %c0_i32_0, %c0_i32_1 : i32, i32, i32, i32
  }
}

module attributes {stable_mosaic.version = 11 : i64} {
  func.func @_conv_affine_act_kernel(%arg0: i32, %arg1: memref<1x5x5x64xf32, #tpu.memory_space<vmem>>, %arg2: memref<16x64x1xf32, #tpu.memory_space<vmem>>, %arg3: memref<1x1xf32, #tpu.memory_space<vmem>>, %arg4: memref<1x1xf32, #tpu.memory_space<vmem>>, %arg5: memref<1x2x2x1xf32, #tpu.memory_space<vmem>>) attributes {dimension_semantics = [#tpu.dimension_semantics<parallel>], iteration_bounds = array<i64: 2>, scalar_prefetch = 0 : i64, scratch_operands = 0 : i64, tpu.core_type = #tpu.core_type<tc>, window_params = [{transform_indices = @transform_0, window_bounds = array<i64: 1, 5, 5, 64>}, {pipeline_mode = #tpu.pipeline_mode<synchronous>, transform_indices = @transform_1, window_bounds = array<i64: 16, 64, 1>}, {pipeline_mode = #tpu.pipeline_mode<synchronous>, transform_indices = @transform_2, window_bounds = array<i64: 1, 1>}, {pipeline_mode = #tpu.pipeline_mode<synchronous>, transform_indices = @transform_3, window_bounds = array<i64: 1, 1>}, {transform_indices = @transform_4, window_bounds = array<i64: 1, 2, 2, 1>}]} {
    %c0 = arith.constant 0 : index
    %c0_0 = arith.constant 0 : index
    %c0_1 = arith.constant 0 : index
    %c0_2 = arith.constant 0 : index
    %0 = vector.load %arg1[%c0, %c0_0, %c0_1, %c0_2] : memref<1x5x5x64xf32, #tpu.memory_space<vmem>>, vector<1x5x5x64xf32>
    %1 = vector.shape_cast %0 : vector<1x5x5x64xf32> to vector<5x5x64xf32>
    %cst = arith.constant 0.000000e+00 : f32
    %2 = vector.broadcast %cst : f32 to vector<4x1xf32>
    %3 = vector.extract_strided_slice %1 {offsets = [0, 0, 0], sizes = [2, 2, 64], strides = [1, 1, 1]} : vector<5x5x64xf32> to vector<2x2x64xf32>
    %4 = vector.shape_cast %3 : vector<2x2x64xf32> to vector<4x64xf32>
    %c0_3 = arith.constant 0 : index
    %c0_4 = arith.constant 0 : index
    %c0_5 = arith.constant 0 : index
    %5 = vector.load %arg2[%c0_3, %c0_4, %c0_5] : memref<16x64x1xf32, #tpu.memory_space<vmem>>, vector<1x64x1xf32>
    %6 = vector.shape_cast %5 : vector<1x64x1xf32> to vector<64x1xf32>
    %cst_6 = arith.constant dense<0.000000e+00> : vector<4x1xf32>
    %7 = tpu.matmul %4, %6, %cst_6 {dimension_numbers = #tpu.dot_dimension_numbers<[1], [0], [0], [1], [0, 0, 1, 1], [], []>} : vector<4x64xf32>, vector<64x1xf32>, vector<4x1xf32> -> vector<4x1xf32>
    %8 = arith.addf %2, %7 : vector<4x1xf32>
    %9 = vector.extract_strided_slice %1 {offsets = [0, 1, 0], sizes = [2, 2, 64], strides = [1, 1, 1]} : vector<5x5x64xf32> to vector<2x2x64xf32>
    %10 = vector.shape_cast %9 : vector<2x2x64xf32> to vector<4x64xf32>
    %c1 = arith.constant 1 : index
    %c0_7 = arith.constant 0 : index
    %c0_8 = arith.constant 0 : index
    %11 = vector.load %arg2[%c1, %c0_7, %c0_8] : memref<16x64x1xf32, #tpu.memory_space<vmem>>, vector<1x64x1xf32>
    %12 = vector.shape_cast %11 : vector<1x64x1xf32> to vector<64x1xf32>
    %cst_9 = arith.constant dense<0.000000e+00> : vector<4x1xf32>
    %13 = tpu.matmul %10, %12, %cst_9 {dimension_numbers = #tpu.dot_dimension_numbers<[1], [0], [0], [1], [0, 0, 1, 1], [], []>} : vector<4x64xf32>, vector<64x1xf32>, vector<4x1xf32> -> vector<4x1xf32>
    %14 = arith.addf %8, %13 : vector<4x1xf32>
    %15 = vector.extract_strided_slice %1 {offsets = [0, 2, 0], sizes = [2, 2, 64], strides = [1, 1, 1]} : vector<5x5x64xf32> to vector<2x2x64xf32>
    %16 = vector.shape_cast %15 : vector<2x2x64xf32> to vector<4x64xf32>
    %c2 = arith.constant 2 : index
    %c0_10 = arith.constant 0 : index
    %c0_11 = arith.constant 0 : index
    %17 = vector.load %arg2[%c2, %c0_10, %c0_11] : memref<16x64x1xf32, #tpu.memory_space<vmem>>, vector<1x64x1xf32>
    %18 = vector.shape_cast %17 : vector<1x64x1xf32> to vector<64x1xf32>
    %cst_12 = arith.constant dense<0.000000e+00> : vector<4x1xf32>
    %19 = tpu.matmul %16, %18, %cst_12 {dimension_numbers = #tpu.dot_dimension_numbers<[1], [0], [0], [1], [0, 0, 1, 1], [], []>} : vector<4x64xf32>, vector<64x1xf32>, vector<4x1xf32> -> vector<4x1xf32>
    %20 = arith.addf %14, %19 : vector<4x1xf32>
    %21 = vector.extract_strided_slice %1 {offsets = [0, 3, 0], sizes = [2, 2, 64], strides = [1, 1, 1]} : vector<5x5x64xf32> to vector<2x2x64xf32>
    %22 = vector.shape_cast %21 : vector<2x2x64xf32> to vector<4x64xf32>
    %c3 = arith.constant 3 : index
    %c0_13 = arith.constant 0 : index
    %c0_14 = arith.constant 0 : index
    %23 = vector.load %arg2[%c3, %c0_13, %c0_14] : memref<16x64x1xf32, #tpu.memory_space<vmem>>, vector<1x64x1xf32>
    %24 = vector.shape_cast %23 : vector<1x64x1xf32> to vector<64x1xf32>
    %cst_15 = arith.constant dense<0.000000e+00> : vector<4x1xf32>
    %25 = tpu.matmul %22, %24, %cst_15 {dimension_numbers = #tpu.dot_dimension_numbers<[1], [0], [0], [1], [0, 0, 1, 1], [], []>} : vector<4x64xf32>, vector<64x1xf32>, vector<4x1xf32> -> vector<4x1xf32>
    %26 = arith.addf %20, %25 : vector<4x1xf32>
    %27 = vector.extract_strided_slice %1 {offsets = [1, 0, 0], sizes = [2, 2, 64], strides = [1, 1, 1]} : vector<5x5x64xf32> to vector<2x2x64xf32>
    %28 = vector.shape_cast %27 : vector<2x2x64xf32> to vector<4x64xf32>
    %c4 = arith.constant 4 : index
    %c0_16 = arith.constant 0 : index
    %c0_17 = arith.constant 0 : index
    %29 = vector.load %arg2[%c4, %c0_16, %c0_17] : memref<16x64x1xf32, #tpu.memory_space<vmem>>, vector<1x64x1xf32>
    %30 = vector.shape_cast %29 : vector<1x64x1xf32> to vector<64x1xf32>
    %cst_18 = arith.constant dense<0.000000e+00> : vector<4x1xf32>
    %31 = tpu.matmul %28, %30, %cst_18 {dimension_numbers = #tpu.dot_dimension_numbers<[1], [0], [0], [1], [0, 0, 1, 1], [], []>} : vector<4x64xf32>, vector<64x1xf32>, vector<4x1xf32> -> vector<4x1xf32>
    %32 = arith.addf %26, %31 : vector<4x1xf32>
    %33 = vector.extract_strided_slice %1 {offsets = [1, 1, 0], sizes = [2, 2, 64], strides = [1, 1, 1]} : vector<5x5x64xf32> to vector<2x2x64xf32>
    %34 = vector.shape_cast %33 : vector<2x2x64xf32> to vector<4x64xf32>
    %c5 = arith.constant 5 : index
    %c0_19 = arith.constant 0 : index
    %c0_20 = arith.constant 0 : index
    %35 = vector.load %arg2[%c5, %c0_19, %c0_20] : memref<16x64x1xf32, #tpu.memory_space<vmem>>, vector<1x64x1xf32>
    %36 = vector.shape_cast %35 : vector<1x64x1xf32> to vector<64x1xf32>
    %cst_21 = arith.constant dense<0.000000e+00> : vector<4x1xf32>
    %37 = tpu.matmul %34, %36, %cst_21 {dimension_numbers = #tpu.dot_dimension_numbers<[1], [0], [0], [1], [0, 0, 1, 1], [], []>} : vector<4x64xf32>, vector<64x1xf32>, vector<4x1xf32> -> vector<4x1xf32>
    %38 = arith.addf %32, %37 : vector<4x1xf32>
    %39 = vector.extract_strided_slice %1 {offsets = [1, 2, 0], sizes = [2, 2, 64], strides = [1, 1, 1]} : vector<5x5x64xf32> to vector<2x2x64xf32>
    %40 = vector.shape_cast %39 : vector<2x2x64xf32> to vector<4x64xf32>
    %c6 = arith.constant 6 : index
    %c0_22 = arith.constant 0 : index
    %c0_23 = arith.constant 0 : index
    %41 = vector.load %arg2[%c6, %c0_22, %c0_23] : memref<16x64x1xf32, #tpu.memory_space<vmem>>, vector<1x64x1xf32>
    %42 = vector.shape_cast %41 : vector<1x64x1xf32> to vector<64x1xf32>
    %cst_24 = arith.constant dense<0.000000e+00> : vector<4x1xf32>
    %43 = tpu.matmul %40, %42, %cst_24 {dimension_numbers = #tpu.dot_dimension_numbers<[1], [0], [0], [1], [0, 0, 1, 1], [], []>} : vector<4x64xf32>, vector<64x1xf32>, vector<4x1xf32> -> vector<4x1xf32>
    %44 = arith.addf %38, %43 : vector<4x1xf32>
    %45 = vector.extract_strided_slice %1 {offsets = [1, 3, 0], sizes = [2, 2, 64], strides = [1, 1, 1]} : vector<5x5x64xf32> to vector<2x2x64xf32>
    %46 = vector.shape_cast %45 : vector<2x2x64xf32> to vector<4x64xf32>
    %c7 = arith.constant 7 : index
    %c0_25 = arith.constant 0 : index
    %c0_26 = arith.constant 0 : index
    %47 = vector.load %arg2[%c7, %c0_25, %c0_26] : memref<16x64x1xf32, #tpu.memory_space<vmem>>, vector<1x64x1xf32>
    %48 = vector.shape_cast %47 : vector<1x64x1xf32> to vector<64x1xf32>
    %cst_27 = arith.constant dense<0.000000e+00> : vector<4x1xf32>
    %49 = tpu.matmul %46, %48, %cst_27 {dimension_numbers = #tpu.dot_dimension_numbers<[1], [0], [0], [1], [0, 0, 1, 1], [], []>} : vector<4x64xf32>, vector<64x1xf32>, vector<4x1xf32> -> vector<4x1xf32>
    %50 = arith.addf %44, %49 : vector<4x1xf32>
    %51 = vector.extract_strided_slice %1 {offsets = [2, 0, 0], sizes = [2, 2, 64], strides = [1, 1, 1]} : vector<5x5x64xf32> to vector<2x2x64xf32>
    %52 = vector.shape_cast %51 : vector<2x2x64xf32> to vector<4x64xf32>
    %c8 = arith.constant 8 : index
    %c0_28 = arith.constant 0 : index
    %c0_29 = arith.constant 0 : index
    %53 = vector.load %arg2[%c8, %c0_28, %c0_29] : memref<16x64x1xf32, #tpu.memory_space<vmem>>, vector<1x64x1xf32>
    %54 = vector.shape_cast %53 : vector<1x64x1xf32> to vector<64x1xf32>
    %cst_30 = arith.constant dense<0.000000e+00> : vector<4x1xf32>
    %55 = tpu.matmul %52, %54, %cst_30 {dimension_numbers = #tpu.dot_dimension_numbers<[1], [0], [0], [1], [0, 0, 1, 1], [], []>} : vector<4x64xf32>, vector<64x1xf32>, vector<4x1xf32> -> vector<4x1xf32>
    %56 = arith.addf %50, %55 : vector<4x1xf32>
    %57 = vector.extract_strided_slice %1 {offsets = [2, 1, 0], sizes = [2, 2, 64], strides = [1, 1, 1]} : vector<5x5x64xf32> to vector<2x2x64xf32>
    %58 = vector.shape_cast %57 : vector<2x2x64xf32> to vector<4x64xf32>
    %c9 = arith.constant 9 : index
    %c0_31 = arith.constant 0 : index
    %c0_32 = arith.constant 0 : index
    %59 = vector.load %arg2[%c9, %c0_31, %c0_32] : memref<16x64x1xf32, #tpu.memory_space<vmem>>, vector<1x64x1xf32>
    %60 = vector.shape_cast %59 : vector<1x64x1xf32> to vector<64x1xf32>
    %cst_33 = arith.constant dense<0.000000e+00> : vector<4x1xf32>
    %61 = tpu.matmul %58, %60, %cst_33 {dimension_numbers = #tpu.dot_dimension_numbers<[1], [0], [0], [1], [0, 0, 1, 1], [], []>} : vector<4x64xf32>, vector<64x1xf32>, vector<4x1xf32> -> vector<4x1xf32>
    %62 = arith.addf %56, %61 : vector<4x1xf32>
    %63 = vector.extract_strided_slice %1 {offsets = [2, 2, 0], sizes = [2, 2, 64], strides = [1, 1, 1]} : vector<5x5x64xf32> to vector<2x2x64xf32>
    %64 = vector.shape_cast %63 : vector<2x2x64xf32> to vector<4x64xf32>
    %c10 = arith.constant 10 : index
    %c0_34 = arith.constant 0 : index
    %c0_35 = arith.constant 0 : index
    %65 = vector.load %arg2[%c10, %c0_34, %c0_35] : memref<16x64x1xf32, #tpu.memory_space<vmem>>, vector<1x64x1xf32>
    %66 = vector.shape_cast %65 : vector<1x64x1xf32> to vector<64x1xf32>
    %cst_36 = arith.constant dense<0.000000e+00> : vector<4x1xf32>
    %67 = tpu.matmul %64, %66, %cst_36 {dimension_numbers = #tpu.dot_dimension_numbers<[1], [0], [0], [1], [0, 0, 1, 1], [], []>} : vector<4x64xf32>, vector<64x1xf32>, vector<4x1xf32> -> vector<4x1xf32>
    %68 = arith.addf %62, %67 : vector<4x1xf32>
    %69 = vector.extract_strided_slice %1 {offsets = [2, 3, 0], sizes = [2, 2, 64], strides = [1, 1, 1]} : vector<5x5x64xf32> to vector<2x2x64xf32>
    %70 = vector.shape_cast %69 : vector<2x2x64xf32> to vector<4x64xf32>
    %c11 = arith.constant 11 : index
    %c0_37 = arith.constant 0 : index
    %c0_38 = arith.constant 0 : index
    %71 = vector.load %arg2[%c11, %c0_37, %c0_38] : memref<16x64x1xf32, #tpu.memory_space<vmem>>, vector<1x64x1xf32>
    %72 = vector.shape_cast %71 : vector<1x64x1xf32> to vector<64x1xf32>
    %cst_39 = arith.constant dense<0.000000e+00> : vector<4x1xf32>
    %73 = tpu.matmul %70, %72, %cst_39 {dimension_numbers = #tpu.dot_dimension_numbers<[1], [0], [0], [1], [0, 0, 1, 1], [], []>} : vector<4x64xf32>, vector<64x1xf32>, vector<4x1xf32> -> vector<4x1xf32>
    %74 = arith.addf %68, %73 : vector<4x1xf32>
    %75 = vector.extract_strided_slice %1 {offsets = [3, 0, 0], sizes = [2, 2, 64], strides = [1, 1, 1]} : vector<5x5x64xf32> to vector<2x2x64xf32>
    %76 = vector.shape_cast %75 : vector<2x2x64xf32> to vector<4x64xf32>
    %c12 = arith.constant 12 : index
    %c0_40 = arith.constant 0 : index
    %c0_41 = arith.constant 0 : index
    %77 = vector.load %arg2[%c12, %c0_40, %c0_41] : memref<16x64x1xf32, #tpu.memory_space<vmem>>, vector<1x64x1xf32>
    %78 = vector.shape_cast %77 : vector<1x64x1xf32> to vector<64x1xf32>
    %cst_42 = arith.constant dense<0.000000e+00> : vector<4x1xf32>
    %79 = tpu.matmul %76, %78, %cst_42 {dimension_numbers = #tpu.dot_dimension_numbers<[1], [0], [0], [1], [0, 0, 1, 1], [], []>} : vector<4x64xf32>, vector<64x1xf32>, vector<4x1xf32> -> vector<4x1xf32>
    %80 = arith.addf %74, %79 : vector<4x1xf32>
    %81 = vector.extract_strided_slice %1 {offsets = [3, 1, 0], sizes = [2, 2, 64], strides = [1, 1, 1]} : vector<5x5x64xf32> to vector<2x2x64xf32>
    %82 = vector.shape_cast %81 : vector<2x2x64xf32> to vector<4x64xf32>
    %c13 = arith.constant 13 : index
    %c0_43 = arith.constant 0 : index
    %c0_44 = arith.constant 0 : index
    %83 = vector.load %arg2[%c13, %c0_43, %c0_44] : memref<16x64x1xf32, #tpu.memory_space<vmem>>, vector<1x64x1xf32>
    %84 = vector.shape_cast %83 : vector<1x64x1xf32> to vector<64x1xf32>
    %cst_45 = arith.constant dense<0.000000e+00> : vector<4x1xf32>
    %85 = tpu.matmul %82, %84, %cst_45 {dimension_numbers = #tpu.dot_dimension_numbers<[1], [0], [0], [1], [0, 0, 1, 1], [], []>} : vector<4x64xf32>, vector<64x1xf32>, vector<4x1xf32> -> vector<4x1xf32>
    %86 = arith.addf %80, %85 : vector<4x1xf32>
    %87 = vector.extract_strided_slice %1 {offsets = [3, 2, 0], sizes = [2, 2, 64], strides = [1, 1, 1]} : vector<5x5x64xf32> to vector<2x2x64xf32>
    %88 = vector.shape_cast %87 : vector<2x2x64xf32> to vector<4x64xf32>
    %c14 = arith.constant 14 : index
    %c0_46 = arith.constant 0 : index
    %c0_47 = arith.constant 0 : index
    %89 = vector.load %arg2[%c14, %c0_46, %c0_47] : memref<16x64x1xf32, #tpu.memory_space<vmem>>, vector<1x64x1xf32>
    %90 = vector.shape_cast %89 : vector<1x64x1xf32> to vector<64x1xf32>
    %cst_48 = arith.constant dense<0.000000e+00> : vector<4x1xf32>
    %91 = tpu.matmul %88, %90, %cst_48 {dimension_numbers = #tpu.dot_dimension_numbers<[1], [0], [0], [1], [0, 0, 1, 1], [], []>} : vector<4x64xf32>, vector<64x1xf32>, vector<4x1xf32> -> vector<4x1xf32>
    %92 = arith.addf %86, %91 : vector<4x1xf32>
    %93 = vector.extract_strided_slice %1 {offsets = [3, 3, 0], sizes = [2, 2, 64], strides = [1, 1, 1]} : vector<5x5x64xf32> to vector<2x2x64xf32>
    %94 = vector.shape_cast %93 : vector<2x2x64xf32> to vector<4x64xf32>
    %c15 = arith.constant 15 : index
    %c0_49 = arith.constant 0 : index
    %c0_50 = arith.constant 0 : index
    %95 = vector.load %arg2[%c15, %c0_49, %c0_50] : memref<16x64x1xf32, #tpu.memory_space<vmem>>, vector<1x64x1xf32>
    %96 = vector.shape_cast %95 : vector<1x64x1xf32> to vector<64x1xf32>
    %cst_51 = arith.constant dense<0.000000e+00> : vector<4x1xf32>
    %97 = tpu.matmul %94, %96, %cst_51 {dimension_numbers = #tpu.dot_dimension_numbers<[1], [0], [0], [1], [0, 0, 1, 1], [], []>} : vector<4x64xf32>, vector<64x1xf32>, vector<4x1xf32> -> vector<4x1xf32>
    %98 = arith.addf %92, %97 : vector<4x1xf32>
    %c0_52 = arith.constant 0 : index
    %c0_53 = arith.constant 0 : index
    %99 = vector.load %arg3[%c0_52, %c0_53] : memref<1x1xf32, #tpu.memory_space<vmem>>, vector<1x1xf32>
    %100 = vector.broadcast %99 : vector<1x1xf32> to vector<4x1xf32>
    %101 = arith.mulf %98, %100 : vector<4x1xf32>
    %c0_54 = arith.constant 0 : index
    %c0_55 = arith.constant 0 : index
    %102 = vector.load %arg4[%c0_54, %c0_55] : memref<1x1xf32, #tpu.memory_space<vmem>>, vector<1x1xf32>
    %103 = vector.broadcast %102 : vector<1x1xf32> to vector<4x1xf32>
    %104 = arith.addf %101, %103 : vector<4x1xf32>
    %105 = vector.shape_cast %104 : vector<4x1xf32> to vector<2x2x1xf32>
    %c0_56 = arith.constant 0 : index
    %c0_57 = arith.constant 0 : index
    %c0_58 = arith.constant 0 : index
    %c0_59 = arith.constant 0 : index
    %106 = vector.load %arg5[%c0_56, %c0_57, %c0_58, %c0_59] : memref<1x2x2x1xf32, #tpu.memory_space<vmem>>, vector<1x2x2x1xf32>
    %107 = vector.shape_cast %106 : vector<1x2x2x1xf32> to vector<2x2x1xf32>
    %108 = vector.shape_cast %105 : vector<2x2x1xf32> to vector<1x2x2x1xf32>
    tpu.vector_store %arg5[%c0_56, %c0_57, %c0_58, %c0_59], %108 {strides = array<i32>} : memref<1x2x2x1xf32, #tpu.memory_space<vmem>>, vector<1x2x2x1xf32>,
    return
  }
  func.func @transform_0(%arg0: i32) -> (i32, i32, i32, i32) {
    %c0_i32 = arith.constant 0 : i32
    %c0_i32_0 = arith.constant 0 : i32
    %c0_i32_1 = arith.constant 0 : i32
    %c0_i32_2 = arith.constant 0 : i32
    return %arg0, %c0_i32, %c0_i32_0, %c0_i32_1 : i32, i32, i32, i32
  }
  func.func @transform_1(%arg0: i32) -> (i32, i32, i32) {
    %c0_i32 = arith.constant 0 : i32
    %c0_i32_0 = arith.constant 0 : i32
    %c0_i32_1 = arith.constant 0 : i32
    %c0_i32_2 = arith.constant 0 : i32
    return %c0_i32, %c0_i32_0, %c0_i32_1 : i32, i32, i32
  }
  func.func @transform_2(%arg0: i32) -> (i32, i32) {
    %c0_i32 = arith.constant 0 : i32
    %c0_i32_0 = arith.constant 0 : i32
    %c0_i32_1 = arith.constant 0 : i32
    return %c0_i32, %c0_i32_0 : i32, i32
  }
  func.func @transform_3(%arg0: i32) -> (i32, i32) {
    %c0_i32 = arith.constant 0 : i32
    %c0_i32_0 = arith.constant 0 : i32
    %c0_i32_1 = arith.constant 0 : i32
    return %c0_i32, %c0_i32_0 : i32, i32
  }
  func.func @transform_4(%arg0: i32) -> (i32, i32, i32, i32) {
    %c0_i32 = arith.constant 0 : i32
    %c0_i32_0 = arith.constant 0 : i32
    %c0_i32_1 = arith.constant 0 : i32
    %c0_i32_2 = arith.constant 0 : i32
    return %arg0, %c0_i32, %c0_i32_0, %c0_i32_1 : i32, i32, i32, i32
  }
}

</mosaic_0001>

<bundles_post_ra>
// kernel: _lambda_.5
= control target key start
LH: loop header
LB: loop body
LE: loop exit
PB: predicated region body
PF: predicated region fallthrough
CT: control target
= control target key end

     0   :  { %s2432_s15 = smov 0   ;;  %s3137_s0 = inlined_call_operand.vmem [shape: f32[2,17,17,12], index: 0, kind: input, shape index: {}]   ;;  %s3138_s1 = inlined_call_operand.vmem [shape: f32[4,12,8], index: 1, kind: input, shape index: {}]   ;;  %s3139_s2 = inlined_call_operand.vmem [shape: f32[1,8], index: 2, kind: input, shape index: {}]   ;;  %s3140_s3 = inlined_call_operand.vmem [shape: f32[1,8], index: 3, kind: input, shape index: {}]   ;;  %s3141_s4 = inlined_call_operand.vmem [shape: f32[2,16,16,8], index: 4, kind: output, shape index: {}]  }
   0x1 LB: > { %s1773_s16 = sadd.s32 4294967295, %s2404_s15   ;;  %p1777_p0 = scmp.ge.s32.totalorder %s2404_s15, 1  ;;  %s2404_s15 = sphi %s2432_s15, %s14_s15  }
   0x2   : > { %p162_p1 = scmp.lt.s32.totalorder %s2404_s15, 3 }
   0x4   : > { %p163_p2 = pnand %p1777_p0, %p162_p1 }
   0x6   : > { %166 = sbr.rel (%p163_p2) target bundleno = 373 (0x175), region = 36 }
   0xd   : > { %vm448_vm0 = vcmask 1043456   ;;  %v1849_v0 = vld [vmem:[%s3138_s1 + $0x20] sm:$0xff]  ;;  %v1850_v1 = vld [vmem:[%s3138_s1 + $0x28] sm:$0xf]  ;;  %v1781_v2 = vld [vmem:[%s3138_s1 + $0x10] sm:$0xff]  ;;  %vm2406_vm1 = vmmov 1  }
   0xe   : > { %vm2449_vm2 = vmpackc.low %vm448_vm0, %vm2406_vm1  ;;  %v2280_v4 = vpack.c.bf16 %v1850_v1, %v1849_v0  ;;  %v1782_v5 = vld [vmem:[%s3138_s1 + $0x18] sm:$0xf]  ;;  %p188_p3 = scmp.lt.s32.totalorder %s1773_s16, 1  ;;  %v249_v6 = vld [vmem:[%s3138_s1] sm:$0xff]  ;;  %vm383_vm3 = vcmask 97280   ;;  %vm299_vm4 = vcmask 1046528  }
   0xf   : > { %v2268_v7 = vpack.c.bf16 %v1782_v5, %v1781_v2  ;;  %v250_v8 = vld [vmem:[%s3138_s1 + $0x8] sm:$0xf]  ;;  %v1884_v9 = vld [vmem:[%s3138_s1 + $0x30] sm:$0xff]  ;;  %v1885_v10 = vld [vmem:[%s3138_s1 + $0x38] sm:$0xf]  ;;  %vm1685_vm6 = vcmask 64512  }
  0x10   : > { %2282 = vmatprep.subr.msk.bf16.mxu0 %vm2449_vm2, %v2280_v4  ;;  %s3167_s16 = smov (!%p188_p3, %s1773_s16), 1  ;;  %v2274_v11 = vpack.c.bf16 %v250_v8, %v249_v6  ;;  %v2286_v12 = vpack.c.bf16 %v1885_v10, %v1884_v9 }
  0x11   : > { %2285 = vmatpush3.bf16.msk.msra.mxu0 %vm2449_vm2, %v2280_v4  ;;  %2270 = vmatprep.subr.msk.bf16.mxu1 %vm2449_vm2, %v2268_v7  ;;  %s2388_s7 = smul.u32 408, %s3167_s16  ;;  %s1923_s17 = sshll.u32 %s3167_s16, 8 }
  0x12   : > { %2273 = vmatpush3.bf16.msk.msra.mxu1 %vm2449_vm2, %v2268_v7  ;;  %2288 = vmatprep.subr.msk.bf16.mxu0 %vm2449_vm2, %v2286_v12  ;;  %s3008_s20 = scalar_lea.vmem %s3141_s4, %s1923_s17 }
  0x13   : > { %2276 = vmatprep.subr.msk.bf16.mxu1 %vm2449_vm2, %v2274_v11  ;;  %s2486_s10 = scalar_lea.vmem %s3137_s0, %s2388_s7 }
  0x14   : > { %v2489_v13 = vld [vmem:[%s2486_s10 + $0x18] sm:$0xff]  ;;  %v2492_v14 = vld [vmem:[%s2486_s10 + $0x20] sm:$0xff]  ;;  %v2502_v18 = vld [vmem:[%s2486_s10 + $0x8] sm:$0xff] }
  0x15   : > { %v2495_v15 = vld [vmem:[%s2486_s10] sm:$0xff]  ;;  %v305_v16 = vrot.slane %v2489_v13, 1  ;;  %2168 = vmatprep.mubr.msk.f32.mxu0 %vm383_vm3, %v2489_v13  ;;  %v306_v17 = vrot.slane %v2492_v14, 1  ;;  %v200_v20 = vld [vmem:[%s2486_s10 + $0x10] sm:$0x1]  ;;  %v301_v21 = vrot.slane %v2502_v18, 1 }
  0x16   : > { %v300_v19 = vrot.slane %v2495_v15, 1  ;;  %2169 = vmatmul.mubr.msk.f32.vlgmr.msra.gmra.mrb[0].mxu0 %vm383_vm3, %v2492_v14  ;;  %v303_v22 = vrot.slane %v200_v20, 1  ;;  %v2510_v23 = vld [vmem:[%s2486_s10 + $0x30] sm:$0xff]  ;;  %v203_v24 = vld [vmem:[%s2486_s10 + $0x28] sm:$0x1]  ;;  %v2519_v26 = vld [vmem:[%s2486_s10 + $0x38] sm:$0xff] }
  0x17   : > { %v310_v25 = vrot.slane %v2510_v23, 1  ;;  %2171 = vmatprep.mubr.msk.f32.mxu0 %vm383_vm3, %v2510_v23  ;;  %2291 = vmatpush3.bf16.msk.msra.mxu0 %vm2449_vm2, %v2286_v12  ;;  %v308_v27 = vrot.slane %v203_v24, 1  ;;  %v311_v30 = vrot.slane %v2519_v26, 1  ;;  %v2525_v31 = vsel %vm299_vm4, %v305_v16, %v306_v17  ;;  %v206_v32 = vld [vmem:[%s2486_s10 + $0x40] sm:$0x1]  ;;  %v2530_v33 = vld [vmem:[%s2486_s10 + $0x48] sm:$0xff] }
  0x18   : > { %v302_v28 = vsel %vm299_vm4, %v300_v19, %v301_v21  ;;  %v304_v29 = vsel %vm299_vm4, %v301_v21, %v303_v22  ;;  %v2543_v35 = vld [vmem:[%s2486_s10 + $0x50] sm:$0xff]  ;;  %v313_v36 = vrot.slane %v206_v32, 1  ;;  %v315_v37 = vrot.slane %v2530_v33, 1  ;;  %v2553_v40 = vld [vmem:[%s2486_s10 + $0x60] sm:$0xff]  ;;  %v209_v41 = vld [vmem:[%s2486_s10 + $0x58] sm:$0x1] }
  0x19   : > { %2064 = vmatprep.mubr.msk.f32.mxu1 %vm383_vm3, %v302_v28  ;;  %v2540_v34 = vsel %vm299_vm4, %v306_v17, %v308_v27  ;;  %v316_v38 = vrot.slane %v2543_v35, 1  ;;  %v2550_v39 = vsel %vm299_vm4, %v310_v25, %v311_v30  ;;  %v2568_v43 = vld [vmem:[%s2486_s10 + $0x68] sm:$0xff]  ;;  %v318_v44 = vrot.slane %v209_v41, 1  ;;  %v2576_v48 = vld [vmem:[%s2486_s10 + $0x78] sm:$0xff]  ;;  %v212_v49 = vld [vmem:[%s2486_s10 + $0x70] sm:$0x1] }
  0x1a   : > { %2065 = vmatmul.mubr.msk.f32.vlgmr.msra.gmra.mrb[0].mxu1 %vm383_vm3, %v304_v29  ;;  %2172 = vmatmul.mubr.msk.f32.gmra.mrb[2].mxu0 %vm383_vm3, %v2519_v26  ;;  %v2563_v42 = vsel %vm299_vm4, %v311_v30, %v313_v36  ;;  %v320_v45 = vrot.slane %v2553_v40, 1  ;;  %v321_v46 = vrot.slane %v2568_v43, 1  ;;  %v2591_v51 = vld [vmem:[%s2486_s10 + $0x80] sm:$0xff]  ;;  %v323_v52 = vrot.slane %v212_v49, 1  ;;  %v2599_v56 = vld [vmem:[%s2486_s10 + $0x90] sm:$0xff]  ;;  %v2614_v59 = vld [vmem:[%s2486_s10 + $0x98] sm:$0xff] }
  0x1b   : > { %2279 = vmatpush3.bf16.msk.msra.mxu1 %vm2449_vm2, %v2274_v11  ;;  %2067 = vmatprep.mubr.msk.f32.mxu1 %vm383_vm3, %v2525_v31  ;;  %v2573_v47 = vsel %vm299_vm4, %v315_v37, %v316_v38  ;;  %v2586_v50 = vsel %vm299_vm4, %v316_v38, %v318_v44  ;;  %v325_v53 = vrot.slane %v2576_v48, 1  ;;  %v326_v54 = vrot.slane %v2591_v51, 1  ;;  %v215_v57 = vld [vmem:[%s2486_s10 + $0x88] sm:$0x1]  ;;  %v248_v61 = vld [vmem:[%s2486_s10 + $0x190] sm:$0x1] }
  0x1c   : > { %2174 = vmatprep.mubr.msk.f32.mxu0 %vm383_vm3, %v2530_v33  ;;  %v2596_v55 = vsel %vm299_vm4, %v320_v45, %v321_v46  ;;  %v2609_v58 = vsel %vm299_vm4, %v321_v46, %v323_v52  ;;  %v328_v60 = vrot.slane %v215_v57, 1  ;;  %v330_v62 = vrot.slane %v2599_v56, 1  ;;  %v2623_v1 = vld [vmem:[%s2486_s10 + $0xa8] sm:$0xff]  ;;  %v218_v2 = vld [vmem:[%s2486_s10 + $0xa0] sm:$0x1]  ;;  %v2642_v7 = vld [vmem:[%s2486_s10 + $0xb0] sm:$0xff] }
  0x1d   : > { %v331_v63 = vrot.slane %v2614_v59, 1  ;;  %v2620_v0 = vsel %vm299_vm4, %v325_v53, %v326_v54  ;;  %v2627_v3 = vld [vmem:[%s2486_s10 + $0x188] sm:$0xff]  ;;  %v1242_v5 = vrot.slane %v248_v61, 1  ;;  %v333_v8 = vrot.slane %v218_v2, 1  ;;  %v2655_v16 = vld [vmem:[%s2486_s10 + $0xc0] sm:$0xff]  ;;  %v2678_v27 = vld [vmem:[%s2486_s10 + $0xd8] sm:$0xff] }
  0x1e   : > { %2068 = vmatmul.mubr.msk.f32.gmra.mrb[2].mxu1 %vm383_vm3, %v2540_v34  ;;  %2175 = vmatmul.mubr.msk.f32.gmra.mrb[4].mxu0 %vm383_vm3, %v2543_v35  ;;  %v3142_v4 = vrot.slane %v2627_v3, 1  ;;  %v2637_v6 = vsel %vm299_vm4, %v326_v54, %v328_v60  ;;  %v335_v10 = vrot.slane %v2623_v1, 1  ;;  %v336_v11 = vrot.slane %v2642_v7, 1  ;;  %v221_v17 = vld [vmem:[%s2486_s10 + $0xb8] sm:$0x1]  ;;  %v2670_v20 = vld [vmem:[%s2486_s10 + $0xc8] sm:$0xff] }
  0x1f   : > { %2070 = vmatprep.mubr.msk.f32.mxu1 %vm383_vm3, %v2550_v39  ;;  %2177 = vmatprep.mubr.msk.f32.mxu0 %vm383_vm3, %v2553_v40  ;;  %v2652_v12 = vsel %vm299_vm4, %v330_v62, %v331_v63  ;;  %v2665_v19 = vsel %vm299_vm4, %v331_v63, %v333_v8  ;;  %v338_v21 = vrot.slane %v221_v17, 1  ;;  %v340_v22 = vrot.slane %v2655_v16, 1  ;;  %v224_v28 = vld [vmem:[%s2486_s10 + $0xd0] sm:$0x1]  ;;  %v2693_v30 = vld [vmem:[%s2486_s10 + $0xe0] sm:$0xff]  ;;  %v2716_v46 = vld [vmem:[%s2486_s10 + $0xf8] sm:$0xff] }
  0x20   : > { %v2647_v9 = vsel %vm299_vm4, %v3142_v4, %v1242_v5  ;;  %v341_v24 = vrot.slane %v2670_v20, 1  ;;  %v2675_v25 = vsel %vm299_vm4, %v335_v10, %v336_v11  ;;  %v343_v32 = vrot.slane %v224_v28, 1  ;;  %v2701_v41 = vld [vmem:[%s2486_s10 + $0xf0] sm:$0xff]  ;;  %v227_v44 = vld [vmem:[%s2486_s10 + $0xe8] sm:$0x1]  ;;  %v2747_v10 = vld [vmem:[%s2486_s10 + $0x120] sm:$0xff] }
  0x21   : > { %3151 = vst [vmem:[#allocation2_spill] sm:$0xff] %v2647_v9  ;;  %v2688_v29 = vsel %vm299_vm4, %v336_v11, %v338_v21  ;;  %v345_v36 = vrot.slane %v2678_v27, 1  ;;  %v346_v37 = vrot.slane %v2693_v30, 1  ;;  %v348_v49 = vrot.slane %v227_v44, 1  ;;  %v2724_v57 = vld [vmem:[%s2486_s10 + $0x108] sm:$0xff]  ;;  %v2739_v62 = vld [vmem:[%s2486_s10 + $0x110] sm:$0xff] }
  0x22   : > { %2071 = vmatmul.mubr.msk.f32.gmra.mrb[4].mxu1 %vm383_vm3, %v2563_v42  ;;  %2178 = vmatmul.mubr.msk.f32.gmra.mrb[6].mxu0 %vm383_vm3, %v2568_v43  ;;  %v2698_v38 = vsel %vm299_vm4, %v340_v22, %v341_v24  ;;  %v2711_v45 = vsel %vm299_vm4, %v341_v24, %v343_v32  ;;  %v350_v52 = vrot.slane %v2701_v41, 1  ;;  %v351_v53 = vrot.slane %v2716_v46, 1  ;;  %v230_v60 = vld [vmem:[%s2486_s10 + $0x100] sm:$0x1]  ;;  %3152 = vst [vmem:[#allocation3_spill] sm:$0xff] %v2747_v10  ;;  %v2762_v21 = vld [vmem:[%s2486_s10 + $0x128] sm:$0xff] }
  0x23   : > { %2073 = vmatprep.mubr.msk.f32.mxu1 %vm383_vm3, %v2573_v47  ;;  %2180 = vmatprep.mubr.msk.f32.mxu0 %vm383_vm3, %v2576_v48  ;;  %v2721_v54 = vsel %vm299_vm4, %v345_v36, %v346_v37  ;;  %v2734_v61 = vsel %vm299_vm4, %v346_v37, %v348_v49  ;;  %v353_v63 = vrot.slane %v230_v60, 1  ;;  %v355_v2 = vrot.slane %v2724_v57, 1  ;;  %v233_v11 = vld [vmem:[%s2486_s10 + $0x118] sm:$0x1]  ;;  %3153 = vst [vmem:[#allocation4_spill] sm:$0xff] %v2762_v21  ;;  %v2785_v49 = vld [vmem:[%s2486_s10 + $0x140] sm:$0xff] }
  0x24   : > { %v356_v5 = vrot.slane %v2739_v62, 1  ;;  %v2744_v8 = vsel %vm299_vm4, %v350_v52, %v351_v53  ;;  %v358_v22 = vrot.slane %v233_v11, 1  ;;  %v360_v24 = vrot.slane %v2747_v10, 1  ;;  %v2770_v36 = vld [vmem:[%s2486_s10 + $0x138] sm:$0xff]  ;;  %v236_v37 = vld [vmem:[%s2486_s10 + $0x130] sm:$0x1] }
  0x25   : > { %v2757_v17 = vsel %vm299_vm4, %v351_v53, %v353_v63  ;;  %v361_v28 = vrot.slane %v2762_v21, 1  ;;  %3154 = vst [vmem:[#allocation5_spill] sm:$0xff] %v2770_v36  ;;  %3155 = vst [vmem:[#allocation6_spill] sm:$0xff] %v2785_v49  ;;  %v363_v52 = vrot.slane %v236_v37, 1  ;;  %v365_v53 = vrot.slane %v2770_v36, 1 }
  0x26   : > { %2074 = vmatmul.mubr.msk.f32.gmra.mrb[6].mxu1 %vm383_vm3, %v2586_v50  ;;  %2181 = vmatmul.mubr.msk.f32.gmra.mrb[8].mxu0 %vm383_vm3, %v2591_v51  ;;  %v2767_v32 = vsel %vm299_vm4, %v355_v2, %v356_v5  ;;  %v2780_v44 = vsel %vm299_vm4, %v356_v5, %v358_v22  ;;  %v366_v60 = vrot.slane %v2785_v49, 1  ;;  %v2793_v2 = vld [vmem:[%s2486_s10 + $0x150] sm:$0xff]  ;;  %v239_v11 = vld [vmem:[%s2486_s10 + $0x148] sm:$0x1]  ;;  %v2808_v22 = vld [vmem:[%s2486_s10 + $0x158] sm:$0xff] }
  0x27   : > { %2076 = vmatprep.mubr.msk.f32.mxu1 %vm383_vm3, %v2596_v55  ;;  %2183 = vmatprep.mubr.msk.f32.mxu0 %vm383_vm3, %v2599_v56  ;;  %v2790_v63 = vsel %vm299_vm4, %v360_v24, %v361_v28  ;;  %3156 = vst [vmem:[#allocation7_spill] sm:$0xff] %v2793_v2  ;;  %v2803_v5 = vsel %vm299_vm4, %v361_v28, %v363_v52  ;;  %3157 = vst [vmem:[#allocation8_spill] sm:$0xff] %v2808_v22  ;;  %v368_v24 = vrot.slane %v239_v11, 1  ;;  %v2831_v52 = vld [vmem:[%s2486_s10 + $0x170] sm:$0xff] }
  0x28   : > { %v370_v37 = vrot.slane %v2793_v2, 1  ;;  %v371_v4 = vrot.slane %v2808_v22, 1  ;;  %v2813_v9 = vsel %vm299_vm4, %v365_v53, %v366_v60 }
  0x29   : > { %v2826_v28 = vsel %vm299_vm4, %v366_v60, %v368_v24 }
  0x2a   : > { %2077 = vmatmul.mubr.msk.f32.gmra.mrb[8].mxu1 %vm383_vm3, %v2609_v58  ;;  %2184 = vmatmul.mubr.msk.f32.gmra.mrb[10].mxu0 %vm383_vm3, %v2614_v59 }
  0x2b   : > { %2079 = vmatprep.mubr.msk.f32.mxu1 %vm383_vm3, %v2620_v0  ;;  %2186 = vmatprep.mubr.msk.f32.mxu0 %vm383_vm3, %v2623_v1 }
  0x2e   : > { %2080 = vmatmul.mubr.msk.f32.gmra.mrb[10].mxu1 %vm383_vm3, %v2637_v6  ;;  %2187 = vmatmul.mubr.msk.f32.gmra.mrb[12].mxu0 %vm383_vm3, %v2642_v7 }
  0x2f   : > { %2082 = vmatprep.mubr.msk.f32.mxu1 %vm383_vm3, %v2652_v12  ;;  %2189 = vmatprep.mubr.msk.f32.mxu0 %vm383_vm3, %v2655_v16 }
  0x32   : > { %2083 = vmatmul.mubr.msk.f32.gmra.mrb[12].mxu1 %vm383_vm3, %v2665_v19  ;;  %2190 = vmatmul.mubr.msk.f32.gmra.mrb[14].mxu0 %vm383_vm3, %v2670_v20 }
  0x33   : > { %2085 = vmatprep.mubr.msk.f32.mxu1 %vm383_vm3, %v2675_v25  ;;  %2192 = vmatprep.mubr.msk.f32.mxu0 %vm383_vm3, %v2678_v27 }
  0x36   : > { %2086 = vmatmul.mubr.msk.f32.gmra.mrb[14].mxu1 %vm383_vm3, %v2688_v29  ;;  %2193 = vmatmul.mubr.msk.f32.gmra.mrb[16].mxu0 %vm383_vm3, %v2693_v30 }
  0x37   : > { %2088 = vmatprep.mubr.msk.f32.mxu1 %vm383_vm3, %v2698_v38  ;;  %2195 = vmatprep.mubr.msk.f32.mxu0 %vm383_vm3, %v2701_v41 }
  0x3a   : > { %2089 = vmatmul.mubr.msk.f32.gmra.mrb[16].mxu1 %vm383_vm3, %v2711_v45  ;;  %2196 = vmatmul.mubr.msk.f32.gmra.mrb[18].mxu0 %vm383_vm3, %v2716_v46 }
  0x3b   : > { %2091 = vmatprep.mubr.msk.f32.mxu1 %vm383_vm3, %v2721_v54  ;;  %2198 = vmatprep.mubr.msk.f32.mxu0 %vm383_vm3, %v2724_v57 }
  0x3e   : > { %2092 = vmatmul.mubr.msk.f32.gmra.mrb[18].mxu1 %vm383_vm3, %v2734_v61  ;;  %2199 = vmatmul.mubr.msk.f32.gmra.mrb[20].mxu0 %vm383_vm3, %v2739_v62 }
  0x3f   : > { %2094 = vmatprep.mubr.msk.f32.mxu1 %vm383_vm3, %v2744_v8  ;;  %2201 = vmatprep.mubr.msk.f32.mxu0 %vm383_vm3, %v2747_v10  ;;  %v245_v10 = vld [vmem:[%s2486_s10 + $0x178] sm:$0x1] }
  0x40   : > { %v378_v60 = vrot.slane %v245_v10, 1 }
  0x42   : > { %2095 = vmatmul.mubr.msk.f32.gmra.mrb[20].mxu1 %vm383_vm3, %v2757_v17  ;;  %2202 = vmatmul.mubr.msk.f32.gmra.mrb[22].mxu0 %vm383_vm3, %v2762_v21  ;;  %v2836_v21 = vsel %vm299_vm4, %v370_v37, %v371_v4 }
  0x43   : > { %2097 = vmatprep.mubr.msk.f32.mxu1 %vm383_vm3, %v2767_v32  ;;  %2204 = vmatprep.mubr.msk.f32.mxu0 %vm383_vm3, %v2770_v36  ;;  %v242_v36 = vld [vmem:[%s2486_s10 + $0x160] sm:$0x1] }
  0x44   : > { %v373_v53 = vrot.slane %v242_v36, 1 }
  0x46   : > { %2098 = vmatmul.mubr.msk.f32.gmra.mrb[22].mxu1 %vm383_vm3, %v2780_v44  ;;  %2205 = vmatmul.mubr.msk.f32.gmra.mrb[24].mxu0 %vm383_vm3, %v2785_v49  ;;  %v2816_v49 = vld [vmem:[%s2486_s10 + $0x168] sm:$0xff]  ;;  %v2849_v36 = vsel %vm299_vm4, %v371_v4, %v373_v53 }
  0x47   : > { %2100 = vmatprep.mubr.msk.f32.mxu1 %vm383_vm3, %v2790_v63  ;;  %2207 = vmatprep.mubr.msk.f32.mxu0 %vm383_vm3, %v2793_v2  ;;  %v375_v11 = vrot.slane %v2816_v49, 1  ;;  %v376_v2 = vrot.slane %v2831_v52, 1 }
  0x49   : > { %v377_v24 = vsel %vm299_vm4, %v375_v11, %v376_v2  ;;  %v379_v37 = vsel %vm299_vm4, %v376_v2, %v378_v60 }
  0x4a   : > { %2101 = vmatmul.mubr.msk.f32.gmra.mrb[24].mxu1 %vm383_vm3, %v2803_v5  ;;  %2208 = vmatmul.mubr.msk.f32.gmra.mrb[26].mxu0 %vm383_vm3, %v2808_v22  ;;  %v2839_v22 = vld [vmem:[%s2486_s10 + $0x180] sm:$0xff] }
  0x4b   : > { %2103 = vmatprep.mubr.msk.f32.mxu1 %vm383_vm3, %v2813_v9  ;;  %2210 = vmatprep.mubr.msk.f32.mxu0 %vm383_vm3, %v2816_v49 }
  0x4e   : > { %2104 = vmatmul.mubr.msk.f32.gmra.mrb[26].mxu1 %vm383_vm3, %v2826_v28  ;;  %2211 = vmatmul.mubr.msk.f32.gmra.mrb[28].mxu0 %vm383_vm3, %v2831_v52 }
  0x4f   : > { %2106 = vmatprep.mubr.msk.f32.mxu1 %vm383_vm3, %v2836_v21  ;;  %2213 = vmatprep.mubr.msk.f32.mxu0 %vm383_vm3, %v2839_v22 }
  0x52   : > { %2107 = vmatmul.mubr.msk.f32.gmra.mrb[28].mxu1 %vm383_vm3, %v2849_v36  ;;  %2214 = vmatmul.mubr.msk.f32.gmra.mrb[30].mxu0 %vm383_vm3, %v2627_v3 }
  0x53   : > { %2109 = vmatprep.mubr.msk.f32.mxu1 %vm383_vm3, %v377_v24  ;;  %2220 = vmatprep.mubr.msk.f32.mxu0 %vm383_vm3, %v2525_v31  ;;  %v3162_v31 = vld [vmem:[#allocation6_spill] sm:$0xff] }
  0x56   : > { %2110 = vmatmul.mubr.msk.f32.gmra.mrb[30].mxu1 %vm383_vm3, %v379_v37  ;;  %2221 = vmatmul.mubr.msk.f32.vlgmr.msra.gmra.mrb[0].mxu0 %vm383_vm3, %v2540_v34  ;;  %v3164_v34 = vld [vmem:[#allocation8_spill] sm:$0xff] }
  0x57   : > { %2116 = vmatprep.mubr.msk.f32.mxu1 %vm383_vm3, %v2495_v15  ;;  %2223 = vmatprep.mubr.msk.f32.mxu0 %vm383_vm3, %v2550_v39  ;;  %v3159_v15 = vld [vmem:[#allocation4_spill] sm:$0xff] }
  0x5a   : > { %2117 = vmatmul.mubr.msk.f32.vlgmr.msra.gmra.mrb[0].mxu1 %vm383_vm3, %v2502_v18  ;;  %2224 = vmatmul.mubr.msk.f32.gmra.mrb[2].mxu0 %vm383_vm3, %v2563_v42  ;;  %v3160_v18 = vld [vmem:[#allocation5_spill] sm:$0xff] }
  0x5b   : > { %2119 = vmatprep.mubr.msk.f32.mxu1 %vm383_vm3, %v2489_v13  ;;  %2226 = vmatprep.mubr.msk.f32.mxu0 %vm383_vm3, %v2573_v47  ;;  %v3158_v13 = vld [vmem:[#allocation3_spill] sm:$0xff] }
  0x5e   : > { %2120 = vmatmul.mubr.msk.f32.gmra.mrb[2].mxu1 %vm383_vm3, %v2492_v14  ;;  %2227 = vmatmul.mubr.msk.f32.gmra.mrb[4].mxu0 %vm383_vm3, %v2586_v50  ;;  %v1239_v14 = vrot.slane %v2839_v22, 1 }
  0x5f   : > { %2122 = vmatprep.mubr.msk.f32.mxu1 %vm383_vm3, %v2510_v23  ;;  %2229 = vmatprep.mubr.msk.f32.mxu0 %vm383_vm3, %v2596_v55  ;;  %v3161_v23 = vrot.slane %v2627_v3, 1  ;;  %v2998_v55 = vld [vmem:[%s3140_s3] ss:$0 sm:$0xff] }
  0x62   : > { %2123 = vmatmul.mubr.msk.f32.gmra.mrb[4].mxu1 %vm383_vm3, %v2519_v26  ;;  %2230 = vmatmul.mubr.msk.f32.gmra.mrb[6].mxu0 %vm383_vm3, %v2609_v58  ;;  %v1241_v26 = vsel %vm299_vm4, %v1239_v14, %v3161_v23 }
  0x63   : > { %2125 = vmatprep.mubr.msk.f32.mxu1 %vm383_vm3, %v2530_v33  ;;  %2232 = vmatprep.mubr.msk.f32.mxu0 %vm383_vm3, %v2620_v0  ;;  %v3163_v33 = vld [vmem:[#allocation7_spill] sm:$0xff] }
  0x66   : > { %2126 = vmatmul.mubr.msk.f32.gmra.mrb[6].mxu1 %vm383_vm3, %v2543_v35  ;;  %2233 = vmatmul.mubr.msk.f32.gmra.mrb[8].mxu0 %vm383_vm3, %v2637_v6  ;;  %v3165_v35 = vld [vmem:[#allocation2_spill] sm:$0xff] }
  0x67   : > { %2128 = vmatprep.mubr.msk.f32.mxu1 %vm383_vm3, %v2553_v40  ;;  %2235 = vmatprep.mubr.msk.f32.mxu0 %vm383_vm3, %v2652_v12 }
  0x6a   : > { %2129 = vmatmul.mubr.msk.f32.gmra.mrb[8].mxu1 %vm383_vm3, %v2568_v43  ;;  %2236 = vmatmul.mubr.msk.f32.gmra.mrb[10].mxu0 %vm383_vm3, %v2665_v19  ;;  %v2993_v43 = vld [vmem:[%s3139_s2] ss:$0 sm:$0xff] }
  0x6b   : > { %2131 = vmatprep.mubr.msk.f32.mxu1 %vm383_vm3, %v2576_v48  ;;  %2238 = vmatprep.mubr.msk.f32.mxu0 %vm383_vm3, %v2675_v25 }
  0x6e   : > { %2132 = vmatmul.mubr.msk.f32.gmra.mrb[10].mxu1 %vm383_vm3, %v2591_v51  ;;  %2239 = vmatmul.mubr.msk.f32.gmra.mrb[12].mxu0 %vm383_vm3, %v2688_v29 }
  0x6f   : > { %2134 = vmatprep.mubr.msk.f32.mxu1 %vm383_vm3, %v2599_v56  ;;  %2241 = vmatprep.mubr.msk.f32.mxu0 %vm383_vm3, %v2698_v38 }
  0x72   : > { %2135 = vmatmul.mubr.msk.f32.gmra.mrb[12].mxu1 %vm383_vm3, %v2614_v59  ;;  %2242 = vmatmul.mubr.msk.f32.gmra.mrb[14].mxu0 %vm383_vm3, %v2711_v45 }
  0x73   : > { %2137 = vmatprep.mubr.msk.f32.mxu1 %vm383_vm3, %v2623_v1  ;;  %2244 = vmatprep.mubr.msk.f32.mxu0 %vm383_vm3, %v2721_v54 }
  0x76   : > { %2138 = vmatmul.mubr.msk.f32.gmra.mrb[14].mxu1 %vm383_vm3, %v2642_v7  ;;  %2245 = vmatmul.mubr.msk.f32.gmra.mrb[16].mxu0 %vm383_vm3, %v2734_v61 }
  0x77   : > { %2140 = vmatprep.mubr.msk.f32.mxu1 %vm383_vm3, %v2655_v16  ;;  %2247 = vmatprep.mubr.msk.f32.mxu0 %vm383_vm3, %v2744_v8 }
  0x7a   : > { %2141 = vmatmul.mubr.msk.f32.gmra.mrb[16].mxu1 %vm383_vm3, %v2670_v20  ;;  %2248 = vmatmul.mubr.msk.f32.gmra.mrb[18].mxu0 %vm383_vm3, %v2757_v17 }
  0x7b   : > { %2143 = vmatprep.mubr.msk.f32.mxu1 %vm383_vm3, %v2678_v27  ;;  %2250 = vmatprep.mubr.msk.f32.mxu0 %vm383_vm3, %v2767_v32 }
  0x7e   : > { %2144 = vmatmul.mubr.msk.f32.gmra.mrb[18].mxu1 %vm383_vm3, %v2693_v30  ;;  %2251 = vmatmul.mubr.msk.f32.gmra.mrb[20].mxu0 %vm383_vm3, %v2780_v44 }
  0x7f   : > { %2146 = vmatprep.mubr.msk.f32.mxu1 %vm383_vm3, %v2701_v41  ;;  %2253 = vmatprep.mubr.msk.f32.mxu0 %vm383_vm3, %v2790_v63 }
  0x82   : > { %2147 = vmatmul.mubr.msk.f32.gmra.mrb[20].mxu1 %vm383_vm3, %v2716_v46  ;;  %2254 = vmatmul.mubr.msk.f32.gmra.mrb[22].mxu0 %vm383_vm3, %v2803_v5 }
  0x83   : > { %2149 = vmatprep.mubr.msk.f32.mxu1 %vm383_vm3, %v2724_v57  ;;  %2256 = vmatprep.mubr.msk.f32.mxu0 %vm383_vm3, %v2813_v9 }
  0x86   : > { %2150 = vmatmul.mubr.msk.f32.gmra.mrb[22].mxu1 %vm383_vm3, %v2739_v62  ;;  %2257 = vmatmul.mubr.msk.f32.gmra.mrb[24].mxu0 %vm383_vm3, %v2826_v28 }
  0x87   : > { %2152 = vmatprep.mubr.msk.f32.mxu1 %vm383_vm3, %v3158_v13  ;;  %2259 = vmatprep.mubr.msk.f32.mxu0 %vm383_vm3, %v2836_v21 }
  0x8a   : > { %2153 = vmatmul.mubr.msk.f32.gmra.mrb[24].mxu1 %vm383_vm3, %v3159_v15  ;;  %2260 = vmatmul.mubr.msk.f32.gmra.mrb[26].mxu0 %vm383_vm3, %v2849_v36 }
  0x8b   : > { %2155 = vmatprep.mubr.msk.f32.mxu1 %vm383_vm3, %v3160_v18  ;;  %2262 = vmatprep.mubr.msk.f32.mxu0 %vm383_vm3, %v377_v24 }
  0x8e   : > { %2156 = vmatmul.mubr.msk.f32.gmra.mrb[26].mxu1 %vm383_vm3, %v3162_v31  ;;  %2263 = vmatmul.mubr.msk.f32.gmra.mrb[28].mxu0 %vm383_vm3, %v379_v37 }
  0x8f   : > { %2158 = vmatprep.mubr.msk.f32.mxu1 %vm383_vm3, %v3163_v33  ;;  %2265 = vmatprep.mubr.msk.f32.mxu0 %vm383_vm3, %v1241_v26 }
  0x92   : > { %2159 = vmatmul.mubr.msk.f32.gmra.mrb[28].mxu1 %vm383_vm3, %v3164_v34  ;;  %2266 = vmatmul.mubr.msk.f32.gmra.mrb[30].mxu0 %vm383_vm3, %v3165_v35 }
  0x93   : > { %2161 = vmatprep.mubr.msk.f32.mxu1 %vm383_vm3, %v2816_v49 }
  0x96   : > { %2162 = vmatmul.mubr.msk.f32.gmra.mrb[30].mxu1 %vm383_vm3, %v2831_v52 }
 0x129   : > { %v2222_v39 = vpop.f32.mrb[0].mxu0 }
 0x12a   : > { %v1320_v40 = vpop.f32.mrb[1].mxu0 }
 0x12d   : > { %v2118_v42 = vpop.f32.mrb[0].mxu1  ;;  %v2225_v47 = vpop.f32.mrb[2].mxu0 }
 0x12e   : > { %v2292_v48 = vadd.f32 %v2222_v39, %v2118_v42  ;;  %v810_v50 = vpop.f32.mrb[1].mxu1  ;;  %v1330_v51 = vpop.f32.mrb[3].mxu0 }
 0x12f   : > { %v2293_v56 = vadd.f32 %v1320_v40, %v810_v50 }
 0x130   : > { %v1519_v58 = vmul.f32 %v2292_v48, %v2993_v43 }
 0x131   : > { %v1518_v59 = vmul.f32 %v2293_v56, %v2993_v43  ;;  %v2121_v0 = vpop.f32.mrb[2].mxu1  ;;  %v2228_v1 = vpop.f32.mrb[4].mxu0 }
 0x132   : > { %v1558_v3 = vadd.f32 %v2998_v55, %v1519_v58  ;;  %v2294_v4 = vadd.f32 %v2225_v47, %v2121_v0  ;;  %v820_v6 = vpop.f32.mrb[3].mxu1  ;;  %v1340_v7 = vpop.f32.mrb[5].mxu0 }
 0x133   : > { %v1557_v9 = vadd.f32 %v2998_v55, %v1518_v59  ;;  %v2295_v12 = vadd.f32 %v1330_v51, %v820_v6 }
 0x134   : > { %vm1590_vm5 = vcmp.ge.f32.partialorder %v1558_v3, 0.0  ;;  %v1622_v16 = vmul.f32 0.2, %v1558_v3  ;;  %v1521_v19 = vmul.f32 %v2294_v4, %v2993_v43 }
 0x135   : > { %vm1589_vm7 = vcmp.ge.f32.partialorder %v1557_v9, 0.0  ;;  %v1621_v20 = vmul.f32 0.2, %v1557_v9  ;;  %v1520_v25 = vmul.f32 %v2295_v12, %v2993_v43  ;;  %v2124_v27 = vpop.f32.mrb[4].mxu1  ;;  %v2231_v29 = vpop.f32.mrb[6].mxu0 }
 0x136   : > { %v1654_v30 = vsel %vm1590_vm5, %v1558_v3, %v1622_v16  ;;  %v1560_v38 = vadd.f32 %v2998_v55, %v1521_v19  ;;  %v2296_v41 = vadd.f32 %v2228_v1, %v2124_v27  ;;  %v830_v45 = vpop.f32.mrb[5].mxu1  ;;  %v1350_v46 = vpop.f32.mrb[7].mxu0 }
 0x137   : > { %1687 = vst.msk [vmem:[%s3008_s20 + $0x8] sm:$0xff] %vm1685_vm6, %v1654_v30  ;;  %v1653_v54 = vsel %vm1589_vm7, %v1557_v9, %v1621_v20  ;;  %v1559_v57 = vadd.f32 %v2998_v55, %v1520_v25  ;;  %v2297_v61 = vadd.f32 %v1340_v7, %v830_v45 }
 0x138   : > { %1686 = vst.msk [vmem:[%s3008_s20] sm:$0xff] %vm1685_vm6, %v1653_v54  ;;  %vm1592_vm8 = vcmp.ge.f32.partialorder %v1560_v38, 0.0  ;;  %v1624_v62 = vmul.f32 0.2, %v1560_v38  ;;  %v1523_v8 = vmul.f32 %v2296_v41, %v2993_v43 }
 0x139   : > { %vm1591_vm9 = vcmp.ge.f32.partialorder %v1559_v57, 0.0  ;;  %v1623_v10 = vmul.f32 0.2, %v1559_v57  ;;  %v1522_v17 = vmul.f32 %v2297_v61, %v2993_v43  ;;  %v2127_v21 = vpop.f32.mrb[6].mxu1  ;;  %v2234_v32 = vpop.f32.mrb[8].mxu0 }
 0x13a   : > { %v1656_v44 = vsel %vm1592_vm8, %v1560_v38, %v1624_v62  ;;  %v1562_v49 = vadd.f32 %v2998_v55, %v1523_v8  ;;  %v2298_v63 = vadd.f32 %v2231_v29, %v2127_v21  ;;  %v840_v2 = vpop.f32.mrb[7].mxu1  ;;  %v1360_v5 = vpop.f32.mrb[9].mxu0 }
 0x13b   : > { %1689 = vst.msk [vmem:[%s3008_s20 + $0x18] sm:$0xff] %vm1685_vm6, %v1656_v44  ;;  %v1655_v22 = vsel %vm1591_vm9, %v1559_v57, %v1623_v10  ;;  %v1561_v28 = vadd.f32 %v2998_v55, %v1522_v17  ;;  %v2299_v52 = vadd.f32 %v1350_v46, %v840_v2 }
 0x13c   : > { %1688 = vst.msk [vmem:[%s3008_s20 + $0x10] sm:$0xff] %vm1685_vm6, %v1655_v22  ;;  %vm1594_vm10 = vcmp.ge.f32.partialorder %v1562_v49, 0.0  ;;  %v1626_v53 = vmul.f32 0.2, %v1562_v49  ;;  %v1525_v11 = vmul.f32 %v2298_v63, %v2993_v43 }
 0x13d   : > { %vm1593_vm11 = vcmp.ge.f32.partialorder %v1561_v28, 0.0  ;;  %v1625_v36 = vmul.f32 0.2, %v1561_v28  ;;  %v1524_v60 = vmul.f32 %v2299_v52, %v2993_v43  ;;  %v2130_v24 = vpop.f32.mrb[8].mxu1  ;;  %v2237_v37 = vpop.f32.mrb[10].mxu0 }
 0x13e   : > { %v1658_v13 = vsel %vm1594_vm10, %v1562_v49, %v1626_v53  ;;  %v1564_v14 = vadd.f32 %v2998_v55, %v1525_v11  ;;  %v2300_v15 = vadd.f32 %v2234_v32, %v2130_v24  ;;  %v850_v18 = vpop.f32.mrb[9].mxu1  ;;  %v1370_v23 = vpop.f32.mrb[11].mxu0 }
 0x13f   : > { %1691 = vst.msk [vmem:[%s3008_s20 + $0x28] sm:$0xff] %vm1685_vm6, %v1658_v13  ;;  %v1657_v26 = vsel %vm1593_vm11, %v1561_v28, %v1625_v36  ;;  %v1563_v31 = vadd.f32 %v2998_v55, %v1524_v60  ;;  %v2301_v33 = vadd.f32 %v1360_v5, %v850_v18 }
 0x140   : > { %1690 = vst.msk [vmem:[%s3008_s20 + $0x20] sm:$0xff] %vm1685_vm6, %v1657_v26  ;;  %vm1596_vm12 = vcmp.ge.f32.partialorder %v1564_v14, 0.0  ;;  %v1628_v34 = vmul.f32 0.2, %v1564_v14  ;;  %v1527_v35 = vmul.f32 %v2300_v15, %v2993_v43 }
 0x141   : > { %vm1595_vm13 = vcmp.ge.f32.partialorder %v1563_v31, 0.0  ;;  %v1627_v39 = vmul.f32 0.2, %v1563_v31  ;;  %v1526_v40 = vmul.f32 %v2301_v33, %v2993_v43  ;;  %v2133_v42 = vpop.f32.mrb[10].mxu1  ;;  %v2240_v47 = vpop.f32.mrb[12].mxu0 }
 0x142   : > { %v1660_v48 = vsel %vm1596_vm12, %v1564_v14, %v1628_v34  ;;  %v1566_v50 = vadd.f32 %v2998_v55, %v1527_v35  ;;  %v2302_v51 = vadd.f32 %v2237_v37, %v2133_v42  ;;  %v860_v56 = vpop.f32.mrb[11].mxu1  ;;  %v1380_v58 = vpop.f32.mrb[13].mxu0 }
 0x143   : > { %1693 = vst.msk [vmem:[%s3008_s20 + $0x38] sm:$0xff] %vm1685_vm6, %v1660_v48  ;;  %v1659_v59 = vsel %vm1595_vm13, %v1563_v31, %v1627_v39  ;;  %v1565_v0 = vadd.f32 %v2998_v55, %v1526_v40  ;;  %v2303_v1 = vadd.f32 %v1370_v23, %v860_v56 }
 0x144   : > { %1692 = vst.msk [vmem:[%s3008_s20 + $0x30] sm:$0xff] %vm1685_vm6, %v1659_v59  ;;  %vm1598_vm14 = vcmp.ge.f32.partialorder %v1566_v50, 0.0  ;;  %v1630_v3 = vmul.f32 0.2, %v1566_v50  ;;  %v1529_v4 = vmul.f32 %v2302_v51, %v2993_v43 }
 0x145   : > { %vm1597_vm15 = vcmp.ge.f32.partialorder %v1565_v0, 0.0  ;;  %v1629_v6 = vmul.f32 0.2, %v1565_v0  ;;  %v1528_v7 = vmul.f32 %v2303_v1, %v2993_v43  ;;  %v2136_v9 = vpop.f32.mrb[12].mxu1  ;;  %v2243_v12 = vpop.f32.mrb[14].mxu0 }
 0x146   : > { %v1662_v16 = vsel %vm1598_vm14, %v1566_v50, %v1630_v3  ;;  %v1568_v19 = vadd.f32 %v2998_v55, %v1529_v4  ;;  %v2304_v20 = vadd.f32 %v2240_v47, %v2136_v9  ;;  %v870_v25 = vpop.f32.mrb[13].mxu1  ;;  %v1390_v27 = vpop.f32.mrb[15].mxu0 }
 0x147   : > { %1695 = vst.msk [vmem:[%s3008_s20 + $0x48] sm:$0xff] %vm1685_vm6, %v1662_v16  ;;  %v1661_v29 = vsel %vm1597_vm15, %v1565_v0, %v1629_v6  ;;  %v1567_v30 = vadd.f32 %v2998_v55, %v1528_v7  ;;  %v2305_v38 = vadd.f32 %v1380_v58, %v870_v25 }
 0x148   : > { %1694 = vst.msk [vmem:[%s3008_s20 + $0x40] sm:$0xff] %vm1685_vm6, %v1661_v29  ;;  %vm1600_vm0 = vcmp.ge.f32.partialorder %v1568_v19, 0.0  ;;  %v1632_v41 = vmul.f32 0.2, %v1568_v19  ;;  %v1531_v45 = vmul.f32 %v2304_v20, %v2993_v43 }
 0x149   : > { %vm1599_vm1 = vcmp.ge.f32.partialorder %v1567_v30, 0.0  ;;  %v1631_v46 = vmul.f32 0.2, %v1567_v30  ;;  %v1530_v54 = vmul.f32 %v2305_v38, %v2993_v43  ;;  %v2139_v57 = vpop.f32.mrb[14].mxu1  ;;  %v2246_v61 = vpop.f32.mrb[16].mxu0 }
 0x14a   : > { %v1664_v62 = vsel %vm1600_vm0, %v1568_v19, %v1632_v41  ;;  %v1570_v8 = vadd.f32 %v2998_v55, %v1531_v45  ;;  %v2306_v10 = vadd.f32 %v2243_v12, %v2139_v57  ;;  %v880_v17 = vpop.f32.mrb[15].mxu1  ;;  %v1400_v21 = vpop.f32.mrb[17].mxu0 }
 0x14b   : > { %1697 = vst.msk [vmem:[%s3008_s20 + $0x58] sm:$0xff] %vm1685_vm6, %v1664_v62  ;;  %v1663_v32 = vsel %vm1599_vm1, %v1567_v30, %v1631_v46  ;;  %v1569_v44 = vadd.f32 %v2998_v55, %v1530_v54  ;;  %v2307_v49 = vadd.f32 %v1390_v27, %v880_v17 }
 0x14c   : > { %1696 = vst.msk [vmem:[%s3008_s20 + $0x50] sm:$0xff] %vm1685_vm6, %v1663_v32  ;;  %vm1602_vm2 = vcmp.ge.f32.partialorder %v1570_v8, 0.0  ;;  %v1634_v63 = vmul.f32 0.2, %v1570_v8  ;;  %v1533_v2 = vmul.f32 %v2306_v10, %v2993_v43 }
 0x14d   : > { %vm1601_vm3 = vcmp.ge.f32.partialorder %v1569_v44, 0.0  ;;  %v1633_v5 = vmul.f32 0.2, %v1569_v44  ;;  %v1532_v22 = vmul.f32 %v2307_v49, %v2993_v43  ;;  %v2142_v28 = vpop.f32.mrb[16].mxu1  ;;  %v2249_v52 = vpop.f32.mrb[18].mxu0 }
 0x14e   : > { %v1666_v53 = vsel %vm1602_vm2, %v1570_v8, %v1634_v63  ;;  %v1572_v11 = vadd.f32 %v2998_v55, %v1533_v2  ;;  %v2308_v36 = vadd.f32 %v2246_v61, %v2142_v28  ;;  %v890_v60 = vpop.f32.mrb[17].mxu1  ;;  %v1410_v24 = vpop.f32.mrb[19].mxu0 }
 0x14f   : > { %1699 = vst.msk [vmem:[%s3008_s20 + $0x68] sm:$0xff] %vm1685_vm6, %v1666_v53  ;;  %v1665_v37 = vsel %vm1601_vm3, %v1569_v44, %v1633_v5  ;;  %v1571_v13 = vadd.f32 %v2998_v55, %v1532_v22  ;;  %v2309_v14 = vadd.f32 %v1400_v21, %v890_v60 }
 0x150   : > { %1698 = vst.msk [vmem:[%s3008_s20 + $0x60] sm:$0xff] %vm1685_vm6, %v1665_v37  ;;  %vm1604_vm4 = vcmp.ge.f32.partialorder %v1572_v11, 0.0  ;;  %v1636_v15 = vmul.f32 0.2, %v1572_v11  ;;  %v1535_v18 = vmul.f32 %v2308_v36, %v2993_v43 }
 0x151   : > { %vm1603_vm5 = vcmp.ge.f32.partialorder %v1571_v13, 0.0  ;;  %v1635_v23 = vmul.f32 0.2, %v1571_v13  ;;  %v1534_v26 = vmul.f32 %v2309_v14, %v2993_v43  ;;  %v2145_v31 = vpop.f32.mrb[18].mxu1  ;;  %v2252_v33 = vpop.f32.mrb[20].mxu0 }
 0x152   : > { %v1668_v34 = vsel %vm1604_vm4, %v1572_v11, %v1636_v15  ;;  %v1574_v35 = vadd.f32 %v2998_v55, %v1535_v18  ;;  %v2310_v39 = vadd.f32 %v2249_v52, %v2145_v31  ;;  %v900_v40 = vpop.f32.mrb[19].mxu1  ;;  %v1420_v42 = vpop.f32.mrb[21].mxu0 }
 0x153   : > { %1701 = vst.msk [vmem:[%s3008_s20 + $0x78] sm:$0xff] %vm1685_vm6, %v1668_v34  ;;  %v1667_v47 = vsel %vm1603_vm5, %v1571_v13, %v1635_v23  ;;  %v1573_v48 = vadd.f32 %v2998_v55, %v1534_v26  ;;  %v2311_v50 = vadd.f32 %v1410_v24, %v900_v40 }
 0x154   : > { %1700 = vst.msk [vmem:[%s3008_s20 + $0x70] sm:$0xff] %vm1685_vm6, %v1667_v47  ;;  %vm1606_vm7 = vcmp.ge.f32.partialorder %v1574_v35, 0.0  ;;  %v1638_v51 = vmul.f32 0.2, %v1574_v35  ;;  %v1537_v56 = vmul.f32 %v2310_v39, %v2993_v43 }
 0x155   : > { %vm1605_vm8 = vcmp.ge.f32.partialorder %v1573_v48, 0.0  ;;  %v1637_v58 = vmul.f32 0.2, %v1573_v48  ;;  %v1536_v59 = vmul.f32 %v2311_v50, %v2993_v43  ;;  %v2148_v0 = vpop.f32.mrb[20].mxu1  ;;  %v2255_v1 = vpop.f32.mrb[22].mxu0 }
 0x156   : > { %v1670_v3 = vsel %vm1606_vm7, %v1574_v35, %v1638_v51  ;;  %v1576_v4 = vadd.f32 %v2998_v55, %v1537_v56  ;;  %v2312_v6 = vadd.f32 %v2252_v33, %v2148_v0  ;;  %v910_v7 = vpop.f32.mrb[21].mxu1  ;;  %v1430_v9 = vpop.f32.mrb[23].mxu0 }
 0x157   : > { %1703 = vst.msk [vmem:[%s3008_s20 + $0x88] sm:$0xff] %vm1685_vm6, %v1670_v3  ;;  %v1669_v12 = vsel %vm1605_vm8, %v1573_v48, %v1637_v58  ;;  %v1575_v16 = vadd.f32 %v2998_v55, %v1536_v59  ;;  %v2313_v19 = vadd.f32 %v1420_v42, %v910_v7 }
 0x158   : > { %1702 = vst.msk [vmem:[%s3008_s20 + $0x80] sm:$0xff] %vm1685_vm6, %v1669_v12  ;;  %vm1608_vm9 = vcmp.ge.f32.partialorder %v1576_v4, 0.0  ;;  %v1640_v20 = vmul.f32 0.2, %v1576_v4  ;;  %v1539_v25 = vmul.f32 %v2312_v6, %v2993_v43 }
 0x159   : > { %vm1607_vm10 = vcmp.ge.f32.partialorder %v1575_v16, 0.0  ;;  %v1639_v27 = vmul.f32 0.2, %v1575_v16  ;;  %v1538_v29 = vmul.f32 %v2313_v19, %v2993_v43  ;;  %v2151_v30 = vpop.f32.mrb[22].mxu1  ;;  %v2258_v38 = vpop.f32.mrb[24].mxu0 }
 0x15a   : > { %v1672_v41 = vsel %vm1608_vm9, %v1576_v4, %v1640_v20  ;;  %v1578_v45 = vadd.f32 %v2998_v55, %v1539_v25  ;;  %v2314_v46 = vadd.f32 %v2255_v1, %v2151_v30  ;;  %v920_v54 = vpop.f32.mrb[23].mxu1  ;;  %v1440_v57 = vpop.f32.mrb[25].mxu0 }
 0x15b   : > { %1705 = vst.msk [vmem:[%s3008_s20 + $0x98] sm:$0xff] %vm1685_vm6, %v1672_v41  ;;  %v1671_v61 = vsel %vm1607_vm10, %v1575_v16, %v1639_v27  ;;  %v1577_v62 = vadd.f32 %v2998_v55, %v1538_v29  ;;  %v2315_v8 = vadd.f32 %v1430_v9, %v920_v54 }
 0x15c   : > { %1704 = vst.msk [vmem:[%s3008_s20 + $0x90] sm:$0xff] %vm1685_vm6, %v1671_v61  ;;  %vm1610_vm11 = vcmp.ge.f32.partialorder %v1578_v45, 0.0  ;;  %v1642_v10 = vmul.f32 0.2, %v1578_v45  ;;  %v1541_v17 = vmul.f32 %v2314_v46, %v2993_v43 }
 0x15d   : > { %vm1609_vm12 = vcmp.ge.f32.partialorder %v1577_v62, 0.0  ;;  %v1641_v21 = vmul.f32 0.2, %v1577_v62  ;;  %v1540_v32 = vmul.f32 %v2315_v8, %v2993_v43  ;;  %v2154_v44 = vpop.f32.mrb[24].mxu1  ;;  %v2261_v49 = vpop.f32.mrb[26].mxu0 }
 0x15e   : > { %v1674_v63 = vsel %vm1610_vm11, %v1578_v45, %v1642_v10  ;;  %v1580_v2 = vadd.f32 %v2998_v55, %v1541_v17  ;;  %v2316_v5 = vadd.f32 %v2258_v38, %v2154_v44  ;;  %v930_v22 = vpop.f32.mrb[25].mxu1  ;;  %v1450_v28 = vpop.f32.mrb[27].mxu0 }
 0x15f   : > { %1707 = vst.msk [vmem:[%s3008_s20 + $0xa8] sm:$0xff] %vm1685_vm6, %v1674_v63  ;;  %v1673_v52 = vsel %vm1609_vm12, %v1577_v62, %v1641_v21  ;;  %v1579_v53 = vadd.f32 %v2998_v55, %v1540_v32  ;;  %v2317_v11 = vadd.f32 %v1440_v57, %v930_v22 }
 0x160   : > { %1706 = vst.msk [vmem:[%s3008_s20 + $0xa0] sm:$0xff] %vm1685_vm6, %v1673_v52  ;;  %vm1612_vm13 = vcmp.ge.f32.partialorder %v1580_v2, 0.0  ;;  %v1644_v36 = vmul.f32 0.2, %v1580_v2  ;;  %v1543_v60 = vmul.f32 %v2316_v5, %v2993_v43 }
 0x161   : > { %vm1611_vm14 = vcmp.ge.f32.partialorder %v1579_v53, 0.0  ;;  %v1643_v24 = vmul.f32 0.2, %v1579_v53  ;;  %v1542_v37 = vmul.f32 %v2317_v11, %v2993_v43  ;;  %v2157_v13 = vpop.f32.mrb[26].mxu1  ;;  %v2264_v14 = vpop.f32.mrb[28].mxu0 }
 0x162   : > { %v1676_v15 = vsel %vm1612_vm13, %v1580_v2, %v1644_v36  ;;  %v1582_v18 = vadd.f32 %v2998_v55, %v1543_v60  ;;  %v2318_v23 = vadd.f32 %v2261_v49, %v2157_v13  ;;  %v940_v26 = vpop.f32.mrb[27].mxu1  ;;  %v1460_v31 = vpop.f32.mrb[29].mxu0 }
 0x163   : > { %1709 = vst.msk [vmem:[%s3008_s20 + $0xb8] sm:$0xff] %vm1685_vm6, %v1676_v15  ;;  %v1675_v33 = vsel %vm1611_vm14, %v1579_v53, %v1643_v24  ;;  %v1581_v34 = vadd.f32 %v2998_v55, %v1542_v37  ;;  %v2319_v35 = vadd.f32 %v1450_v28, %v940_v26 }
 0x164   : > { %1708 = vst.msk [vmem:[%s3008_s20 + $0xb0] sm:$0xff] %vm1685_vm6, %v1675_v33  ;;  %vm1614_vm15 = vcmp.ge.f32.partialorder %v1582_v18, 0.0  ;;  %v1646_v39 = vmul.f32 0.2, %v1582_v18  ;;  %v1545_v40 = vmul.f32 %v2318_v23, %v2993_v43 }
 0x165   : > { %vm1613_vm0 = vcmp.ge.f32.partialorder %v1581_v34, 0.0  ;;  %v1645_v42 = vmul.f32 0.2, %v1581_v34  ;;  %v1544_v47 = vmul.f32 %v2319_v35, %v2993_v43  ;;  %v2160_v48 = vpop.f32.mrb[28].mxu1  ;;  %v2267_v50 = vpop.f32.mrb[30].mxu0 }
 0x166   : > { %v1678_v51 = vsel %vm1614_vm15, %v1582_v18, %v1646_v39  ;;  %v1584_v56 = vadd.f32 %v2998_v55, %v1545_v40  ;;  %v2320_v58 = vadd.f32 %v2264_v14, %v2160_v48  ;;  %v950_v59 = vpop.f32.mrb[29].mxu1  ;;  %v1470_v0 = vpop.f32.mrb[31].mxu0 }
 0x167   : > { %1711 = vst.msk [vmem:[%s3008_s20 + $0xc8] sm:$0xff] %vm1685_vm6, %v1678_v51  ;;  %v1677_v1 = vsel %vm1613_vm0, %v1581_v34, %v1645_v42  ;;  %v1583_v3 = vadd.f32 %v2998_v55, %v1544_v47  ;;  %v2321_v4 = vadd.f32 %v1460_v31, %v950_v59 }
 0x168   : > { %1710 = vst.msk [vmem:[%s3008_s20 + $0xc0] sm:$0xff] %vm1685_vm6, %v1677_v1  ;;  %vm1616_vm1 = vcmp.ge.f32.partialorder %v1584_v56, 0.0  ;;  %v1648_v6 = vmul.f32 0.2, %v1584_v56  ;;  %v1547_v7 = vmul.f32 %v2320_v58, %v2993_v43 }
 0x169   : > { %vm1615_vm2 = vcmp.ge.f32.partialorder %v1583_v3, 0.0  ;;  %v1647_v9 = vmul.f32 0.2, %v1583_v3  ;;  %v1546_v12 = vmul.f32 %v2321_v4, %v2993_v43  ;;  %v2163_v16 = vpop.f32.mrb[30].mxu1 }
 0x16a   : > { %v1680_v19 = vsel %vm1616_vm1, %v1584_v56, %v1648_v6  ;;  %v1586_v20 = vadd.f32 %v2998_v55, %v1547_v7  ;;  %v2322_v25 = vadd.f32 %v2267_v50, %v2163_v16  ;;  %v960_v27 = vpop.f32.mrb[31].mxu1 }
 0x16b   : > { %1713 = vst.msk [vmem:[%s3008_s20 + $0xd8] sm:$0xff] %vm1685_vm6, %v1680_v19  ;;  %v1679_v29 = vsel %vm1615_vm2, %v1583_v3, %v1647_v9  ;;  %v1585_v30 = vadd.f32 %v2998_v55, %v1546_v12  ;;  %v2323_v38 = vadd.f32 %v1470_v0, %v960_v27 }
 0x16c   : > { %1712 = vst.msk [vmem:[%s3008_s20 + $0xd0] sm:$0xff] %vm1685_vm6, %v1679_v29  ;;  %vm1618_vm3 = vcmp.ge.f32.partialorder %v1586_v20, 0.0  ;;  %v1650_v41 = vmul.f32 0.2, %v1586_v20  ;;  %v1549_v45 = vmul.f32 %v2322_v25, %v2993_v43 }
 0x16d   : > { %vm1617_vm4 = vcmp.ge.f32.partialorder %v1585_v30, 0.0  ;;  %v1649_v46 = vmul.f32 0.2, %v1585_v30  ;;  %v1548_v54 = vmul.f32 %v2323_v38, %v2993_v43 }
 0x16e   : > { %v1682_v57 = vsel %vm1618_vm3, %v1586_v20, %v1650_v41  ;;  %v1588_v61 = vadd.f32 %v2998_v55, %v1549_v45 }
 0x16f   : > { %1715 = vst.msk [vmem:[%s3008_s20 + $0xe8] sm:$0xff] %vm1685_vm6, %v1682_v57  ;;  %v1681_v62 = vsel %vm1617_vm4, %v1585_v30, %v1649_v46  ;;  %v1587_v8 = vadd.f32 %v2998_v55, %v1548_v54 }
 0x170   : > { %1714 = vst.msk [vmem:[%s3008_s20 + $0xe0] sm:$0xff] %vm1685_vm6, %v1681_v62  ;;  %vm1620_vm5 = vcmp.ge.f32.partialorder %v1588_v61, 0.0  ;;  %v1652_v10 = vmul.f32 0.2, %v1588_v61 }
 0x171   : > { %vm1619_vm7 = vcmp.ge.f32.partialorder %v1587_v8, 0.0  ;;  %v1651_v17 = vmul.f32 0.2, %v1587_v8 }
 0x172   : > { %v1684_v21 = vsel %vm1620_vm5, %v1588_v61, %v1652_v10 }
 0x173   : > { %1717 = vst.msk [vmem:[%s3008_s20 + $0xf8] sm:$0xff] %vm1685_vm6, %v1684_v21  ;;  %v1683_v32 = vsel %vm1619_vm7, %v1587_v8, %v1651_v17 }
 0x174   : > { %1716 = vst.msk [vmem:[%s3008_s20 + $0xf0] sm:$0xff] %vm1685_vm6, %v1683_v32 }
 0x175 PF: > { %s14_s15 = sadd.s32 1, %s2404_s15  }
 0x176   : > { %p11_p4 = scmp.ge.s32.totalorder %s14_s15, 4  }
 0x178   :  { %13 = sbr.rel (!%p11_p4) target bundleno = 1 (0x1), region = 69 }

// kernel: _lambda_.6
= control target key start
LH: loop header
LB: loop body
LE: loop exit
PB: predicated region body
PF: predicated region fallthrough
CT: control target
= control target key end

     0   :  { %s1155_s15 = smov 0   ;;  %s1333_s0 = inlined_call_operand.vmem [shape: f32[2,9,9,32], index: 0, kind: input, shape index: {}]   ;;  %s1334_s1 = inlined_call_operand.vmem [shape: f32[4,32,16], index: 1, kind: input, shape index: {}]   ;;  %s1335_s2 = inlined_call_operand.vmem [shape: f32[1,16], index: 2, kind: input, shape index: {}]   ;;  %s1336_s3 = inlined_call_operand.vmem [shape: f32[1,16], index: 3, kind: input, shape index: {}]   ;;  %s1337_s4 = inlined_call_operand.vmem [shape: f32[2,8,8,16], index: 4, kind: output, shape index: {}]  }
   0x1 LB: > { %s872_s16 = sadd.s32 4294967295, %s1128_s15   ;;  %p876_p0 = scmp.ge.s32.totalorder %s1128_s15, 1  ;;  %s1128_s15 = sphi %s1155_s15, %s14_s15  }
   0x2   : > { %p162_p1 = scmp.lt.s32.totalorder %s1128_s15, 3 }
   0x4   : > { %p163_p2 = pnand %p876_p0, %p162_p1 }
   0x5   : > { %v880_v0 = vld [vmem:[%s1334_s1 + $0x20] sm:$0xff] (!%p163_p2)  ;;  %v881_v1 = vld [vmem:[%s1334_s1 + $0x28] sm:$0xff] (!%p163_p2)  ;;  %p188_p3 = scmp.lt.s32.totalorder (!%p163_p2), %s872_s16, 1  ;;  %v882_v5 = vld [vmem:[%s1334_s1 + $0x30] sm:$0xff] (!%p163_p2)  ;;  %vm266_vm0 = vcmask (!%p163_p2), 261120   ;;  %vm236_vm1 = vcmask (!%p163_p2), 1046528  }
   0x6   : > { %166 = sbr.rel (%p163_p2) target bundleno = 273 (0x111), region = 36  ;;  %v900_v2 = vld [vmem:[%s1334_s1 + $0x40] sm:$0xff] (!%p163_p2)  ;;  %v1057_v3 = vpack.c.bf16 (!%p163_p2), %v881_v1, %v880_v0  ;;  %v901_v4 = vld [vmem:[%s1334_s1 + $0x48] sm:$0xff] (!%p163_p2)  ;;  %v883_v6 = vld [vmem:[%s1334_s1 + $0x38] sm:$0xff] (!%p163_p2)  ;;  %vm808_vm3 = vcmask (!%p163_p2), 130048  }
   0x7   : > { %v1073_v7 = vpack.c.bf16 (!%p163_p2), %v901_v4, %v900_v2  ;;  %v1061_v8 = vpack.c.bf16 (!%p163_p2), %v883_v6, %v882_v5  ;;  %v902_v9 = vld [vmem:[%s1334_s1 + $0x50] sm:$0xff] (!%p163_p2)  ;;  %v903_v10 = vld [vmem:[%s1334_s1 + $0x58] sm:$0xff] (!%p163_p2)  ;;  %v216_v11 = vld [vmem:[%s1334_s1] sm:$0xff] (!%p163_p2) }
   0x8   : > { %1058 = vmatprep.subr.bf16.mxu1 (!%p163_p2), %v1057_v3  ;;  %v1077_v12 = vpack.c.bf16 (!%p163_p2), %v903_v10, %v902_v9  ;;  %v217_v13 = vld [vmem:[%s1334_s1 + $0x8] sm:$0xff] (!%p163_p2)  ;;  %v912_v14 = vld [vmem:[%s1334_s1 + $0x60] sm:$0xff] (!%p163_p2)  ;;  %v218_v18 = vld [vmem:[%s1334_s1 + $0x10] sm:$0xff] (!%p163_p2) }
   0x9   : > { %v913_v15 = vld [vmem:[%s1334_s1 + $0x68] sm:$0xff] (!%p163_p2)  ;;  %1074 = vmatprep.subr.bf16.mxu0 (!%p163_p2), %v1073_v7  ;;  %1060 = vmatpush3.bf16.msra.mxu1 (!%p163_p2), %v1057_v3  ;;  %v1065_v16 = vpack.c.bf16 (!%p163_p2), %v217_v13, %v216_v11  ;;  %v219_v19 = vld [vmem:[%s1334_s1 + $0x18] sm:$0xff] (!%p163_p2)  ;;  %v914_v20 = vld [vmem:[%s1334_s1 + $0x70] sm:$0xff] (!%p163_p2) }
   0xa   : > { %1076 = vmatpush3.bf16.msra.mxu0 (!%p163_p2), %v1073_v7  ;;  %1062 = vmatprep.subr.bf16.mxu1 (!%p163_p2), %v1061_v8  ;;  %v1081_v17 = vpack.c.bf16 (!%p163_p2), %v913_v15, %v912_v14  ;;  %v915_v21 = vld [vmem:[%s1334_s1 + $0x78] sm:$0xff] (!%p163_p2)  ;;  %v1069_v44 = vpack.c.bf16 (!%p163_p2), %v219_v19, %v218_v18  ;;  %v924_v7 = vld [vmem:[%s1335_s2] ss:$0 sm:$0xff] (!%p163_p2) }
   0xb   : > { %1078 = vmatprep.subr.bf16.mxu0 (!%p163_p2), %v1077_v12  ;;  %v1085_v46 = vpack.c.bf16 (!%p163_p2), %v915_v21, %v914_v20  ;;  %v925_v11 = vld [vmem:[%s1336_s3] ss:$0 sm:$0xff] (!%p163_p2) }
   0xd   : > { %s1339_s16 = smov (!%p188_p3, %s872_s16), 1  ;;  %1064 = vmatpush3.bf16.msra.mxu1 %v1061_v8 }
   0xe   : > { %s1113_s17 = smul.u32 144, %s1339_s16  ;;  %1080 = vmatpush3.bf16.msra.mxu0 %v1077_v12  ;;  %1066 = vmatprep.subr.bf16.mxu1 %v1065_v16  ;;  %s928_s7 = sshll.u32 %s1339_s16, 6 }
   0xf   : > { %1082 = vmatprep.subr.bf16.mxu0 %v1081_v17  ;;  %s1312_s10 = scalar_lea.vmem %s1337_s4, %s928_s7 }
  0x10   : > { %s1205_s20 = scalar_lea.vmem %s1333_s0, %s1113_s17 }
  0x11   : > { %v1220_v22 = vld [vmem:[%s1205_s20 + $0x10] sm:$0xff]  ;;  %v1223_v23 = vld [vmem:[%s1205_s20] sm:$0xff]  ;;  %v199_v24 = vld [vmem:[%s1205_s20 + $0x8] sm:$0x1] }
  0x12   : > { %v240_v25 = vrot.slane %v1220_v22, 1  ;;  %1025 = vmatprep.mubr.msk.f32.mxu0 %vm266_vm0, %v1220_v22  ;;  %v237_v26 = vrot.slane %v1223_v23, 1  ;;  %v238_v27 = vrot.slane %v199_v24, 1  ;;  %v1231_v28 = vld [vmem:[%s1205_s20 + $0x20] sm:$0xff]  ;;  %v201_v29 = vld [vmem:[%s1205_s20 + $0x18] sm:$0x1] }
  0x13   : > { %v243_v30 = vrot.slane %v1231_v28, 1  ;;  %v241_v31 = vrot.slane %v201_v29, 1  ;;  %v1236_v32 = vld [vmem:[%s1205_s20 + $0x30] sm:$0xff]  ;;  %v203_v33 = vld [vmem:[%s1205_s20 + $0x28] sm:$0x1]  ;;  %v1240_v34 = vld [vmem:[%s1205_s20 + $0x40] sm:$0xff]  ;;  %1026 = vmatmul.mubr.msk.f32.vlgmr.msra.gmra.mrb[0].mxu0 %vm266_vm0, %v1231_v28 }
  0x14   : > { %v239_v35 = vsel %vm236_vm1, %v237_v26, %v238_v27  ;;  %v246_v36 = vrot.slane %v1236_v32, 1  ;;  %v244_v37 = vrot.slane %v203_v33, 1  ;;  %v249_v38 = vrot.slane %v1240_v34, 1  ;;  %v205_v39 = vld [vmem:[%s1205_s20 + $0x38] sm:$0x1]  ;;  %v208_v40 = vld [vmem:[%s1205_s20 + $0x50] sm:$0xff]  ;;  %1084 = vmatpush3.bf16.msra.mxu0 %v1081_v17  ;;  %1028 = vmatprep.mubr.msk.f32.mxu0 %vm266_vm0, %v1236_v32 }
  0x15   : > { %985 = vmatprep.mubr.msk.f32.mxu1 %vm266_vm0, %v239_v35  ;;  %v242_v41 = vsel %vm236_vm1, %v240_v25, %v241_v31  ;;  %v247_v42 = vrot.slane %v205_v39, 1  ;;  %v207_v43 = vld [vmem:[%s1205_s20 + $0x48] sm:$0x1]  ;;  %v210_v45 = vld [vmem:[%s1205_s20 + $0x60] sm:$0xff]  ;;  %v209_v49 = vld [vmem:[%s1205_s20 + $0x58] sm:$0x1]  ;;  %1086 = vmatprep.subr.bf16.mxu0 %v1085_v46 }
  0x16   : > { %986 = vmatmul.mubr.msk.f32.vlgmr.msra.gmra.mrb[0].mxu1 %vm266_vm0, %v242_v41  ;;  %v245_v47 = vsel %vm236_vm1, %v243_v30, %v244_v37  ;;  %v250_v48 = vrot.slane %v207_v43, 1  ;;  %v252_v51 = vrot.slane %v208_v40, 1  ;;  %v253_v52 = vrot.slane %v209_v49, 1  ;;  %v211_v53 = vld [vmem:[%s1205_s20 + $0x68] sm:$0x1]  ;;  %v212_v56 = vld [vmem:[%s1205_s20 + $0x70] sm:$0xff] }
  0x17   : > { %1068 = vmatpush3.bf16.msra.mxu1 %v1065_v16  ;;  %v248_v50 = vsel %vm236_vm1, %v246_v36, %v247_v42  ;;  %988 = vmatprep.mubr.msk.f32.mxu1 %vm266_vm0, %v245_v47  ;;  %v255_v55 = vrot.slane %v210_v45, 1  ;;  %v256_v57 = vrot.slane %v211_v53, 1  ;;  %v213_v58 = vld [vmem:[%s1205_s20 + $0x78] sm:$0x1]  ;;  %v258_v60 = vrot.slane %v212_v56, 1  ;;  %v214_v63 = vld [vmem:[%s1205_s20 + $0x80] sm:$0xff] }
  0x18   : > { %v251_v54 = vsel %vm236_vm1, %v249_v38, %v250_v48  ;;  %1070 = vmatprep.subr.bf16.mxu1 %v1069_v44  ;;  %1029 = vmatmul.mubr.msk.f32.gmra.mrb[2].mxu0 %vm266_vm0, %v1240_v34  ;;  %v254_v59 = vsel %vm236_vm1, %v252_v51, %v253_v52  ;;  %v259_v61 = vrot.slane %v213_v58, 1  ;;  %v215_v1 = vld [vmem:[%s1205_s20 + $0x88] sm:$0x1]  ;;  %v631_v2 = vrot.slane %v214_v63, 1 }
  0x19   : > { %1031 = vmatprep.mubr.msk.f32.mxu0 %vm266_vm0, %v208_v40  ;;  %1088 = vmatpush3.bf16.msra.mxu0 %v1085_v46  ;;  %v257_v62 = vsel %vm236_vm1, %v255_v55, %v256_v57  ;;  %v632_v3 = vrot.slane %v215_v1, 1 }
  0x1a   : > { %989 = vmatmul.mubr.msk.f32.gmra.mrb[2].mxu1 %vm266_vm0, %v248_v50  ;;  %v260_v0 = vsel %vm236_vm1, %v258_v60, %v259_v61 }
  0x1b   : > { %991 = vmatprep.mubr.msk.f32.mxu1 %vm266_vm0, %v251_v54  ;;  %1072 = vmatpush3.bf16.msra.mxu1 %v1069_v44  ;;  %v633_v4 = vsel %vm236_vm1, %v631_v2, %v632_v3 }
  0x1c   : > { %1032 = vmatmul.mubr.msk.f32.gmra.mrb[4].mxu0 %vm266_vm0, %v210_v45 }
  0x1d   : > { %1034 = vmatprep.mubr.msk.f32.mxu0 %vm266_vm0, %v212_v56 }
  0x1e   : > { %992 = vmatmul.mubr.msk.f32.gmra.mrb[4].mxu1 %vm266_vm0, %v254_v59 }
  0x1f   : > { %994 = vmatprep.mubr.msk.f32.mxu1 %vm266_vm0, %v257_v62 }
  0x20   : > { %1035 = vmatmul.mubr.msk.f32.gmra.mrb[6].mxu0 %vm266_vm0, %v214_v63 }
  0x21   : > { %1045 = vmatprep.mubr.msk.f32.mxu0 %vm266_vm0, %v242_v41 }
  0x22   : > { %995 = vmatmul.mubr.msk.f32.gmra.mrb[6].mxu1 %vm266_vm0, %v260_v0 }
  0x23   : > { %1005 = vmatprep.mubr.msk.f32.mxu1 %vm266_vm0, %v1223_v23 }
  0x24   : > { %1046 = vmatmul.mubr.msk.f32.vlgmr.msra.gmra.mrb[0].mxu0 %vm266_vm0, %v245_v47 }
  0x25   : > { %1048 = vmatprep.mubr.msk.f32.mxu0 %vm266_vm0, %v248_v50 }
  0x26   : > { %1006 = vmatmul.mubr.msk.f32.vlgmr.msra.gmra.mrb[0].mxu1 %vm266_vm0, %v1220_v22 }
  0x27   : > { %1008 = vmatprep.mubr.msk.f32.mxu1 %vm266_vm0, %v1231_v28 }
  0x28   : > { %1049 = vmatmul.mubr.msk.f32.gmra.mrb[2].mxu0 %vm266_vm0, %v251_v54 }
  0x29   : > { %1051 = vmatprep.mubr.msk.f32.mxu0 %vm266_vm0, %v254_v59 }
  0x2a   : > { %1009 = vmatmul.mubr.msk.f32.gmra.mrb[2].mxu1 %vm266_vm0, %v1236_v32 }
  0x2b   : > { %1011 = vmatprep.mubr.msk.f32.mxu1 %vm266_vm0, %v1240_v34 }
  0x2c   : > { %1052 = vmatmul.mubr.msk.f32.gmra.mrb[4].mxu0 %vm266_vm0, %v257_v62 }
  0x2d   : > { %1054 = vmatprep.mubr.msk.f32.mxu0 %vm266_vm0, %v260_v0 }
  0x2e   : > { %1012 = vmatmul.mubr.msk.f32.gmra.mrb[4].mxu1 %vm266_vm0, %v208_v40 }
  0x2f   : > { %1014 = vmatprep.mubr.msk.f32.mxu1 %vm266_vm0, %v210_v45 }
  0x30   : > { %1055 = vmatmul.mubr.msk.f32.gmra.mrb[6].mxu0 %vm266_vm0, %v633_v4 }
  0x32   : > { %1015 = vmatmul.mubr.msk.f32.gmra.mrb[6].mxu1 %vm266_vm0, %v212_v56 }
  0xf7   : > { %v1047_v5 = vpop.f32.mrb[0].mxu0 }
  0xf8   : > { %v707_v9 = vpop.f32.mrb[1].mxu0 }
  0xf9   : > { %v1007_v6 = vpop.f32.mrb[0].mxu1 }
  0xfa   : > { %v1089_v8 = vadd.f32 %v1047_v5, %v1007_v6  ;;  %v470_v10 = vpop.f32.mrb[1].mxu1 }
  0xfb   : > { %v1090_v12 = vadd.f32 %v707_v9, %v470_v10  ;;  %v1050_v15 = vpop.f32.mrb[2].mxu0 }
  0xfc   : > { %v762_v13 = vmul.f32 %v1089_v8, %v924_v7  ;;  %v717_v19 = vpop.f32.mrb[3].mxu0 }
  0xfd   : > { %v761_v14 = vmul.f32 %v1090_v12, %v924_v7  ;;  %v1010_v16 = vpop.f32.mrb[2].mxu1 }
  0xfe   : > { %v777_v17 = vadd.f32 %v925_v11, %v762_v13  ;;  %v1091_v18 = vadd.f32 %v1050_v15, %v1010_v16  ;;  %v480_v20 = vpop.f32.mrb[3].mxu1 }
  0xff   : > { %v776_v21 = vadd.f32 %v925_v11, %v761_v14  ;;  %v1092_v22 = vadd.f32 %v717_v19, %v480_v20  ;;  %v1053_v27 = vpop.f32.mrb[4].mxu0 }
 0x100   : > { %vm785_vm2 = vcmp.ge.f32.partialorder %v777_v17, 0.0  ;;  %v793_v23 = vmul.f32 0.2, %v777_v17  ;;  %v764_v24 = vmul.f32 %v1091_v18, %v924_v7  ;;  %v727_v32 = vpop.f32.mrb[5].mxu0 }
 0x101   : > { %vm784_vm4 = vcmp.ge.f32.partialorder %v776_v21, 0.0  ;;  %v792_v25 = vmul.f32 0.2, %v776_v21  ;;  %v763_v26 = vmul.f32 %v1092_v22, %v924_v7  ;;  %v1013_v28 = vpop.f32.mrb[4].mxu1 }
 0x102   : > { %v801_v29 = vsel %vm785_vm2, %v777_v17, %v793_v23  ;;  %v779_v30 = vadd.f32 %v925_v11, %v764_v24  ;;  %v1093_v31 = vadd.f32 %v1053_v27, %v1013_v28  ;;  %v490_v33 = vpop.f32.mrb[5].mxu1 }
 0x103   : > { %810 = vst.msk [vmem:[%s1312_s10 + $0x8] sm:$0xff] %vm808_vm3, %v801_v29  ;;  %v800_v34 = vsel %vm784_vm4, %v776_v21, %v792_v25  ;;  %v778_v35 = vadd.f32 %v925_v11, %v763_v26  ;;  %v1094_v36 = vadd.f32 %v727_v32, %v490_v33  ;;  %v1056_v41 = vpop.f32.mrb[6].mxu0 }
 0x104   : > { %809 = vst.msk [vmem:[%s1312_s10] sm:$0xff] %vm808_vm3, %v800_v34  ;;  %vm787_vm5 = vcmp.ge.f32.partialorder %v779_v30, 0.0  ;;  %v795_v37 = vmul.f32 0.2, %v779_v30  ;;  %v766_v38 = vmul.f32 %v1093_v31, %v924_v7  ;;  %v737_v46 = vpop.f32.mrb[7].mxu0 }
 0x105   : > { %vm786_vm6 = vcmp.ge.f32.partialorder %v778_v35, 0.0  ;;  %v794_v39 = vmul.f32 0.2, %v778_v35  ;;  %v765_v40 = vmul.f32 %v1094_v36, %v924_v7  ;;  %v1016_v42 = vpop.f32.mrb[6].mxu1 }
 0x106   : > { %v803_v43 = vsel %vm787_vm5, %v779_v30, %v795_v37  ;;  %v781_v44 = vadd.f32 %v925_v11, %v766_v38  ;;  %v1095_v45 = vadd.f32 %v1056_v41, %v1016_v42  ;;  %v500_v47 = vpop.f32.mrb[7].mxu1 }
 0x107   : > { %812 = vst.msk [vmem:[%s1312_s10 + $0x18] sm:$0xff] %vm808_vm3, %v803_v43  ;;  %v802_v48 = vsel %vm786_vm6, %v778_v35, %v794_v39  ;;  %v780_v49 = vadd.f32 %v925_v11, %v765_v40  ;;  %v1096_v50 = vadd.f32 %v737_v46, %v500_v47 }
 0x108   : > { %811 = vst.msk [vmem:[%s1312_s10 + $0x10] sm:$0xff] %vm808_vm3, %v802_v48  ;;  %vm789_vm7 = vcmp.ge.f32.partialorder %v781_v44, 0.0  ;;  %v797_v51 = vmul.f32 0.2, %v781_v44  ;;  %v768_v52 = vmul.f32 %v1095_v45, %v924_v7 }
 0x109   : > { %vm788_vm8 = vcmp.ge.f32.partialorder %v780_v49, 0.0  ;;  %v796_v53 = vmul.f32 0.2, %v780_v49  ;;  %v767_v54 = vmul.f32 %v1096_v50, %v924_v7 }
 0x10a   : > { %v805_v55 = vsel %vm789_vm7, %v781_v44, %v797_v51  ;;  %v783_v56 = vadd.f32 %v925_v11, %v768_v52 }
 0x10b   : > { %814 = vst.msk [vmem:[%s1312_s10 + $0x28] sm:$0xff] %vm808_vm3, %v805_v55  ;;  %v804_v57 = vsel %vm788_vm8, %v780_v49, %v796_v53  ;;  %v782_v58 = vadd.f32 %v925_v11, %v767_v54 }
 0x10c   : > { %813 = vst.msk [vmem:[%s1312_s10 + $0x20] sm:$0xff] %vm808_vm3, %v804_v57  ;;  %vm791_vm9 = vcmp.ge.f32.partialorder %v783_v56, 0.0  ;;  %v799_v59 = vmul.f32 0.2, %v783_v56 }
 0x10d   : > { %vm790_vm10 = vcmp.ge.f32.partialorder %v782_v58, 0.0  ;;  %v798_v60 = vmul.f32 0.2, %v782_v58 }
 0x10e   : > { %v807_v61 = vsel %vm791_vm9, %v783_v56, %v799_v59 }
 0x10f   : > { %816 = vst.msk [vmem:[%s1312_s10 + $0x38] sm:$0xff] %vm808_vm3, %v807_v61  ;;  %v806_v62 = vsel %vm790_vm10, %v782_v58, %v798_v60 }
 0x110   : > { %815 = vst.msk [vmem:[%s1312_s10 + $0x30] sm:$0xff] %vm808_vm3, %v806_v62 }
 0x111 PF: > { %s14_s15 = sadd.s32 1, %s1128_s15  }
 0x112   : > { %p11_p4 = scmp.ge.s32.totalorder %s14_s15, 4  }
 0x114   :  { %13 = sbr.rel (!%p11_p4) target bundleno = 1 (0x1), region = 69 }

// kernel: _lambda_.7
= control target key start
LH: loop header
LB: loop body
LE: loop exit
PB: predicated region body
PF: predicated region fallthrough
CT: control target
= control target key end

     0   :  { %s977_s15 = smov 0   ;;  %s1157_s0 = inlined_call_operand.vmem [shape: f32[2,5,5,64], index: 0, kind: input, shape index: {}]   ;;  %s1158_s1 = inlined_call_operand.vmem [shape: f32[4,64,32], index: 1, kind: input, shape index: {}]   ;;  %s1159_s2 = inlined_call_operand.vmem [shape: f32[1,32], index: 2, kind: input, shape index: {}]   ;;  %s1160_s3 = inlined_call_operand.vmem [shape: f32[1,32], index: 3, kind: input, shape index: {}]   ;;  %s1161_s4 = inlined_call_operand.vmem [shape: f32[2,4,4,32], index: 4, kind: output, shape index: {}]  }
   0x1 LB: > { %s690_s16 = sadd.s32 4294967295, %s950_s15   ;;  %p694_p0 = scmp.ge.s32.totalorder %s950_s15, 1  ;;  %s950_s15 = sphi %s977_s15, %s14_s15  }
   0x2   : > { %p162_p1 = scmp.lt.s32.totalorder %s950_s15, 3 }
   0x4   : > { %p163_p2 = pnand %p694_p0, %p162_p1 }
   0x5   : > { %v702_v0 = vld [vmem:[%s1158_s1 + $0x40] sm:$0xff] (!%p163_p2)  ;;  %v703_v1 = vld [vmem:[%s1158_s1 + $0x48] sm:$0xff] (!%p163_p2)  ;;  %p188_p3 = scmp.lt.s32.totalorder (!%p163_p2), %s690_s16, 1  ;;  %v704_v5 = vld [vmem:[%s1158_s1 + $0x50] sm:$0xff] (!%p163_p2)  ;;  %vm219_vm0 = vcmask (!%p163_p2), 1042432   ;;  %vm220_vm1 = vcmask (!%p163_p2), 1046532  }
   0x6   : > { %166 = sbr.rel (%p163_p2) target bundleno = 267 (0x10b), region = 36  ;;  %v714_v2 = vld [vmem:[%s1158_s1 + $0x80] sm:$0xff] (!%p163_p2)  ;;  %v856_v3 = vpack.c.bf16 (!%p163_p2), %v703_v1, %v702_v0  ;;  %v715_v4 = vld [vmem:[%s1158_s1 + $0x88] sm:$0xff] (!%p163_p2)  ;;  %v705_v6 = vld [vmem:[%s1158_s1 + $0x58] sm:$0xff] (!%p163_p2)  ;;  %vm249_vm3 = vcmask (!%p163_p2), 523264   ;;  %vm630_vm5 = vcmask (!%p163_p2), 257024  }
   0x7   : > { %v888_v7 = vpack.c.bf16 (!%p163_p2), %v715_v4, %v714_v2  ;;  %v860_v8 = vpack.c.bf16 (!%p163_p2), %v705_v6, %v704_v5  ;;  %v716_v9 = vld [vmem:[%s1158_s1 + $0x90] sm:$0xff] (!%p163_p2)  ;;  %v717_v10 = vld [vmem:[%s1158_s1 + $0x98] sm:$0xff] (!%p163_p2)  ;;  %v706_v11 = vld [vmem:[%s1158_s1 + $0x60] sm:$0xff] (!%p163_p2) }
   0x8   : > { %857 = vmatprep.subr.bf16.mxu1 (!%p163_p2), %v856_v3  ;;  %v892_v12 = vpack.c.bf16 (!%p163_p2), %v717_v10, %v716_v9  ;;  %v707_v13 = vld [vmem:[%s1158_s1 + $0x68] sm:$0xff] (!%p163_p2)  ;;  %v718_v14 = vld [vmem:[%s1158_s1 + $0xa0] sm:$0xff] (!%p163_p2)  ;;  %v708_v16 = vld [vmem:[%s1158_s1 + $0x70] sm:$0xff] (!%p163_p2) }
   0x9   : > { %v719_v15 = vld [vmem:[%s1158_s1 + $0xa8] sm:$0xff] (!%p163_p2)  ;;  %889 = vmatprep.subr.bf16.mxu0 (!%p163_p2), %v888_v7  ;;  %859 = vmatpush3.bf16.msra.mxu1 (!%p163_p2), %v856_v3  ;;  %v709_v17 = vld [vmem:[%s1158_s1 + $0x78] sm:$0xff] (!%p163_p2)  ;;  %v864_v18 = vpack.c.bf16 (!%p163_p2), %v707_v13, %v706_v11  ;;  %v720_v20 = vld [vmem:[%s1158_s1 + $0xb0] sm:$0xff] (!%p163_p2) }
   0xa   : > { %891 = vmatpush3.bf16.msra.mxu0 (!%p163_p2), %v888_v7  ;;  %861 = vmatprep.subr.bf16.mxu1 (!%p163_p2), %v860_v8  ;;  %v896_v19 = vpack.c.bf16 (!%p163_p2), %v719_v15, %v718_v14  ;;  %v721_v21 = vld [vmem:[%s1158_s1 + $0xb8] sm:$0xff] (!%p163_p2)  ;;  %v868_v22 = vpack.c.bf16 (!%p163_p2), %v709_v17, %v708_v16  ;;  %vm1063_vm2 = vmor (!%p163_p2), %vm219_vm0, %vm220_vm1  ;;  %v203_v40 = vld [vmem:[%s1158_s1] sm:$0xff] (!%p163_p2) }
   0xb   : > { %893 = vmatprep.subr.bf16.mxu0 (!%p163_p2), %v892_v12  ;;  %v900_v36 = vpack.c.bf16 (!%p163_p2), %v721_v21, %v720_v20  ;;  %v204_v41 = vld [vmem:[%s1158_s1 + $0x8] sm:$0xff] (!%p163_p2)  ;;  %v725_v44 = vld [vmem:[%s1158_s1 + $0xc0] sm:$0xff] (!%p163_p2)  ;;  %v205_v54 = vld [vmem:[%s1158_s1 + $0x10] sm:$0xff] (!%p163_p2) }
   0xc   : > { %v726_v45 = vld [vmem:[%s1158_s1 + $0xc8] sm:$0xff] (!%p163_p2)  ;;  %v872_v52 = vpack.c.bf16 (!%p163_p2), %v204_v41, %v203_v40  ;;  %v206_v55 = vld [vmem:[%s1158_s1 + $0x18] sm:$0xff] (!%p163_p2)  ;;  %v727_v57 = vld [vmem:[%s1158_s1 + $0xd0] sm:$0xff] (!%p163_p2) }
   0xd   : > { %s1165_s16 = smov (!%p188_p3, %s690_s16), 1  ;;  %863 = vmatpush3.bf16.msra.mxu1 %v860_v8  ;;  %v904_v53 = vpack.c.bf16 %v726_v45, %v725_v44  ;;  %v728_v58 = vld [vmem:[%s1158_s1 + $0xd8] sm:$0xff]  ;;  %v876_v60 = vpack.c.bf16 %v206_v55, %v205_v54  ;;  %v207_v62 = vld [vmem:[%s1158_s1 + $0x20] sm:$0xff]  ;;  %v208_v63 = vld [vmem:[%s1158_s1 + $0x28] sm:$0xff] }
   0xe   : > { %s926_s21 = smul.u32 40, %s1165_s16  ;;  %895 = vmatpush3.bf16.msra.mxu0 %v892_v12  ;;  %865 = vmatprep.subr.bf16.mxu1 %v864_v18  ;;  %v908_v61 = vpack.c.bf16 %v728_v58, %v727_v57  ;;  %v729_v2 = vld [vmem:[%s1158_s1 + $0xe0] sm:$0xff]  ;;  %v730_v3 = vld [vmem:[%s1158_s1 + $0xe8] sm:$0xff]  ;;  %v880_v5 = vpack.c.bf16 %v208_v63, %v207_v62  ;;  %v209_v7 = vld [vmem:[%s1158_s1 + $0x30] sm:$0xff]  ;;  %s739_s17 = sshll.u32 %s1165_s16, 4 }
   0xf   : > { %897 = vmatprep.subr.bf16.mxu0 %v896_v19  ;;  %v912_v6 = vpack.c.bf16 %v730_v3, %v729_v2  ;;  %v210_v8 = vld [vmem:[%s1158_s1 + $0x38] sm:$0xff]  ;;  %v731_v9 = vld [vmem:[%s1158_s1 + $0xf0] sm:$0xff]  ;;  %v735_v20 = vld [vmem:[%s1159_s2] ss:$0 sm:$0xff]  ;;  %s197_s20 = scalar_lea.vmem %s1161_s4, %s739_s17 }
  0x10   : > { %s1039_s28 = scalar_lea.vmem %s1157_s0, %s926_s21  ;;  %v732_v10 = vld [vmem:[%s1158_s1 + $0xf8] sm:$0xff]  ;;  %v884_v13 = vpack.c.bf16 %v210_v8, %v209_v7 }
  0x11   : > { %v1042_v23 = vld [vmem:[%s1039_s28] sm:$0x1f]  ;;  %v1045_v24 = vld [vmem:[%s1039_s28 + $0x8] sm:$0x1f]  ;;  %v1048_v25 = vld [vmem:[%s1039_s28 + $0x10] sm:$0x1f]  ;;  %867 = vmatpush3.bf16.msra.mxu1 %v864_v18  ;;  %v916_v14 = vpack.c.bf16 %v732_v10, %v731_v9 }
  0x12   : > { %v1051_v26 = vld [vmem:[%s1039_s28 + $0x18] sm:$0x1f]  ;;  %v215_v27 = vcombine.high %v1042_v23, %v1042_v23  ;;  %v216_v28 = vcombine.high %v1045_v24, %v1045_v24  ;;  %v217_v29 = vcombine.high %v1048_v25, %v1048_v25  ;;  %v698_v30 = vrot.slane %v1042_v23, 9  ;;  %899 = vmatpush3.bf16.msra.mxu0 %v896_v19  ;;  %869 = vmatprep.subr.bf16.mxu1 %v868_v22  ;;  %v202_v49 = vld [vmem:[%s1039_s28 + $0x20] sm:$0x1f] }
  0x13   : > { %v218_v31 = vcombine.high %v1051_v26, %v1051_v26  ;;  %v699_v33 = vrot.slane %v1045_v24, 9  ;;  %v700_v34 = vrot.slane %v1048_v25, 9  ;;  %v701_v35 = vrot.slane %v1051_v26, 9  ;;  %901 = vmatprep.subr.bf16.mxu0 %v900_v36 }
  0x14   : > { %v224_v37 = vrot.slane %v215_v27, 5  ;;  %v228_v38 = vrot.slane %v216_v28, 5  ;;  %v232_v39 = vrot.slane %v217_v29, 5  ;;  %v420_v43 = vcombine.low %v1045_v24, %v1048_v25 }
  0x15   : > { %v236_v42 = vrot.slane %v218_v31, 5  ;;  %871 = vmatpush3.bf16.msra.mxu1 %v868_v22  ;;  %v421_v59 = vcombine.low %v1051_v26, %v202_v49  ;;  %v329_v0 = vcombine.low %v1042_v23, %v1045_v24  ;;  %v503_v4 = vcombine.high %v202_v49, %v202_v49  ;;  %v736_v24 = vld [vmem:[%s1160_s3] ss:$0 sm:$0xff] }
  0x16   : > { %v225_v46 = vsel %vm1063_vm2, %v698_v30, %v224_v37  ;;  %v229_v47 = vsel %vm1063_vm2, %v699_v33, %v228_v38  ;;  %v233_v48 = vsel %vm1063_vm2, %v700_v34, %v232_v39  ;;  %834 = vmatprep.mubr.msk.f32.mxu0 %vm249_vm3, %v420_v43  ;;  %903 = vmatpush3.bf16.msra.mxu0 %v900_v36  ;;  %v724_v11 = vrot.slane %v202_v49, 9 }
  0x17   : > { %v237_v50 = vsel %vm1063_vm2, %v701_v35, %v236_v42  ;;  %v247_v51 = vcombine.low %v225_v46, %v229_v47  ;;  %873 = vmatprep.subr.bf16.mxu1 %v872_v52  ;;  %905 = vmatprep.subr.bf16.mxu0 %v904_v53  ;;  %v517_v1 = vcombine.low %v229_v47, %v233_v48  ;;  %v506_v12 = vrot.slane %v503_v4, 5 }
  0x18   : > { %v248_v56 = vcombine.low %v233_v48, %v237_v50  ;;  %v330_v16 = vcombine.low %v1048_v25, %v1051_v26 }
  0x19   : > { %796 = vmatprep.mubr.msk.f32.mxu1 %vm249_vm3, %v247_v51  ;;  %835 = vmatmul.mubr.msk.f32.vlgmr.msra.gmra.mrb[0].mxu0 %vm249_vm3, %v421_v59  ;;  %v507_v15 = vsel %vm1063_vm2, %v724_v11, %v506_v12 }
  0x1a   : > { %797 = vmatmul.mubr.msk.f32.vlgmr.msra.gmra.mrb[0].mxu1 %vm249_vm3, %v248_v56  ;;  %907 = vmatpush3.bf16.msra.mxu0 %v904_v53  ;;  %v518_v17 = vcombine.low %v237_v50, %v507_v15 }
  0x1b   : > { %875 = vmatpush3.bf16.msra.mxu1 %v872_v52  ;;  %909 = vmatprep.subr.bf16.mxu0 %v908_v61 }
  0x1c   : > { %877 = vmatprep.subr.bf16.mxu1 %v876_v60  ;;  %815 = vmatprep.mubr.msk.f32.mxu1 %vm249_vm3, %v329_v0 }
  0x1d   : > { %853 = vmatprep.mubr.msk.f32.mxu0 %vm249_vm3, %v517_v1 }
  0x1e   : > { %911 = vmatpush3.bf16.msra.mxu0 %v908_v61 }
  0x1f   : > { %879 = vmatpush3.bf16.msra.mxu1 %v876_v60  ;;  %913 = vmatprep.subr.bf16.mxu0 %v912_v6 }
  0x20   : > { %881 = vmatprep.subr.bf16.mxu1 %v880_v5 }
  0x22   : > { %915 = vmatpush3.bf16.msra.mxu0 %v912_v6 }
  0x23   : > { %883 = vmatpush3.bf16.msra.mxu1 %v880_v5  ;;  %917 = vmatprep.subr.bf16.mxu0 %v916_v14 }
  0x24   : > { %885 = vmatprep.subr.bf16.mxu1 %v884_v13 }
  0x26   : > { %919 = vmatpush3.bf16.msra.mxu0 %v916_v14 }
  0x27   : > { %887 = vmatpush3.bf16.msra.mxu1 %v884_v13 }
  0x29   : > { %854 = vmatmul.mubr.msk.f32.vlgmr.msra.gmra.mrb[0].mxu0 %vm249_vm3, %v518_v17 }
  0x2a   : > { %816 = vmatmul.mubr.msk.f32.vlgmr.msra.gmra.mrb[0].mxu1 %vm249_vm3, %v330_v16 }
  0xfc   : > { %v855_v19 = vpop.f32.mrb[0].mxu0 }
  0xfd   : > { %v817_v18 = vpop.f32.mrb[0].mxu1  ;;  %v589_v23 = vpop.f32.mrb[1].mxu0 }
  0xfe   : > { %v401_v21 = vpop.f32.mrb[1].mxu1  ;;  %v920_v22 = vadd.f32 %v855_v19, %v817_v18 }
  0xff   : > { %v921_v25 = vadd.f32 %v589_v23, %v401_v21 }
 0x100   : > { %v608_v26 = vmul.f32 %v920_v22, %v735_v20 }
 0x101   : > { %v607_v27 = vmul.f32 %v921_v25, %v735_v20 }
 0x102   : > { %v617_v28 = vadd.f32 %v736_v24, %v608_v26 }
 0x103   : > { %v616_v29 = vadd.f32 %v736_v24, %v607_v27 }
 0x104   : > { %vm619_vm4 = vcmp.ge.f32.partialorder %v617_v28, 0.0  ;;  %v621_v30 = vmul.f32 0.2, %v617_v28 }
 0x105   : > { %vm618_vm6 = vcmp.ge.f32.partialorder %v616_v29, 0.0  ;;  %v620_v31 = vmul.f32 0.2, %v616_v29 }
 0x106   : > { %v623_v32 = vsel %vm619_vm4, %v617_v28, %v621_v30 }
 0x107   : > { %v627_v33 = vcombine.high %v623_v32, %v623_v32  ;;  %633 = vst.msk [vmem:[%s197_s20 + $0x8] sm:$0xf] %vm630_vm5, %v623_v32  ;;  %v622_v34 = vsel %vm618_vm6, %v616_v29, %v620_v31 }
 0x108   : > { %v626_v35 = vcombine.high %v622_v34, %v622_v34  ;;  %631 = vst.msk [vmem:[%s197_s20] sm:$0xf] %vm630_vm5, %v622_v34 }
 0x109   : > { %634 = vst.msk [vmem:[%s197_s20 + $0xc] sm:$0xf] %vm630_vm5, %v627_v33 }
 0x10a   : > { %632 = vst.msk [vmem:[%s197_s20 + $0x4] sm:$0xf] %vm630_vm5, %v626_v35 }
 0x10b PF: > { %s14_s15 = sadd.s32 1, %s950_s15  }
 0x10c   : > { %p11_p4 = scmp.ge.s32.totalorder %s14_s15, 4  }
 0x10e   :  { %13 = sbr.rel (!%p11_p4) target bundleno = 1 (0x1), region = 69 }

// kernel: _lambda_.9
= control target key start
LH: loop header
LB: loop body
LE: loop exit
PB: predicated region body
PF: predicated region fallthrough
CT: control target
= control target key end

     0   :  { %s2749_s19 = smov 0   ;;  %s3469_s0 = inlined_call_operand.vmem [shape: f32[2,5,5,64], index: 0, kind: input, shape index: {}]   ;;  %s3470_s1 = inlined_call_operand.vmem [shape: f32[16,64,1], index: 1, kind: input, shape index: {}]   ;;  %s3471_s2 = inlined_call_operand.<no memory space> [shape: f32[1,1], index: 2, kind: input, shape index: {}]   ;;  %s3472_s4 = inlined_call_operand.vmem [shape: f32[2,2,2,1], index: 4, kind: output, shape index: {}]   ;;  %s3473_s3 = inlined_call_operand.<no memory space> [shape: f32[1,1], index: 3, kind: input, shape index: {}]  }
   0x1   :  { %v9_v0 = vstv %s3471_s2  ;;  %v11_v1 = vstv %s3473_s3 }
   0x2   :  { %10 = vst [vmem:[#allocation2] sm:$0x1] %v9_v0  ;;  %12 = vst [vmem:[#allocation3] sm:$0x1] %v11_v1 }
   0x3 LB: > { %s1857_s20 = sadd.s32 4294967295, %s2712_s19   ;;  %p1861_p0 = scmp.ge.s32.totalorder %s2712_s19, 1  ;;  %s2712_s19 = sphi %s2749_s19, %s18_s19  }
   0x4   : > { %p166_p1 = scmp.lt.s32.totalorder %s2712_s19, 3 }
   0x6   : > { %p167_p2 = pnand %p1861_p0, %p166_p1 }
   0x7   : > { %v1867_v2 = vld [vmem:[%s3470_s1 + $0x40] sm:$0xff] (!%p167_p2)  ;;  %v1868_v3 = vld [vmem:[%s3470_s1 + $0x48] sm:$0xff] (!%p167_p2)  ;;  %v220_v5 = vlaneseq (!%p167_p2)  ;;  %v2714_v6 = vmov (!%p167_p2), 0.0|0.0   ;;  %v1869_v9 = vld [vmem:[%s3470_s1 + $0x50] sm:$0xff] (!%p167_p2)  ;;  %p192_p3 = scmp.lt.s32.totalorder (!%p167_p2), %s1857_s20, 1  ;;  %vm2715_vm0 = vmmov (!%p167_p2), 0  }
   0x8   : > { %170 = sbr.rel (%p167_p2) target bundleno = 366 (0x16e), region = 36  ;;  %v1934_v4 = vld [vmem:[%s3470_s1 + $0x200] sm:$0xff] (!%p167_p2)  ;;  %2463 = vmatprep.subr.bf16.mxu1 (!%p167_p2), %v2714_v6  ;;  %2559 = vmatprep.subr.bf16.mxu0 (!%p167_p2), %v2714_v6  ;;  %v2464_v7 = vpack.c.bf16 (!%p167_p2), %v1868_v3, %v1867_v2  ;;  %v1935_v8 = vld [vmem:[%s3470_s1 + $0x208] sm:$0xff] (!%p167_p2)  ;;  %v1870_v10 = vld [vmem:[%s3470_s1 + $0x58] sm:$0xff] (!%p167_p2)  ;;  %v2716_v14 = vmov (!%p167_p2), 0.0   ;;  %vm233_vm1 = vcmask (!%p167_p2), 1040384  }
   0x9   : > { %v2560_v11 = vpack.c.bf16 (!%p167_p2), %v1935_v8, %v1934_v4  ;;  %v1936_v12 = vld [vmem:[%s3470_s1 + $0x210] sm:$0xff] (!%p167_p2)  ;;  %v1937_v13 = vld [vmem:[%s3470_s1 + $0x218] sm:$0xff] (!%p167_p2)  ;;  %2175 = vmatprep.mubr.msk.f32.mxu1 (!%p167_p2), %vm2715_vm0, %v2716_v14  ;;  %2327 = vmatprep.mubr.msk.f32.mxu0 (!%p167_p2), %vm2715_vm0, %v2716_v14  ;;  %v2717_v15 = vmov (!%p167_p2), 1983009808   ;;  %v221_v17 = vshrl.u32 (!%p167_p2), %v220_v5, 7  ;;  %v2467_v18 = vpack.c.bf16 (!%p167_p2), %v1870_v10, %v1869_v9  ;;  %v1871_v20 = vld [vmem:[%s3470_s1 + $0x60] sm:$0xff] (!%p167_p2) }
   0xa   : > { %v218_v16 = vunpack.c.l.s4 (!%p167_p2), %v2717_v15  ;;  %2465 = vmatpush3.bf16.msra.mxu1 (!%p167_p2), %v2464_v7  ;;  %vm234_vm2 = vcmask (!%p167_p2), 1042434   ;;  %v2563_v19 = vpack.c.bf16 (!%p167_p2), %v1937_v13, %v1936_v12  ;;  %v1872_v21 = vld [vmem:[%s3470_s1 + $0x68] sm:$0xff] (!%p167_p2)  ;;  %v1938_v23 = vld [vmem:[%s3470_s1 + $0x220] sm:$0xff] (!%p167_p2)  ;;  %vm236_vm4 = vcmask (!%p167_p2), 1044484   ;;  %v1873_v28 = vld [vmem:[%s3470_s1 + $0x70] sm:$0xff] (!%p167_p2) }
   0xb   : > { %2561 = vmatpush3.bf16.msra.mxu0 (!%p167_p2), %v2560_v11  ;;  %2466 = vmatprep.subr.bf16.mxu1 (!%p167_p2), %v2714_v6  ;;  %v1939_v24 = vld [vmem:[%s3470_s1 + $0x228] sm:$0xff] (!%p167_p2)  ;;  %vm2806_vm3 = vmor (!%p167_p2), %vm233_vm1, %vm234_vm2  ;;  %v2470_v27 = vpack.c.bf16 (!%p167_p2), %v1872_v21, %v1871_v20  ;;  %v1874_v29 = vld [vmem:[%s3470_s1 + $0x78] sm:$0xff] (!%p167_p2)  ;;  %vm238_vm6 = vcmask (!%p167_p2), 1046534   ;;  %vm265_vm8 = vcmask (!%p167_p2), 523264   ;;  %vm1799_vm9 = vcmask (!%p167_p2), 1024  }
   0xc   : > { %v219_v22 = vunpack.c.0.s8 (!%p167_p2), %v218_v16  ;;  %2562 = vmatprep.subr.bf16.mxu0 (!%p167_p2), %v2714_v6  ;;  %v1940_v30 = vld [vmem:[%s3470_s1 + $0x230] sm:$0xff] (!%p167_p2)  ;;  %v2566_v31 = vpack.c.bf16 (!%p167_p2), %v1939_v24, %v1938_v23  ;;  %v1941_v35 = vld [vmem:[%s3470_s1 + $0x238] sm:$0xff] (!%p167_p2)  ;;  %vm237_vm5 = vmor (!%p167_p2), %vm2806_vm3, %vm236_vm4  ;;  %v2473_v40 = vpack.c.bf16 (!%p167_p2), %v1874_v29, %v1873_v28 }
   0xd   : > { %v2569_v46 = vpack.c.bf16 (!%p167_p2), %v1941_v35, %v1940_v30  ;;  %vm2865_vm7 = vmor (!%p167_p2), %vm237_vm5, %vm238_vm6  ;;  %v1944_v51 = vld [vmem:[%s3470_s1 + $0x240] sm:$0xff] (!%p167_p2)  ;;  %v1945_v52 = vld [vmem:[%s3470_s1 + $0x248] sm:$0xff] (!%p167_p2) }
   0xe   : > { %v2804_v25 = vsub.s32 (!%p167_p2), %v219_v22, %v221_v17  ;;  %2468 = vmatpush3.bf16.msra.mxu1 (!%p167_p2), %v2467_v18  ;;  %v207_v56 = vld [vmem:[%s3470_s1] sm:$0xff] (!%p167_p2)  ;;  %v208_v57 = vld [vmem:[%s3470_s1 + $0x8] sm:$0xff] (!%p167_p2)  ;;  %v2572_v61 = vpack.c.bf16 (!%p167_p2), %v1945_v52, %v1944_v51  ;;  %v1946_v3 = vld [vmem:[%s3470_s1 + $0x250] sm:$0xff] (!%p167_p2) }
   0xf   : > { %s3479_s20 = smov (!%p192_p3, %s1857_s20), 1  ;;  %2564 = vmatpush3.bf16.msra.mxu0 %v2563_v19  ;;  %2469 = vmatprep.subr.bf16.mxu1 %v2714_v6  ;;  %v2476_v2 = vpack.c.bf16 %v208_v57, %v207_v56  ;;  %v1947_v4 = vld [vmem:[%s3470_s1 + $0x258] sm:$0xff]  ;;  %v209_v7 = vld [vmem:[%s3470_s1 + $0x10] sm:$0xff]  ;;  %v1948_v13 = vld [vmem:[%s3470_s1 + $0x260] sm:$0xff] }
  0x10   : > { %s2684_s17 = smul.u32 40, %s3479_s20  ;;  %2565 = vmatprep.subr.bf16.mxu0 %v2714_v6  ;;  %v210_v8 = vld [vmem:[%s3470_s1 + $0x18] sm:$0xff]  ;;  %v2575_v11 = vpack.c.bf16 %v1947_v4, %v1946_v3  ;;  %v1949_v15 = vld [vmem:[%s3470_s1 + $0x268] sm:$0xff]  ;;  %v211_v16 = vld [vmem:[%s3470_s1 + $0x20] sm:$0xff]  ;;  %s2014_s2 = sshll.u32 %s3479_s20, 2 }
  0x11   : > { %v2479_v12 = vpack.c.bf16 %v210_v8, %v209_v7  ;;  %v212_v17 = vld [vmem:[%s3470_s1 + $0x28] sm:$0xff]  ;;  %v2578_v19 = vpack.c.bf16 %v1949_v15, %v1948_v13  ;;  %v1950_v22 = vld [vmem:[%s3470_s1 + $0x270] sm:$0xff]  ;;  %v1951_v23 = vld [vmem:[%s3470_s1 + $0x278] sm:$0xff]  ;;  %s201_s22 = scalar_lea.vmem %s3472_s4, %s2014_s2 }
  0x12   : > { %s2822_s26 = scalar_lea.vmem %s3469_s0, %s2684_s17  ;;  %2471 = vmatpush3.bf16.msra.mxu1 %v2470_v27  ;;  %v2482_v21 = vpack.c.bf16 %v212_v17, %v211_v16  ;;  %v213_v26 = vld [vmem:[%s3470_s1 + $0x30] sm:$0xff]  ;;  %v214_v27 = vld [vmem:[%s3470_s1 + $0x38] sm:$0xff]  ;;  %v2581_v30 = vpack.c.bf16 %v1951_v23, %v1950_v22  ;;  %v1957_v17 = vld [vmem:[%s3470_s1 + $0x2a0] sm:$0xff] }
  0x13   : > { %v2826_v32 = vld [vmem:[%s2822_s26] sm:$0x1f]  ;;  %v2829_v33 = vld [vmem:[%s2822_s26 + $0x8] sm:$0x1f]  ;;  %v2832_v34 = vld [vmem:[%s2822_s26 + $0x10] sm:$0x1f]  ;;  %2567 = vmatpush3.bf16.msra.mxu0 %v2566_v31  ;;  %2472 = vmatprep.subr.bf16.mxu1 %v2714_v6 }
  0x14   : > { %v2839_v36 = vld [vmem:[%s2822_s26 + $0x18] sm:$0x1f]  ;;  %v2843_v37 = vrot.slane %v2826_v32, %v2804_v25  ;;  %v2847_v38 = vrot.slane %v2829_v33, %v2804_v25  ;;  %v2854_v39 = vrot.slane %v2832_v34, %v2804_v25  ;;  %2568 = vmatprep.subr.bf16.mxu0 %v2714_v6  ;;  %v516_v20 = vcombine.high %v2829_v33, %v2829_v33  ;;  %v1955_v57 = vld [vmem:[%s3470_s1 + $0x290] sm:$0xff]  ;;  %v1881_v22 = vld [vmem:[%s3470_s1 + $0xa0] sm:$0xff] }
  0x15   : > { %v1014_v41 = vcombine.low %v2832_v34, %v2839_v36  ;;  %v2874_v50 = vrot.slane %v2839_v36, %v2804_v25  ;;  %v903_v24 = vcombine.high %v2832_v34, %v2832_v34  ;;  %v338_v29 = vcombine.low %v2826_v32, %v2829_v33  ;;  %v1880_v3 = vld [vmem:[%s3470_s1 + $0x98] sm:$0xff]  ;;  %v1882_v23 = vld [vmem:[%s3470_s1 + $0xa8] sm:$0xff] }
  0x16   : > { %v224_v42 = vcombine.high %v2843_v37, %v2843_v37  ;;  %v232_v43 = vcombine.high %v2847_v38, %v2847_v38  ;;  %v1865_v44 = vrot.slane %v2843_v37, 9  ;;  %v1866_v45 = vrot.slane %v2847_v38, 9  ;;  %2474 = vmatpush3.bf16.msra.mxu1 %v2473_v40 }
  0x17   : > { %v718_v48 = vcombine.high %v2854_v39, %v2854_v39  ;;  %v1905_v49 = vrot.slane %v2854_v39, 9  ;;  %v1021_v60 = vrot.slane %v1014_v41, %v2804_v25  ;;  %2570 = vmatpush3.bf16.msra.mxu0 %v2569_v46  ;;  %2475 = vmatprep.subr.bf16.mxu1 %v2714_v6  ;;  %v1102_v0 = vcombine.high %v2874_v50, %v2874_v50  ;;  %v1878_v46 = vld [vmem:[%s3470_s1 + $0x88] sm:$0xff] }
  0x18   : > { %v2883_v53 = vrot.slane %v224_v42, 7  ;;  %v2885_v54 = vrot.slane %v232_v43, 7  ;;  %2571 = vmatprep.subr.bf16.mxu0 %v2714_v6  ;;  %v1943_v9 = vrot.slane %v2874_v50, 9  ;;  %v523_v31 = vrot.slane %v516_v20, %v2804_v25  ;;  %v1953_v42 = vld [vmem:[%s3470_s1 + $0x280] sm:$0xff]  ;;  %v1954_v43 = vld [vmem:[%s3470_s1 + $0x288] sm:$0xff] }
  0x19   : > { %v2887_v55 = vrot.slane %v718_v48, 7  ;;  %v2932_v10 = vrot.slane %v1102_v0, 7  ;;  %v910_v35 = vrot.slane %v903_v24, %v2804_v25  ;;  %v630_v40 = vcombine.low %v2829_v33, %v2832_v34  ;;  %v1908_v33 = vld [vmem:[%s3470_s1 + $0x150] sm:$0xff]  ;;  %v1909_v34 = vld [vmem:[%s3470_s1 + $0x158] sm:$0xff] }
  0x1a   : > { %v243_v58 = vsel %vm2865_vm7, %v1865_v44, %v2883_v53  ;;  %v2901_v59 = vsel %vm2865_vm7, %v1866_v45, %v2885_v54  ;;  %2328 = vmatmul.mubr.msk.f32.vlgmr.msra.gmra.mrb[0].mxu0 %vm265_vm8, %v1021_v60  ;;  %v2485_v41 = vpack.c.bf16 %v214_v27, %v213_v26  ;;  %v2991_v44 = vld [vmem:[%s2822_s26 + $0x20] sm:$0x1f]  ;;  %v1287_v48 = vcombine.high %v2839_v36, %v2839_v36 }
  0x1b   : > { %v257_v62 = vcombine.low %v243_v58, %v2901_v59  ;;  %v2909_v63 = vsel %vm2865_vm7, %v1905_v49, %v2887_v55  ;;  %2573 = vmatpush3.bf16.msra.mxu0 %v2572_v61  ;;  %2346 = vmatprep.mubr.msk.f32.mxu0 %vm2715_vm0, %v2716_v14  ;;  %v2955_v18 = vsel %vm2865_vm7, %v1943_v9, %v2932_v10  ;;  %v1877_v45 = vld [vmem:[%s3470_s1 + $0x80] sm:$0xff]  ;;  %v527_v51 = vrot.slane %v2885_v54, 2  ;;  %v1956_v58 = vld [vmem:[%s3470_s1 + $0x298] sm:$0xff] }
  0x1c   : > { %v732_v1 = vcombine.low %v2901_v59, %v2909_v63  ;;  %2574 = vmatprep.subr.bf16.mxu0 %v2714_v6  ;;  %v1116_v28 = vcombine.low %v2909_v63, %v2955_v18  ;;  %v1398_v49 = vcombine.low %v2839_v36, %v2991_v44  ;;  %v911_v52 = vrot.slane %v2887_v55, 2  ;;  %v1985_v36 = vld [vmem:[%s3470_s1 + $0x358] sm:$0xff]  ;;  %v1917_v59 = vld [vmem:[%s3470_s1 + $0x190] sm:$0xff] }
  0x1d   : > { %v264_v5 = vrot.slane %v257_v62, %v2804_v25  ;;  %v3015_v60 = vrot.slane %v2991_v44, %v2804_v25  ;;  %v345_v61 = vrot.slane %v338_v29, %v2804_v25  ;;  %v2584_v54 = vpack.c.bf16 %v1954_v43, %v1953_v42  ;;  %v1883_v43 = vld [vmem:[%s3470_s1 + $0xb0] sm:$0xff]  ;;  %v1918_v63 = vld [vmem:[%s3470_s1 + $0x198] sm:$0xff] }
  0x1e   : > { %v1123_v56 = vrot.slane %v1116_v28, %v2804_v25  ;;  %v528_v62 = vrot.slane %v523_v31, 7  ;;  %v912_v55 = vrot.slane %v910_v35, 7  ;;  %v2488_v0 = vpack.c.bf16 %v1878_v46, %v1877_v45  ;;  %v1884_v45 = vld [vmem:[%s3470_s1 + $0xb8] sm:$0xff] }
  0x1f   : > { %2176 = vmatmul.mubr.msk.f32.vlgmr.msra.gmra.mrb[0].mxu1 %vm265_vm8, %v264_v5  ;;  %2576 = vmatpush3.bf16.msra.mxu0 %v2575_v11  ;;  %v2587_v4 = vpack.c.bf16 %v1956_v58, %v1955_v57  ;;  %v1294_v5 = vrot.slane %v1287_v48, %v2804_v25  ;;  %v1671_v7 = vcombine.high %v2991_v44, %v2991_v44  ;;  %v1981_v9 = vrot.slane %v3015_v60, 9 }
  0x20   : > { %2477 = vmatpush3.bf16.msra.mxu1 %v2476_v2  ;;  %2194 = vmatprep.mubr.msk.f32.mxu1 %vm2715_vm0, %v2716_v14  ;;  %v1879_v2 = vld [vmem:[%s3470_s1 + $0x90] sm:$0xff]  ;;  %v1486_v8 = vcombine.high %v3015_v60, %v3015_v60  ;;  %v1923_v11 = vcombine.high %v2847_v38, %v2854_v39  ;;  %v3042_v13 = vsel %vm2865_vm7, %v911_v52, %v912_v55  ;;  %v1295_v24 = vrot.slane %v2932_v10, 2  ;;  %v1888_v55 = vld [vmem:[%s3470_s1 + $0xc8] sm:$0xff] }
  0x21   : > { %2478 = vmatprep.subr.bf16.mxu1 %v2714_v6  ;;  %2577 = vmatprep.subr.bf16.mxu0 %v2714_v6  ;;  %v1999_v15 = vcombine.high %v2874_v50, %v3015_v60  ;;  %v2491_v16 = vpack.c.bf16 %v1880_v3, %v1879_v2  ;;  %v1296_v26 = vrot.slane %v1294_v5, 7  ;;  %v1678_v28 = vrot.slane %v1671_v7, %v2804_v25  ;;  %v1959_v10 = vld [vmem:[%s3470_s1 + $0x2b0] sm:$0xff]  ;;  %v1966_v5 = vld [vmem:[%s3470_s1 + $0x2d8] sm:$0xff] }
  0x22   : > { %v1489_v20 = vrot.slane %v1486_v8, 7  ;;  %v2494_v35 = vpack.c.bf16 %v1882_v23, %v1881_v22  ;;  %v1961_v46 = vcombine.high %v2854_v39, %v2874_v50  ;;  %v2497_v58 = vpack.c.bf16 %v1884_v45, %v1883_v43  ;;  %v1889_v8 = vld [vmem:[%s3470_s1 + $0xd0] sm:$0xff]  ;;  %v1968_v22 = vld [vmem:[%s3470_s1 + $0x2e8] sm:$0xff]  ;;  %v2004_v50 = vld [vmem:[%s3470_s1 + $0x3d8] sm:$0xff] }
  0x23   : > { %2579 = vmatpush3.bf16.msra.mxu0 %v2578_v19  ;;  %v1958_v19 = vld [vmem:[%s3470_s1 + $0x2a8] sm:$0xff]  ;;  %v1680_v42 = vrot.slane %v1678_v28, 7  ;;  %v3092_v48 = vsel %vm2865_vm7, %v1295_v24, %v1296_v26  ;;  %v1891_v24 = vld [vmem:[%s3470_s1 + $0xe0] sm:$0xff]  ;;  %v2527_v44 = vpack.c.bf16 %v1909_v34, %v1908_v33  ;;  %v2003_v34 = vld [vmem:[%s3470_s1 + $0x3d0] sm:$0xff] }
  0x24   : > { %2480 = vmatpush3.bf16.msra.mxu1 %v2479_v12  ;;  %2580 = vmatprep.subr.bf16.mxu0 %v2714_v6  ;;  %v3038_v12 = vsel %vm2865_vm7, %v527_v51, %v528_v62  ;;  %v3069_v27 = vsel %vm2865_vm7, %v1981_v9, %v1489_v20  ;;  %v2590_v29 = vpack.c.bf16 %v1958_v19, %v1957_v17  ;;  %v1679_v31 = vrot.slane %v1489_v20, 2  ;;  %v1890_v9 = vld [vmem:[%s3470_s1 + $0xd8] sm:$0xff]  ;;  %v1967_v20 = vld [vmem:[%s3470_s1 + $0x2e0] sm:$0xff] }
  0x25   : > { %2481 = vmatprep.subr.bf16.mxu1 %v2714_v6  ;;  %v508_v62 = vcombine.high %v2826_v32, %v2826_v32  ;;  %v524_v17 = vrot.slane %v2883_v53, 2  ;;  %v2503_v19 = vpack.c.bf16 %v1890_v9, %v1889_v8  ;;  %v1892_v53 = vld [vmem:[%s3470_s1 + $0xe8] sm:$0xff]  ;;  %v2602_v26 = vpack.c.bf16 %v1968_v22, %v1967_v20  ;;  %v1900_v8 = vld [vmem:[%s3470_s1 + $0x120] sm:$0xff]  ;;  %v1979_v20 = vld [vmem:[%s3470_s1 + $0x338] sm:$0xff] }
  0x26   : > { %v3096_v51 = vsel %vm2865_vm7, %v1679_v31, %v1680_v42  ;;  %v2506_v28 = vpack.c.bf16 %v1892_v53, %v1891_v24  ;;  %v1970_v31 = vld [vmem:[%s3470_s1 + $0x2f8] sm:$0xff]  ;;  %v1307_v42 = vcombine.low %v3042_v13, %v3092_v48  ;;  %v1901_v9 = vld [vmem:[%s3470_s1 + $0x128] sm:$0xff]  ;;  %v1902_v22 = vld [vmem:[%s3470_s1 + $0x130] sm:$0xff]  ;;  %v2647_v60 = vpack.c.bf16 %v2004_v50, %v2003_v34 }
  0x27   : > { %2582 = vmatpush3.bf16.msra.mxu0 %v2581_v30  ;;  %v1500_v30 = vcombine.low %v2955_v18, %v3069_v27  ;;  %v1691_v57 = vcombine.low %v3092_v48, %v3096_v51  ;;  %v515_v7 = vrot.slane %v508_v62, %v2804_v25  ;;  %v1994_v18 = vld [vmem:[%s3470_s1 + $0x398] sm:$0xff]  ;;  %v2539_v27 = vpack.c.bf16 %v1918_v63, %v1917_v59 }
  0x28   : > { %2483 = vmatpush3.bf16.msra.mxu1 %v2482_v21  ;;  %2583 = vmatprep.subr.bf16.mxu0 %v2714_v6  ;;  %v923_v21 = vcombine.low %v3038_v12, %v3042_v13  ;;  %v1928_v39 = vld [vmem:[%s3470_s1 + $0x1d8] sm:$0xff] }
  0x29   : > { %2484 = vmatprep.subr.bf16.mxu1 %v2714_v6  ;;  %v525_v23 = vrot.slane %v515_v7, 7  ;;  %v1977_v7 = vld [vmem:[%s3470_s1 + $0x328] sm:$0xff] }
  0x2a   : > { %2347 = vmatmul.mubr.msk.f32.vlgmr.msra.gmra.mrb[0].mxu0 %vm265_vm8, %v1123_v56  ;;  %v1885_v56 = vcombine.high %v2843_v37, %v2847_v38  ;;  %v1887_v37 = vld [vmem:[%s3470_s1 + $0xc0] sm:$0xff]  ;;  %v1927_v38 = vld [vmem:[%s3470_s1 + $0x1d0] sm:$0xff] }
  0x2b   : > { %2585 = vmatpush3.bf16.msra.mxu0 %v2584_v54  ;;  %2365 = vmatprep.mubr.msk.f32.mxu0 %vm2715_vm0, %v2716_v14  ;;  %v1964_v54 = vld [vmem:[%s3470_s1 + $0x2c8] sm:$0xff]  ;;  %v2500_v32 = vpack.c.bf16 %v1888_v55, %v1887_v37  ;;  %v1974_v55 = vld [vmem:[%s3470_s1 + $0x310] sm:$0xff] }
  0x2c   : > { %2486 = vmatpush3.bf16.msra.mxu1 %v2485_v41  ;;  %2586 = vmatprep.subr.bf16.mxu0 %v2714_v6  ;;  %v1960_v41 = vld [vmem:[%s3470_s1 + $0x2b8] sm:$0xff]  ;;  %v434_v2 = vrot.slane %v1885_v56, %v2804_v25  ;;  %v1896_v56 = vld [vmem:[%s3470_s1 + $0x100] sm:$0xff] }
  0x2d   : > { %2487 = vmatprep.subr.bf16.mxu1 %v2714_v6  ;;  %v2593_v52 = vpack.c.bf16 %v1960_v41, %v1959_v10  ;;  %v1893_v10 = vld [vmem:[%s3470_s1 + $0xf0] sm:$0xff]  ;;  %v1894_v41 = vld [vmem:[%s3470_s1 + $0xf8] sm:$0xff] }
  0x2e   : > { %v2509_v47 = vpack.c.bf16 %v1894_v41, %v1893_v10  ;;  %v637_v10 = vrot.slane %v630_v40, %v2804_v25 }
  0x2f   : > { %2195 = vmatmul.mubr.msk.f32.vlgmr.msra.gmra.mrb[0].mxu1 %vm265_vm8, %v345_v61  ;;  %2588 = vmatpush3.bf16.msra.mxu0 %v2587_v4  ;;  %v1963_v61 = vld [vmem:[%s3470_s1 + $0x2c0] sm:$0xff]  ;;  %v1965_v4 = vld [vmem:[%s3470_s1 + $0x2d0] sm:$0xff] }
  0x30   : > { %2489 = vmatpush3.bf16.msra.mxu1 %v2488_v0  ;;  %2213 = vmatprep.mubr.msk.f32.mxu1 %vm2715_vm0, %v2716_v14  ;;  %v1213_v0 = vrot.slane %v1961_v46, %v2804_v25  ;;  %v2596_v3 = vpack.c.bf16 %v1964_v54, %v1963_v61  ;;  %v1972_v46 = vld [vmem:[%s3470_s1 + $0x300] sm:$0xff]  ;;  %v1314_v61 = vrot.slane %v1307_v42, %v2804_v25 }
  0x31   : > { %2490 = vmatprep.subr.bf16.mxu1 %v2714_v6  ;;  %2589 = vmatprep.subr.bf16.mxu0 %v2714_v6 }
  0x33   : > { %2591 = vmatpush3.bf16.msra.mxu0 %v2590_v29  ;;  %v1969_v29 = vld [vmem:[%s3470_s1 + $0x2f0] sm:$0xff] }
  0x34   : > { %2492 = vmatpush3.bf16.msra.mxu1 %v2491_v16  ;;  %2592 = vmatprep.subr.bf16.mxu0 %v2714_v6  ;;  %v2599_v16 = vpack.c.bf16 %v1966_v5, %v1965_v4  ;;  %v2605_v43 = vpack.c.bf16 %v1970_v31, %v1969_v29  ;;  %v1976_v5 = vld [vmem:[%s3470_s1 + $0x320] sm:$0xff]  ;;  %v1907_v31 = vld [vmem:[%s3470_s1 + $0x148] sm:$0xff] }
  0x35   : > { %2493 = vmatprep.subr.bf16.mxu1 %v2714_v6  ;;  %v1906_v29 = vld [vmem:[%s3470_s1 + $0x140] sm:$0xff] }
  0x36   : > { %v2524_v42 = vpack.c.bf16 %v1907_v31, %v1906_v29  ;;  %v2001_v31 = vld [vmem:[%s3470_s1 + $0x3c0] sm:$0xff] }
  0x37   : > { %2594 = vmatpush3.bf16.msra.mxu0 %v2593_v52  ;;  %v1973_v52 = vld [vmem:[%s3470_s1 + $0x308] sm:$0xff] }
  0x38   : > { %2495 = vmatpush3.bf16.msra.mxu1 %v2494_v35  ;;  %2595 = vmatprep.subr.bf16.mxu0 %v2714_v6  ;;  %v526_v35 = vsel %vm2865_vm7, %v524_v17, %v525_v23  ;;  %v2608_v62 = vpack.c.bf16 %v1973_v52, %v1972_v46  ;;  %v2518_v17 = vpack.c.bf16 %v1901_v9, %v1900_v8  ;;  %v1903_v23 = vld [vmem:[%s3470_s1 + $0x138] sm:$0xff]  ;;  %v1911_v46 = vld [vmem:[%s3470_s1 + $0x168] sm:$0xff]  ;;  %v1993_v9 = vld [vmem:[%s3470_s1 + $0x390] sm:$0xff] }
  0x39   : > { %2496 = vmatprep.subr.bf16.mxu1 %v2714_v6  ;;  %v539_v45 = vcombine.low %v526_v35, %v3038_v12  ;;  %v2521_v53 = vpack.c.bf16 %v1903_v23, %v1902_v22  ;;  %v1405_v35 = vrot.slane %v1398_v49, %v2804_v25  ;;  %v1986_v49 = vld [vmem:[%s3470_s1 + $0x360] sm:$0xff]  ;;  %v1997_v23 = vld [vmem:[%s3470_s1 + $0x3b0] sm:$0xff] }
  0x3a   : > { %2366 = vmatmul.mubr.msk.f32.vlgmr.msra.gmra.mrb[0].mxu0 %vm265_vm8, %v1213_v0  ;;  %v1975_v0 = vld [vmem:[%s3470_s1 + $0x318] sm:$0xff] }
  0x3b   : > { %2597 = vmatpush3.bf16.msra.mxu0 %v2596_v3  ;;  %2384 = vmatprep.mubr.msk.f32.mxu0 %vm2715_vm0, %v2716_v14  ;;  %v546_v54 = vrot.slane %v539_v45, %v2804_v25  ;;  %v1899_v3 = vld [vmem:[%s3470_s1 + $0x118] sm:$0xff]  ;;  %v1987_v45 = vld [vmem:[%s3470_s1 + $0x368] sm:$0xff] }
  0x3c   : > { %2498 = vmatpush3.bf16.msra.mxu1 %v2497_v58  ;;  %2598 = vmatprep.subr.bf16.mxu0 %v2714_v6  ;;  %v1897_v58 = vld [vmem:[%s3470_s1 + $0x108] sm:$0xff]  ;;  %v2626_v52 = vpack.c.bf16 %v1987_v45, %v1986_v49 }
  0x3d   : > { %2499 = vmatprep.subr.bf16.mxu1 %v2714_v6  ;;  %v2512_v37 = vpack.c.bf16 %v1897_v58, %v1896_v56  ;;  %v1988_v58 = vld [vmem:[%s3470_s1 + $0x370] sm:$0xff]  ;;  %v1930_v49 = vld [vmem:[%s3470_s1 + $0x1e8] sm:$0xff] }
  0x3f   : > { %2214 = vmatmul.mubr.msk.f32.vlgmr.msra.gmra.mrb[0].mxu1 %vm265_vm8, %v434_v2  ;;  %2600 = vmatpush3.bf16.msra.mxu0 %v2599_v16  ;;  %v1898_v2 = vld [vmem:[%s3470_s1 + $0x110] sm:$0xff]  ;;  %v2614_v16 = vpack.c.bf16 %v1977_v7, %v1976_v5  ;;  %v739_v5 = vrot.slane %v732_v1, %v2804_v25  ;;  %v2635_v1 = vpack.c.bf16 %v1994_v18, %v1993_v9 }
  0x40   : > { %2501 = vmatpush3.bf16.msra.mxu1 %v2500_v32  ;;  %2232 = vmatprep.mubr.msk.f32.mxu1 %vm2715_vm0, %v2716_v14  ;;  %v2611_v32 = vpack.c.bf16 %v1975_v0, %v1974_v55  ;;  %v2515_v4 = vpack.c.bf16 %v1899_v3, %v1898_v2  ;;  %v1991_v0 = vld [vmem:[%s3470_s1 + $0x380] sm:$0xff]  ;;  %v1992_v2 = vld [vmem:[%s3470_s1 + $0x388] sm:$0xff] }
  0x41   : > { %2502 = vmatprep.subr.bf16.mxu1 %v2714_v6  ;;  %2601 = vmatprep.subr.bf16.mxu0 %v2714_v6  ;;  %v1915_v3 = vld [vmem:[%s3470_s1 + $0x180] sm:$0xff]  ;;  %v2632_v7 = vpack.c.bf16 %v1992_v2, %v1991_v0 }
  0x42   : > { %v2010_v0 = vld [vmem:[#allocation2] ss:$0 sm:$0xff] }
  0x43   : > { %2603 = vmatpush3.bf16.msra.mxu0 %v2602_v26  ;;  %v1982_v26 = vld [vmem:[%s3470_s1 + $0x340] sm:$0xff] }
  0x44   : > { %2504 = vmatpush3.bf16.msra.mxu1 %v2503_v19  ;;  %2604 = vmatprep.subr.bf16.mxu0 %v2714_v6  ;;  %v1978_v19 = vld [vmem:[%s3470_s1 + $0x330] sm:$0xff] }
  0x45   : > { %2505 = vmatprep.subr.bf16.mxu1 %v2714_v6  ;;  %v2617_v24 = vpack.c.bf16 %v1979_v20, %v1978_v19  ;;  %v1920_v19 = vld [vmem:[%s3470_s1 + $0x1a8] sm:$0xff] }
  0x47   : > { %2606 = vmatpush3.bf16.msra.mxu0 %v2605_v43  ;;  %v1984_v43 = vld [vmem:[%s3470_s1 + $0x350] sm:$0xff] }
  0x48   : > { %2507 = vmatpush3.bf16.msra.mxu1 %v2506_v28  ;;  %2607 = vmatprep.subr.bf16.mxu0 %v2714_v6  ;;  %v1983_v28 = vld [vmem:[%s3470_s1 + $0x348] sm:$0xff]  ;;  %v2623_v40 = vpack.c.bf16 %v1985_v36, %v1984_v43  ;;  %v829_v43 = vrot.slane %v1923_v11, %v2804_v25  ;;  %v2551_v11 = vpack.c.bf16 %v1928_v39, %v1927_v38 }
  0x49   : > { %2508 = vmatprep.subr.bf16.mxu1 %v2714_v6  ;;  %v2620_v41 = vpack.c.bf16 %v1983_v28, %v1982_v26  ;;  %v1922_v26 = vld [vmem:[%s3470_s1 + $0x1b8] sm:$0xff] }
  0x4a   : > { %2385 = vmatmul.mubr.msk.f32.vlgmr.msra.gmra.mrb[0].mxu0 %vm265_vm8, %v1314_v61  ;;  %v1989_v61 = vld [vmem:[%s3470_s1 + $0x378] sm:$0xff] }
  0x4b   : > { %2609 = vmatpush3.bf16.msra.mxu0 %v2608_v62  ;;  %2403 = vmatprep.mubr.msk.f32.mxu0 %vm2715_vm0, %v2716_v14  ;;  %v1913_v62 = vld [vmem:[%s3470_s1 + $0x178] sm:$0xff] }
  0x4c   : > { %2510 = vmatpush3.bf16.msra.mxu1 %v2509_v47  ;;  %2610 = vmatprep.subr.bf16.mxu0 %v2714_v6  ;;  %v1910_v47 = vld [vmem:[%s3470_s1 + $0x160] sm:$0xff] }
  0x4d   : > { %2511 = vmatprep.subr.bf16.mxu1 %v2714_v6  ;;  %v2530_v56 = vpack.c.bf16 %v1911_v46, %v1910_v47  ;;  %v2007_v46 = vld [vmem:[%s3470_s1 + $0x3f0] sm:$0xff] }
  0x4f   : > { %2233 = vmatmul.mubr.msk.f32.vlgmr.msra.gmra.mrb[0].mxu1 %vm265_vm8, %v546_v54  ;;  %2612 = vmatpush3.bf16.msra.mxu0 %v2611_v32  ;;  %v1912_v54 = vld [vmem:[%s3470_s1 + $0x170] sm:$0xff]  ;;  %v1916_v32 = vld [vmem:[%s3470_s1 + $0x188] sm:$0xff] }
  0x50   : > { %2513 = vmatpush3.bf16.msra.mxu1 %v2512_v37  ;;  %2251 = vmatprep.mubr.msk.f32.mxu1 %vm2715_vm0, %v2716_v14  ;;  %v2629_v37 = vpack.c.bf16 %v1989_v61, %v1988_v58  ;;  %v2533_v55 = vpack.c.bf16 %v1913_v62, %v1912_v54  ;;  %v2536_v8 = vpack.c.bf16 %v1916_v32, %v1915_v3  ;;  %v2011_v32 = vld [vmem:[#allocation3] ss:$0 sm:$0xff] }
  0x51   : > { %2514 = vmatprep.subr.bf16.mxu1 %v2714_v6  ;;  %2613 = vmatprep.subr.bf16.mxu0 %v2714_v6  ;;  %v1698_v54 = vrot.slane %v1691_v57, %v2804_v25  ;;  %v930_v62 = vrot.slane %v923_v21, %v2804_v25 }
  0x53   : > { %2615 = vmatpush3.bf16.msra.mxu0 %v2614_v16  ;;  %v1996_v16 = vld [vmem:[%s3470_s1 + $0x3a8] sm:$0xff] }
  0x54   : > { %2516 = vmatpush3.bf16.msra.mxu1 %v2515_v4  ;;  %2616 = vmatprep.subr.bf16.mxu0 %v2714_v6  ;;  %v1507_v4 = vrot.slane %v1500_v30, %v2804_v25  ;;  %v1995_v30 = vld [vmem:[%s3470_s1 + $0x3a0] sm:$0xff] }
  0x55   : > { %2517 = vmatprep.subr.bf16.mxu1 %v2714_v6  ;;  %v2638_v20 = vpack.c.bf16 %v1996_v16, %v1995_v30 }
  0x57   : > { %2618 = vmatpush3.bf16.msra.mxu0 %v2617_v24  ;;  %v1998_v24 = vld [vmem:[%s3470_s1 + $0x3b8] sm:$0xff] }
  0x58   : > { %2519 = vmatpush3.bf16.msra.mxu1 %v2518_v17  ;;  %2619 = vmatprep.subr.bf16.mxu0 %v2714_v6  ;;  %v1919_v17 = vld [vmem:[%s3470_s1 + $0x1a0] sm:$0xff]  ;;  %v2641_v28 = vpack.c.bf16 %v1998_v24, %v1997_v23 }
  0x59   : > { %2520 = vmatprep.subr.bf16.mxu1 %v2714_v6  ;;  %v2542_v22 = vpack.c.bf16 %v1920_v19, %v1919_v17 }
  0x5a   : > { %2404 = vmatmul.mubr.msk.f32.vlgmr.msra.gmra.mrb[0].mxu0 %vm265_vm8, %v1405_v35  ;;  %v2002_v35 = vld [vmem:[%s3470_s1 + $0x3c8] sm:$0xff] }
  0x5b   : > { %2621 = vmatpush3.bf16.msra.mxu0 %v2620_v41  ;;  %2422 = vmatprep.mubr.msk.f32.mxu0 %vm2715_vm0, %v2716_v14  ;;  %v1926_v41 = vld [vmem:[%s3470_s1 + $0x1c8] sm:$0xff]  ;;  %v2644_v36 = vpack.c.bf16 %v2002_v35, %v2001_v31 }
  0x5c   : > { %2522 = vmatpush3.bf16.msra.mxu1 %v2521_v53  ;;  %2622 = vmatprep.subr.bf16.mxu0 %v2714_v6  ;;  %v1921_v53 = vld [vmem:[%s3470_s1 + $0x1b0] sm:$0xff] }
  0x5d   : > { %2523 = vmatprep.subr.bf16.mxu1 %v2714_v6  ;;  %v2545_v29 = vpack.c.bf16 %v1922_v26, %v1921_v53 }
  0x5f   : > { %2252 = vmatmul.mubr.msk.f32.vlgmr.msra.gmra.mrb[0].mxu1 %vm265_vm8, %v637_v10  ;;  %2624 = vmatpush3.bf16.msra.mxu0 %v2623_v40  ;;  %v1925_v10 = vld [vmem:[%s3470_s1 + $0x1c0] sm:$0xff]  ;;  %v2006_v40 = vld [vmem:[%s3470_s1 + $0x3e8] sm:$0xff] }
  0x60   : > { %2525 = vmatpush3.bf16.msra.mxu1 %v2524_v42  ;;  %2270 = vmatprep.mubr.msk.f32.mxu1 %vm2715_vm0, %v2716_v14  ;;  %v1597_v42 = vrot.slane %v1999_v15, %v2804_v25  ;;  %v2548_v33 = vpack.c.bf16 %v1926_v41, %v1925_v10  ;;  %v2005_v15 = vld [vmem:[%s3470_s1 + $0x3e0] sm:$0xff] }
  0x61   : > { %2526 = vmatprep.subr.bf16.mxu1 %v2714_v6  ;;  %2625 = vmatprep.subr.bf16.mxu0 %v2714_v6  ;;  %v2650_v45 = vpack.c.bf16 %v2006_v40, %v2005_v15 }
  0x63   : > { %2627 = vmatpush3.bf16.msra.mxu0 %v2626_v52  ;;  %v2008_v52 = vld [vmem:[%s3470_s1 + $0x3f8] sm:$0xff] }
  0x64   : > { %2528 = vmatpush3.bf16.msra.mxu1 %v2527_v44  ;;  %2628 = vmatprep.subr.bf16.mxu0 %v2714_v6  ;;  %v1929_v44 = vld [vmem:[%s3470_s1 + $0x1e0] sm:$0xff]  ;;  %v2653_v58 = vpack.c.bf16 %v2008_v52, %v2007_v46 }
  0x65   : > { %2529 = vmatprep.subr.bf16.mxu1 %v2714_v6  ;;  %v2554_v47 = vpack.c.bf16 %v1930_v49, %v1929_v44 }
  0x67   : > { %2630 = vmatpush3.bf16.msra.mxu0 %v2629_v37 }
  0x68   : > { %2531 = vmatpush3.bf16.msra.mxu1 %v2530_v56  ;;  %2631 = vmatprep.subr.bf16.mxu0 %v2714_v6  ;;  %v1932_v56 = vld [vmem:[%s3470_s1 + $0x1f8] sm:$0xff] }
  0x69   : > { %2532 = vmatprep.subr.bf16.mxu1 %v2714_v6 }
  0x6a   : > { %2423 = vmatmul.mubr.msk.f32.vlgmr.msra.gmra.mrb[0].mxu0 %vm265_vm8, %v1507_v4 }
  0x6b   : > { %2633 = vmatpush3.bf16.msra.mxu0 %v2632_v7  ;;  %2441 = vmatprep.mubr.msk.f32.mxu0 %vm2715_vm0, %v2716_v14 }
  0x6c   : > { %2534 = vmatpush3.bf16.msra.mxu1 %v2533_v55  ;;  %2634 = vmatprep.subr.bf16.mxu0 %v2714_v6 }
  0x6d   : > { %2535 = vmatprep.subr.bf16.mxu1 %v2714_v6 }
  0x6f   : > { %2271 = vmatmul.mubr.msk.f32.vlgmr.msra.gmra.mrb[0].mxu1 %vm265_vm8, %v739_v5  ;;  %2636 = vmatpush3.bf16.msra.mxu0 %v2635_v1 }
  0x70   : > { %2537 = vmatpush3.bf16.msra.mxu1 %v2536_v8  ;;  %2289 = vmatprep.mubr.msk.f32.mxu1 %vm2715_vm0, %v2716_v14 }
  0x71   : > { %2538 = vmatprep.subr.bf16.mxu1 %v2714_v6  ;;  %2637 = vmatprep.subr.bf16.mxu0 %v2714_v6 }
  0x73   : > { %2639 = vmatpush3.bf16.msra.mxu0 %v2638_v20 }
  0x74   : > { %2540 = vmatpush3.bf16.msra.mxu1 %v2539_v27  ;;  %2640 = vmatprep.subr.bf16.mxu0 %v2714_v6 }
  0x75   : > { %2541 = vmatprep.subr.bf16.mxu1 %v2714_v6 }
  0x77   : > { %2642 = vmatpush3.bf16.msra.mxu0 %v2641_v28 }
  0x78   : > { %2543 = vmatpush3.bf16.msra.mxu1 %v2542_v22  ;;  %2643 = vmatprep.subr.bf16.mxu0 %v2714_v6 }
  0x79   : > { %2544 = vmatprep.subr.bf16.mxu1 %v2714_v6 }
  0x7a   : > { %2442 = vmatmul.mubr.msk.f32.vlgmr.msra.gmra.mrb[0].mxu0 %vm265_vm8, %v1597_v42 }
  0x7b   : > { %2645 = vmatpush3.bf16.msra.mxu0 %v2644_v36  ;;  %2460 = vmatprep.mubr.msk.f32.mxu0 %vm2715_vm0, %v2716_v14 }
  0x7c   : > { %2546 = vmatpush3.bf16.msra.mxu1 %v2545_v29  ;;  %2646 = vmatprep.subr.bf16.mxu0 %v2714_v6 }
  0x7d   : > { %2547 = vmatprep.subr.bf16.mxu1 %v2714_v6 }
  0x7f   : > { %2290 = vmatmul.mubr.msk.f32.vlgmr.msra.gmra.mrb[0].mxu1 %vm265_vm8, %v829_v43  ;;  %2648 = vmatpush3.bf16.msra.mxu0 %v2647_v60 }
  0x80   : > { %2549 = vmatpush3.bf16.msra.mxu1 %v2548_v33  ;;  %2308 = vmatprep.mubr.msk.f32.mxu1 %vm2715_vm0, %v2716_v14  ;;  %v1931_v14 = vld [vmem:[%s3470_s1 + $0x1f0] sm:$0xff] }
  0x81   : > { %2550 = vmatprep.subr.bf16.mxu1 %v2714_v6  ;;  %2649 = vmatprep.subr.bf16.mxu0 %v2714_v6  ;;  %v2557_v61 = vpack.c.bf16 %v1932_v56, %v1931_v14 }
  0x83   : > { %2651 = vmatpush3.bf16.msra.mxu0 %v2650_v45 }
  0x84   : > { %2552 = vmatpush3.bf16.msra.mxu1 %v2551_v11  ;;  %2652 = vmatprep.subr.bf16.mxu0 %v2714_v6 }
  0x85   : > { %2553 = vmatprep.subr.bf16.mxu1 %v2714_v6 }
  0x87   : > { %2654 = vmatpush3.bf16.msra.mxu0 %v2653_v58 }
  0x88   : > { %2555 = vmatpush3.bf16.msra.mxu1 %v2554_v47 }
  0x89   : > { %2556 = vmatprep.subr.bf16.mxu1 %v2714_v6 }
  0x8a   : > { %2461 = vmatmul.mubr.msk.f32.vlgmr.msra.gmra.mrb[0].mxu0 %vm265_vm8, %v1698_v54 }
  0x8c   : > { %2558 = vmatpush3.bf16.msra.mxu1 %v2557_v61 }
  0x8f   : > { %2309 = vmatmul.mubr.msk.f32.vlgmr.msra.gmra.mrb[0].mxu1 %vm265_vm8, %v930_v62 }
 0x15d   : > { %v1767_v37 = vpop.f32.mrb[0].mxu0 }
 0x15e   : > { %v2462_v6 = vpop.f32.mrb[1].mxu0 }
 0x162   : > { %v999_v55 = vpop.f32.mrb[0].mxu1 }
 0x163   : > { %v2655_v2 = vadd.f32 %v1767_v37, %v999_v55  ;;  %v2310_v3 = vpop.f32.mrb[1].mxu1 }
 0x165   : > { %v1779_v48 = vmul.f32 %v2655_v2, %v2010_v0 }
 0x167   : > { %v1787_v51 = vadd.f32 %v2011_v32, %v1779_v48 }
 0x169   : > { %v1795_v12 = vrot.slane %v1787_v51, %v2804_v25 }
 0x16b   : > { %v1796_v13 = vcombine.high %v1795_v12, %v1795_v12  ;;  %1800 = vst.msk [vmem:[%s201_s22] sm:$0x3] %vm1799_vm9, %v1795_v12 }
 0x16d   : > { %1801 = vst.msk [vmem:[%s201_s22 + $0x2] sm:$0x3] %vm1799_vm9, %v1796_v13 }
 0x16e PF: > { %s18_s19 = sadd.s32 1, %s2712_s19  }
 0x16f   : > { %p15_p4 = scmp.ge.s32.totalorder %s18_s19, 4  }
 0x171   :  { %17 = sbr.rel (!%p15_p4) target bundleno = 3 (0x3), region = 81 }

// kernel: _lambda_.8
= control target key start
LH: loop header
LB: loop body
LE: loop exit
PB: predicated region body
PF: predicated region fallthrough
CT: control target
= control target key end

     0   :  { %s3523_s15 = smov 0   ;;  %s4276_s0 = inlined_call_operand.vmem [shape: f32[2,6,6,32], index: 0, kind: input, shape index: {}]   ;;  %s4277_s1 = inlined_call_operand.vmem [shape: f32[16,32,64], index: 1, kind: input, shape index: {}]   ;;  %s4278_s2 = inlined_call_operand.vmem [shape: f32[1,64], index: 2, kind: input, shape index: {}]   ;;  %s4279_s3 = inlined_call_operand.vmem [shape: f32[1,64], index: 3, kind: input, shape index: {}]   ;;  %s4280_s4 = inlined_call_operand.vmem [shape: f32[2,3,3,64], index: 4, kind: output, shape index: {}]  }
   0x1 LB: > { %s2932_s16 = sadd.s32 4294967295, %s3495_s15   ;;  %p2936_p0 = scmp.ge.s32.totalorder %s3495_s15, 1  ;;  %s3495_s15 = sphi %s3523_s15, %s14_s15  }
   0x2   : > { %p162_p1 = scmp.lt.s32.totalorder %s3495_s15, 3 }
   0x4   : > { %p163_p2 = pnand %p2936_p0, %p162_p1 }
   0x5   : > { %v2987_v0 = vld [vmem:[%s4277_s1 + $0x100] sm:$0xff] (!%p163_p2)  ;;  %v2988_v1 = vld [vmem:[%s4277_s1 + $0x108] sm:$0xff] (!%p163_p2)  ;;  %p188_p3 = scmp.lt.s32.totalorder (!%p163_p2), %s2932_s16, 1  ;;  %v210_v3 = vlaneseq (!%p163_p2)  ;;  %v2989_v6 = vld [vmem:[%s4277_s1 + $0x110] sm:$0xff] (!%p163_p2)  ;;  %v3497_v8 = vmov (!%p163_p2), 1966171168  }
   0x6   : > { %166 = sbr.rel (%p163_p2) target bundleno = 345 (0x159), region = 36  ;;  %v2939_v2 = vld [vmem:[%s4277_s1 + $0x20] sm:$0xff] (!%p163_p2)  ;;  %v3378_v4 = vpack.c.bf16 (!%p163_p2), %v2988_v1, %v2987_v0  ;;  %v2940_v5 = vld [vmem:[%s4277_s1 + $0x28] sm:$0xff] (!%p163_p2)  ;;  %v2990_v7 = vld [vmem:[%s4277_s1 + $0x118] sm:$0xff] (!%p163_p2)  ;;  %v208_v9 = vunpack.c.l.s4 (!%p163_p2), %v3497_v8  ;;  %vm351_vm0 = vcmask (!%p163_p2), 261120   ;;  %vm2873_vm3 = vcmask (!%p163_p2), 518144  }
   0x7   : > { %v3314_v10 = vpack.c.bf16 (!%p163_p2), %v2940_v5, %v2939_v2  ;;  %v3382_v11 = vpack.c.bf16 (!%p163_p2), %v2990_v7, %v2989_v6  ;;  %v2941_v12 = vld [vmem:[%s4277_s1 + $0x30] sm:$0xff] (!%p163_p2)  ;;  %v2942_v13 = vld [vmem:[%s4277_s1 + $0x38] sm:$0xff] (!%p163_p2)  ;;  %v211_v14 = vshrl.u32 (!%p163_p2), %v210_v3, 7  ;;  %v2993_v15 = vld [vmem:[%s4277_s1 + $0x120] sm:$0xff] (!%p163_p2) }
   0x8   : > { %3379 = vmatprep.subr.bf16.mxu0 (!%p163_p2), %v3378_v4  ;;  %v3318_v16 = vpack.c.bf16 (!%p163_p2), %v2942_v13, %v2941_v12  ;;  %v209_v17 = vunpack.c.0.s8 (!%p163_p2), %v208_v9  ;;  %v2994_v18 = vld [vmem:[%s4277_s1 + $0x128] sm:$0xff] (!%p163_p2)  ;;  %v276_v19 = vld [vmem:[%s4277_s1] sm:$0xff] (!%p163_p2)  ;;  %v2995_v21 = vld [vmem:[%s4277_s1 + $0x130] sm:$0xff] (!%p163_p2) }
   0x9   : > { %v277_v20 = vld [vmem:[%s4277_s1 + $0x8] sm:$0xff] (!%p163_p2)  ;;  %3315 = vmatprep.subr.bf16.mxu1 (!%p163_p2), %v3314_v10  ;;  %3381 = vmatpush3.bf16.msra.mxu0 (!%p163_p2), %v3378_v4  ;;  %v2996_v22 = vld [vmem:[%s4277_s1 + $0x138] sm:$0xff] (!%p163_p2)  ;;  %v3578_v24 = vpack.c.bf16 (!%p163_p2), %v2994_v18, %v2993_v15  ;;  %v278_v25 = vld [vmem:[%s4277_s1 + $0x10] sm:$0xff] (!%p163_p2) }
   0xa   : > { %3317 = vmatpush3.bf16.msra.mxu1 (!%p163_p2), %v3314_v10  ;;  %3383 = vmatprep.subr.bf16.mxu0 (!%p163_p2), %v3382_v11  ;;  %v3576_v23 = vsub.s32 (!%p163_p2), %v209_v17, %v211_v14  ;;  %v279_v26 = vld [vmem:[%s4277_s1 + $0x18] sm:$0xff] (!%p163_p2)  ;;  %v3591_v27 = vpack.c.bf16 (!%p163_p2), %v277_v20, %v276_v19  ;;  %v2999_v28 = vld [vmem:[%s4277_s1 + $0x140] sm:$0xff] (!%p163_p2)  ;;  %v3000_v29 = vld [vmem:[%s4277_s1 + $0x148] sm:$0xff] (!%p163_p2)  ;;  %v3604_v33 = vpack.c.bf16 (!%p163_p2), %v2996_v22, %v2995_v21 }
   0xb   : > { %3319 = vmatprep.subr.bf16.mxu1 (!%p163_p2), %v3318_v16  ;;  %v3613_v38 = vpack.c.bf16 (!%p163_p2), %v279_v26, %v278_v25  ;;  %v2948_v39 = vld [vmem:[%s4277_s1 + $0x40] sm:$0xff] (!%p163_p2)  ;;  %v2949_v40 = vld [vmem:[%s4277_s1 + $0x48] sm:$0xff] (!%p163_p2)  ;;  %v3624_v43 = vpack.c.bf16 (!%p163_p2), %v3000_v29, %v2999_v28 }
   0xc   : > { %v3636_v51 = vpack.c.bf16 (!%p163_p2), %v2949_v40, %v2948_v39 }
   0xd   : > { %s4282_s16 = smov (!%p188_p3, %s2932_s16), 1  ;;  %3385 = vmatpush3.bf16.msra.mxu0 %v3382_v11 }
   0xe   : > { %s3472_s17 = smul.u32 48, %s4282_s16  ;;  %3321 = vmatpush3.bf16.msra.mxu1 %v3318_v16  ;;  %3387 = vmatprep.subr.bf16.mxu0 %v3578_v24 }
   0xf   : > { %3323 = vmatprep.subr.bf16.mxu1 %v3591_v27  ;;  %s3473_s8 = smul.u32 12, %s4282_s16 }
  0x10   : > { %s3589_s28 = scalar_lea.vmem %s4276_s0, %s3472_s17 }
  0x11   : > { %v3600_v30 = vld [vmem:[%s3589_s28 + $0x8] sm:$0x3f]  ;;  %v200_v31 = vld [vmem:[%s3589_s28 + $0x10] sm:$0x3f]  ;;  %v201_v32 = vld [vmem:[%s3589_s28 + $0x18] sm:$0x3f]  ;;  %s197_s11 = scalar_lea.vmem %s4280_s4, %s3473_s8 }
  0x12   : > { %v3607_v34 = vld [vmem:[%s3589_s28 + $0x20] sm:$0x3f]  ;;  %v236_v35 = vrot.slane %v3600_v30, %v3576_v23  ;;  %v259_v36 = vrot.slane %v200_v31, %v3576_v23  ;;  %v947_v37 = vrot.slane %v201_v32, %v3576_v23  ;;  %v1239_v41 = vcombine.high %v201_v32, %v201_v32 }
  0x13   : > { %v1543_v42 = vrot.slane %v3607_v34, %v3576_v23  ;;  %v603_v48 = vcombine.high %v200_v31, %v200_v31  ;;  %v198_v56 = vld [vmem:[%s3589_s28] sm:$0x3f]  ;;  %v1827_v60 = vcombine.high %v3607_v34, %v3607_v34 }
  0x14   : > { %v237_v44 = vcombine.high %v236_v35, %v236_v35  ;;  %v3627_v45 = vrot.slane %v236_v35, %v3576_v23  ;;  %v260_v46 = vcombine.high %v259_v36, %v259_v36  ;;  %v3630_v47 = vrot.slane %v259_v36, %v3576_v23 }
  0x15   : > { %v948_v49 = vcombine.high %v947_v37, %v947_v37  ;;  %v3634_v50 = vrot.slane %v947_v37, %v3576_v23  ;;  %v1544_v59 = vcombine.high %v1543_v42, %v1543_v42  ;;  %v3665_v62 = vrot.slane %v1239_v41, %v3576_v23 }
  0x16   : > { %v3639_v52 = vrot.slane %v237_v44, %v3576_v23  ;;  %v3643_v53 = vcombine.high %v3627_v45, %v3627_v45  ;;  %v3646_v54 = vrot.slane %v260_v46, %v3576_v23  ;;  %v3650_v55 = vcombine.high %v3630_v47, %v3630_v47 }
  0x17   : > { %v3654_v57 = vrot.slane %v948_v49, %v3576_v23  ;;  %v3658_v58 = vcombine.high %v3634_v50, %v3634_v50  ;;  %v3668_v63 = vrot.slane %v1543_v42, %v3576_v23  ;;  %v3675_v2 = vrot.slane %v1544_v59, %v3576_v23 }
  0x18   : > { %v434_v61 = vcombine.low %v3630_v47, %v3646_v54  ;;  %v1565_v0 = vcombine.low %v3650_v55, %v3634_v50  ;;  %v213_v3 = vrot.slane %v198_v56, %v3576_v23  ;;  %v2943_v4 = vcombine.high %v3627_v45, %v3639_v52 }
  0x19   : > { %v1112_v1 = vcombine.low %v3654_v57, %v3658_v58  ;;  %v433_v5 = vcombine.low %v3639_v52, %v3643_v53  ;;  %v3688_v8 = vcombine.high %v3668_v63, %v3668_v63  ;;  %v1566_v10 = vcombine.low %v3668_v63, %v3675_v2 }
  0x1a   : > { %v3683_v6 = vrot.slane %v434_v61, %v3576_v23  ;;  %v1573_v7 = vrot.slane %v1565_v0, %v3576_v23  ;;  %v214_v11 = vcombine.high %v213_v3, %v213_v3  ;;  %v3696_v12 = vrot.slane %v213_v3, %v3576_v23 }
  0x1b   : > { %v3691_v9 = vrot.slane %v1112_v1, %v3576_v23  ;;  %v3699_v13 = vrot.slane %v603_v48, %v3576_v23  ;;  %v3703_v14 = vrot.slane %v3665_v62, %v3576_v23  ;;  %v291_v16 = vcombine.low %v3646_v54, %v3650_v55 }
  0x1c   : > { %v1581_v15 = vcombine.low %v3683_v6, %v1573_v7  ;;  %v1580_v17 = vrot.slane %v1566_v10, %v3576_v23  ;;  %v3710_v18 = vrot.slane %v214_v11, %v3576_v23  ;;  %v229_v19 = vcombine.high %v3696_v12, %v3696_v12 }
  0x1d   : > { %v3715_v20 = vrot.slane %v2943_v4, %v3576_v23  ;;  %v3718_v21 = vrot.slane %v433_v5, %v3576_v23  ;;  %v1604_v22 = vrot.slane %v3688_v8, %v3576_v23  ;;  %v3723_v25 = vrot.slane %v291_v16, %v3576_v23 }
  0x1e   : > { %v573_v26 = vcombine.high %v198_v56, %v198_v56  ;;  %v1582_v28 = vcombine.low %v3691_v9, %v1580_v17  ;;  %v1589_v29 = vrot.slane %v1581_v15, %v3576_v23  ;;  %v3729_v31 = vcombine.high %v3710_v18, %v3710_v18 }
  0x1f   : > { %v288_v32 = vcombine.low %v3710_v18, %v229_v19  ;;  %v321_v35 = vcombine.low %v3715_v20, %v3723_v25  ;;  %v588_v37 = vcombine.high %v3600_v30, %v3600_v30  ;;  %v3741_v39 = vcombine.high %v3646_v54, %v3646_v54 }
  0x20   : > { %v3735_v36 = vrot.slane %v573_v26, %v3576_v23  ;;  %v1596_v40 = vrot.slane %v1582_v28, %v3576_v23  ;;  %v289_v41 = vcombine.low %v3729_v31, %v3639_v52  ;;  %v2978_v44 = vcombine.high %v3634_v50, %v3654_v57 }
  0x21   : > { %v298_v42 = vrot.slane %v288_v32, %v3576_v23  ;;  %v464_v46 = vcombine.low %v3718_v21, %v3683_v6  ;;  %v1611_v48 = vrot.slane %v1604_v22, %v3576_v23  ;;  %v432_v30 = vcombine.low %v229_v19, %v3627_v45  ;;  %v3001_v32 = vld [vmem:[%s4277_s1 + $0x150] sm:$0xff] }
  0x22   : > { %v3754_v49 = vrot.slane %v588_v37, %v3576_v23  ;;  %v1597_v56 = vcombine.low %v1589_v29, %v1596_v40  ;;  %v305_v59 = vrot.slane %v289_v41, %v3576_v23  ;;  %v335_v61 = vrot.slane %v321_v35, %v3576_v23  ;;  %v3002_v35 = vld [vmem:[%s4277_s1 + $0x158] sm:$0xff] }
  0x23   : > { %v1699_v0 = vcombine.low %v3741_v39, %v3654_v57  ;;  %v3762_v1 = vrot.slane %v3735_v36, %v3576_v23  ;;  %v343_v3 = vrot.slane %v3741_v39, %v3576_v23  ;;  %v3767_v4 = vrot.slane %v2978_v44, %v3576_v23 }
  0x24   : > { %v1700_v5 = vcombine.low %v3675_v2, %v3688_v8  ;;  %3234 = vmatprep.mubr.msk.f32.mxu0 %vm351_vm0, %v1597_v56  ;;  %v320_v6 = vcombine.low %v298_v42, %v305_v59  ;;  %v3775_v10 = vcombine.high %v3675_v2, %v3675_v2  ;;  %v431_v11 = vcombine.low %v3696_v12, %v3710_v18 }
  0x25   : > { %v1707_v7 = vrot.slane %v1699_v0, %v3576_v23  ;;  %3235 = vmatmul.mubr.msk.f32.vlgmr.msra.gmra.mrb[0].mxu0 %vm351_vm0, %v1611_v48  ;;  %v3782_v15 = vrot.slane %v3754_v49, %v3576_v23  ;;  %v796_v16 = vcombine.low %v3729_v31, %v3762_v1  ;;  %v448_v19 = vrot.slane %v432_v30, %v3576_v23 }
  0x26   : > { %v3787_v17 = vrot.slane %v1700_v5, %v3576_v23  ;;  %v328_v22 = vrot.slane %v320_v6, %v3576_v23  ;;  %3389 = vmatpush3.bf16.msra.mxu0 %v3578_v24  ;;  %v1738_v28 = vrot.slane %v3775_v10, %v3576_v23  ;;  %v441_v29 = vrot.slane %v431_v11, %v3576_v23 }
  0x27   : > { %v1715_v26 = vcombine.low %v3723_v25, %v1707_v7  ;;  %v1259_v37 = vcombine.low %v3782_v15, %v3650_v55  ;;  %v350_v24 = vrot.slane %v343_v3, %v3576_v23  ;;  %3391 = vmatprep.subr.bf16.mxu0 %v3604_v33  ;;  %v486_v41 = vrot.slane %v3650_v55, %v3576_v23 }
  0x28   : > { %v1716_v40 = vcombine.low %v3767_v4, %v3787_v17  ;;  %v336_v42 = vcombine.low %v328_v22, %v335_v61  ;;  %v463_v48 = vcombine.low %v441_v29, %v448_v19  ;;  %v478_v30 = vrot.slane %v464_v46, %v3576_v23  ;;  %v2950_v61 = vld [vmem:[%s4277_s1 + $0x50] sm:$0xff]  ;;  %v2951_v46 = vld [vmem:[%s4277_s1 + $0x58] sm:$0xff] }
  0x29   : > { %v1723_v44 = vrot.slane %v1715_v26, %v3576_v23  ;;  %v1745_v59 = vrot.slane %v1738_v28, %v3576_v23  ;;  %v493_v0 = vrot.slane %v486_v41, %v3576_v23  ;;  %v3398_v3 = vpack.c.bf16 %v3002_v35, %v3001_v32  ;;  %v3006_v32 = vld [vmem:[%s4277_s1 + $0x160] sm:$0xff] }
  0x2a   : > { %v1730_v56 = vrot.slane %v1716_v40, %v3576_v23  ;;  %3146 = vmatprep.mubr.msk.f32.mxu1 %vm351_vm0, %v336_v42  ;;  %3393 = vmatpush3.bf16.msra.mxu0 %v3604_v33  ;;  %v471_v5 = vrot.slane %v463_v48, %v3576_v23  ;;  %v3826_v6 = vrot.slane %v3699_v13, %v3576_v23 }
  0x2b   : > { %v2953_v7 = vcombine.high %v3630_v47, %v3646_v54  ;;  %3147 = vmatmul.mubr.msk.f32.vlgmr.msra.gmra.mrb[0].mxu1 %vm351_vm0, %v350_v24  ;;  %3395 = vmatprep.subr.bf16.mxu0 %v3624_v43  ;;  %v3834_v11 = vcombine.high %v3654_v57, %v3654_v57  ;;  %v3003_v19 = vcombine.high %v3668_v63, %v3675_v2 }
  0x2c   : > { %v1731_v33 = vcombine.low %v1723_v44, %v1730_v56  ;;  %3325 = vmatpush3.bf16.msra.mxu1 %v3591_v27  ;;  %v479_v22 = vcombine.low %v471_v5, %v478_v30  ;;  %v1847_v28 = vcombine.low %v3826_v6, %v3658_v58  ;;  %v3848_v29 = vrot.slane %v1827_v60, %v3576_v23  ;;  %v3007_v27 = vld [vmem:[%s4277_s1 + $0x168] sm:$0xff]  ;;  %v2956_v56 = vld [vmem:[%s4277_s1 + $0x60] sm:$0xff] }
  0x2d   : > { %v3840_v26 = vrot.slane %v2953_v7, %v3576_v23  ;;  %3327 = vmatprep.subr.bf16.mxu1 %v3613_v38  ;;  %v3334_v35 = vpack.c.bf16 %v2951_v46, %v2950_v61  ;;  %v1402_v24 = vcombine.low %v3834_v11, %v3703_v14  ;;  %v3861_v34 = vrot.slane %v3003_v19, %v3576_v23  ;;  %v3009_v61 = vld [vmem:[%s4277_s1 + $0x178] sm:$0xff] }
  0x2e   : > { %3245 = vmatprep.mubr.msk.f32.mxu0 %vm351_vm0, %v1731_v33  ;;  %3157 = vmatprep.mubr.msk.f32.mxu1 %vm351_vm0, %v479_v22  ;;  %v1855_v60 = vrot.slane %v1847_v28, %v3576_v23  ;;  %v3868_v40 = vrot.slane %v3848_v29, %v3576_v23  ;;  %v3872_v41 = vcombine.high %v3639_v52, %v3639_v52 }
  0x2f   : > { %3246 = vmatmul.mubr.msk.f32.vlgmr.msra.gmra.mrb[0].mxu0 %vm351_vm0, %v1745_v59  ;;  %v3876_v42 = vrot.slane %v1402_v24, %v3576_v23  ;;  %v3402_v44 = vpack.c.bf16 %v3007_v27, %v3006_v32  ;;  %v2952_v48 = vcombine.high %v3696_v12, %v3710_v18  ;;  %v624_v30 = vcombine.low %v3762_v1, %v3643_v53  ;;  %v2957_v59 = vld [vmem:[%s4277_s1 + $0x68] sm:$0xff]  ;;  %v3008_v18 = vld [vmem:[%s4277_s1 + $0x170] sm:$0xff] }
  0x30   : > { %3397 = vmatpush3.bf16.msra.mxu0 %v3624_v43  ;;  %3329 = vmatpush3.bf16.msra.mxu1 %v3613_v38  ;;  %v1863_v43 = vcombine.low %v3840_v26, %v1855_v60  ;;  %v1886_v5 = vrot.slane %v3868_v40, %v3576_v23  ;;  %v625_v12 = vcombine.low %v3872_v41, %v3782_v15 }
  0x31   : > { %3399 = vmatprep.subr.bf16.mxu0 %v3398_v3  ;;  %3331 = vmatprep.subr.bf16.mxu1 %v3636_v51  ;;  %v1864_v38 = vcombine.low %v3876_v42, %v3861_v34  ;;  %v633_v46 = vrot.slane %v2952_v48, %v3576_v23  ;;  %v640_v7 = vrot.slane %v624_v30, %v3576_v23 }
  0x32   : > { %v678_v33 = vrot.slane %v3826_v6, %v3576_v23  ;;  %v1871_v19 = vrot.slane %v1863_v43, %v3576_v23  ;;  %v1893_v22 = vrot.slane %v1886_v5, %v3576_v23  ;;  %v3910_v28 = vrot.slane %v625_v12, %v3576_v23  ;;  %v2958_v43 = vld [vmem:[%s4277_s1 + $0x70] sm:$0xff] }
  0x33   : > { %v3338_v32 = vpack.c.bf16 %v2957_v59, %v2956_v56  ;;  %3158 = vmatmul.mubr.msk.f32.vlgmr.msra.gmra.mrb[0].mxu1 %vm351_vm0, %v493_v0  ;;  %v1878_v27 = vrot.slane %v1864_v38, %v3576_v23  ;;  %v655_v24 = vcombine.low %v633_v46, %v640_v7  ;;  %v3406_v60 = vpack.c.bf16 %v3009_v61, %v3008_v18  ;;  %v2959_v0 = vld [vmem:[%s4277_s1 + $0x78] sm:$0xff] }
  0x34   : > { %3401 = vmatpush3.bf16.msra.mxu0 %v3398_v3  ;;  %3333 = vmatpush3.bf16.msra.mxu1 %v3636_v51  ;;  %v656_v48 = vcombine.low %v3910_v28, %v3840_v26  ;;  %v685_v30 = vrot.slane %v678_v33, %v3576_v23  ;;  %v783_v3 = vcombine.high %v3699_v13, %v3699_v13  ;;  %v3013_v33 = vld [vmem:[%s4277_s1 + $0x188] sm:$0xff] }
  0x35   : > { %3403 = vmatprep.subr.bf16.mxu0 %v3402_v44  ;;  %3335 = vmatprep.subr.bf16.mxu1 %v3334_v35  ;;  %v1879_v56 = vcombine.low %v1871_v19, %v1878_v27  ;;  %v663_v51 = vrot.slane %v655_v24, %v3576_v23  ;;  %v799_v59 = vcombine.low %v3741_v39, %v3826_v6 }
  0x36   : > { %v1387_v5 = vcombine.high %v3665_v62, %v3665_v62  ;;  %v670_v12 = vrot.slane %v656_v48, %v3576_v23  ;;  %v3933_v18 = vrot.slane %v783_v3, %v3576_v23  ;;  %v1990_v61 = vcombine.low %v3775_v10, %v3868_v40  ;;  %v3012_v62 = vld [vmem:[%s4277_s1 + $0x180] sm:$0xff]  ;;  %v2963_v3 = vld [vmem:[%s4277_s1 + $0x88] sm:$0xff] }
  0x37   : > { %v1975_v13 = vcombine.high %v3848_v29, %v3848_v29  ;;  %3256 = vmatprep.mubr.msk.f32.mxu0 %vm351_vm0, %v1879_v56  ;;  %v3342_v38 = vpack.c.bf16 %v2959_v0, %v2958_v43  ;;  %v3941_v46 = vrot.slane %v799_v59, %v3576_v23  ;;  %v767_v29 = vcombine.high %v3735_v36, %v3735_v36 }
  0x38   : > { %v3944_v7 = vrot.slane %v1387_v5, %v3576_v23  ;;  %3337 = vmatpush3.bf16.msra.mxu1 %v3334_v35  ;;  %3257 = vmatmul.mubr.msk.f32.vlgmr.msra.gmra.mrb[0].mxu0 %vm351_vm0, %v1893_v22  ;;  %v671_v19 = vcombine.low %v663_v51, %v670_v12  ;;  %v1988_v27 = vcombine.low %v3933_v18, %v3834_v11  ;;  %v3015_v5 = vld [vmem:[%s4277_s1 + $0x198] sm:$0xff] }
  0x39   : > { %v3958_v24 = vrot.slane %v1990_v61, %v3576_v23  ;;  %3339 = vmatprep.subr.bf16.mxu1 %v3338_v32  ;;  %3405 = vmatpush3.bf16.msra.mxu0 %v3402_v44  ;;  %v3963_v43 = vrot.slane %v1975_v13, %v3576_v23  ;;  %v774_v36 = vrot.slane %v767_v29, %v3576_v23  ;;  %v2962_v44 = vld [vmem:[%s4277_s1 + $0x80] sm:$0xff] }
  0x3a   : > { %v1989_v48 = vcombine.low %v3703_v14, %v3944_v7  ;;  %3168 = vmatprep.mubr.msk.f32.mxu1 %vm351_vm0, %v671_v19  ;;  %3407 = vmatprep.subr.bf16.mxu0 %v3406_v60  ;;  %v1997_v35 = vrot.slane %v1988_v27, %v3576_v23  ;;  %v3410_v22 = vpack.c.bf16 %v3013_v33, %v3012_v62 }
  0x3b   : > { %v775_v0 = vcombine.high %v3754_v49, %v3754_v49  ;;  %3169 = vmatmul.mubr.msk.f32.vlgmr.msra.gmra.mrb[0].mxu1 %vm351_vm0, %v685_v30  ;;  %v797_v51 = vcombine.low %v774_v36, %v3872_v41  ;;  %v806_v59 = vrot.slane %v796_v16, %v3576_v23  ;;  %v3014_v49 = vld [vmem:[%s4277_s1 + $0x190] sm:$0xff]  ;;  %v3993_v30 = vrot.slane %v1259_v37, %v3576_v23  ;;  %v4002_v16 = vld [vmem:[%s3589_s28 + $0x28] sm:$0x3f] }
  0x3c   : > { %v2004_v56 = vrot.slane %v1989_v48, %v3576_v23  ;;  %3341 = vmatpush3.bf16.msra.mxu1 %v3338_v32  ;;  %v2012_v12 = vcombine.low %v3941_v46, %v1997_v35  ;;  %v2035_v31 = vrot.slane %v3963_v43, %v3576_v23  ;;  %v4006_v55 = vpack.c.bf16 %v2963_v3, %v2962_v44  ;;  %v2964_v3 = vld [vmem:[%s4277_s1 + $0x90] sm:$0xff] }
  0x3d   : > { %v3999_v1 = vrot.slane %v775_v0, %v3576_v23  ;;  %3343 = vmatprep.subr.bf16.mxu1 %v3342_v38  ;;  %3409 = vmatpush3.bf16.msra.mxu0 %v3406_v60  ;;  %v813_v13 = vrot.slane %v797_v51, %v3576_v23  ;;  %v851_v62 = vrot.slane %v3933_v18, %v3576_v23 }
  0x3e   : > { %v2013_v61 = vcombine.low %v2004_v56, %v3958_v24  ;;  %v2020_v37 = vrot.slane %v2012_v12, %v3576_v23  ;;  %3411 = vmatprep.subr.bf16.mxu0 %v3410_v22  ;;  %v3414_v33 = vpack.c.bf16 %v3015_v5, %v3014_v49  ;;  %v971_v60 = vcombine.low %v3634_v50, %v3654_v57  ;;  %v3019_v49 = vld [vmem:[%s4277_s1 + $0x1a8] sm:$0xff] }
  0x3f   : > { %v798_v32 = vcombine.low %v3782_v15, %v3999_v1  ;;  %v828_v19 = vcombine.low %v806_v59, %v813_v13  ;;  %v2131_v27 = vrot.slane %v4002_v16, %v3576_v23  ;;  %v2042_v48 = vrot.slane %v2035_v31, %v3576_v23  ;;  %v3018_v59 = vld [vmem:[%s4277_s1 + $0x1a0] sm:$0xff] }
  0x40   : > { %v2027_v29 = vrot.slane %v2013_v61, %v3576_v23  ;;  %3345 = vmatpush3.bf16.msra.mxu1 %v3342_v38  ;;  %v2153_v15 = vcombine.low %v3658_v58, %v3668_v63  ;;  %v969_v35 = vcombine.low %v3627_v45, %v3639_v52  ;;  %v992_v50 = vrot.slane %v971_v60, %v3576_v23  ;;  %v2965_v63 = vld [vmem:[%s4277_s1 + $0x98] sm:$0xff]  ;;  %v2968_v13 = vld [vmem:[%s4277_s1 + $0xa0] sm:$0xff]  ;;  %v3020_v60 = vld [vmem:[%s4277_s1 + $0x1b0] sm:$0xff] }
  0x41   : > { %v820_v36 = vrot.slane %v798_v32, %v3576_v23  ;;  %v836_v44 = vrot.slane %v828_v19, %v3576_v23  ;;  %3347 = vmatprep.subr.bf16.mxu1 %v4006_v55  ;;  %v2132_v57 = vcombine.high %v2131_v27, %v2131_v27  ;;  %v4035_v45 = vrot.slane %v2131_v27, %v3576_v23  ;;  %v3021_v27 = vld [vmem:[%s4277_s1 + $0x1b8] sm:$0xff] }
  0x42   : > { %v2028_v0 = vcombine.low %v2020_v37, %v2027_v29  ;;  %v2161_v52 = vrot.slane %v2153_v15, %v3576_v23  ;;  %v970_v56 = vcombine.low %v3643_v53, %v3630_v47  ;;  %v978_v5 = vrot.slane %v969_v35, %v3576_v23 }
  0x43   : > { %v829_v38 = vcombine.low %v820_v36, %v3941_v46  ;;  %v4042_v51 = vrot.slane %v2132_v57, %v3576_v23  ;;  %v994_v12 = vcombine.low %v3723_v25, %v992_v50  ;;  %v1275_v47 = vcombine.low %v3715_v20, %v3993_v30  ;;  %v2969_v25 = vld [vmem:[%s4277_s1 + $0xa8] sm:$0xff] }
  0x44   : > { %3267 = vmatprep.mubr.msk.f32.mxu0 %vm351_vm0, %v2028_v0  ;;  %v2147_v31 = vcombine.high %v4035_v45, %v4035_v45  ;;  %v985_v61 = vrot.slane %v970_v56, %v3576_v23  ;;  %v858_v37 = vrot.slane %v851_v62, %v3576_v23  ;;  %v3350_v32 = vpack.c.bf16 %v2965_v63, %v2964_v3 }
  0x45   : > { %3268 = vmatmul.mubr.msk.f32.vlgmr.msra.gmra.mrb[0].mxu0 %vm351_vm0, %v2042_v48  ;;  %v843_v53 = vrot.slane %v829_v38, %v3576_v23  ;;  %v2154_v29 = vcombine.low %v4035_v45, %v4042_v51  ;;  %v2169_v19 = vcombine.low %v992_v50, %v2161_v52  ;;  %v3418_v36 = vpack.c.bf16 %v3019_v49, %v3018_v59  ;;  %v2971_v52 = vld [vmem:[%s4277_s1 + $0xb8] sm:$0xff]  ;;  %v3024_v49 = vld [vmem:[%s4277_s1 + $0x1c0] sm:$0xff] }
  0x46   : > { %3413 = vmatpush3.bf16.msra.mxu0 %v3410_v22  ;;  %v993_v15 = vcombine.low %v978_v5, %v985_v61  ;;  %v1008_v22 = vrot.slane %v994_v12, %v3576_v23  ;;  %v3354_v35 = vpack.c.bf16 %v2969_v25, %v2968_v13  ;;  %v1016_v0 = vrot.slane %v3658_v58, %v3576_v23  ;;  %v3025_v5 = vld [vmem:[%s4277_s1 + $0x1c8] sm:$0xff]  ;;  %v2974_v61 = vld [vmem:[%s4277_s1 + $0xc0] sm:$0xff] }
  0x47   : > { %v844_v48 = vcombine.low %v836_v44, %v843_v53  ;;  %3415 = vmatprep.subr.bf16.mxu0 %v3414_v33  ;;  %v2168_v62 = vrot.slane %v2154_v29, %v3576_v23  ;;  %v2287_v50 = vcombine.low %v3834_v11, %v3675_v2  ;;  %v2192_v57 = vrot.slane %v2147_v31, %v3576_v23  ;;  %v2970_v2 = vld [vmem:[%s4277_s1 + $0xb0] sm:$0xff]  ;;  %v2975_v13 = vld [vmem:[%s4277_s1 + $0xc8] sm:$0xff] }
  0x48   : > { %v1001_v44 = vrot.slane %v993_v15, %v3576_v23  ;;  %v4083_v38 = vpack.c.bf16 %v3021_v27, %v3020_v60  ;;  %v2288_v3 = vcombine.low %v4042_v51, %v2147_v31  ;;  %v2177_v58 = vrot.slane %v2169_v19, %v3576_v23 }
  0x49   : > { %3179 = vmatprep.mubr.msk.f32.mxu1 %vm351_vm0, %v844_v48  ;;  %v2170_v63 = vcombine.low %v3787_v17, %v2168_v62  ;;  %v2295_v56 = vrot.slane %v2287_v50, %v3576_v23  ;;  %v4100_v17 = vcombine.high %v4042_v51, %v4042_v51  ;;  %v1111_v53 = vcombine.low %v3872_v41, %v3646_v54 }
  0x4a   : > { %3180 = vmatmul.mubr.msk.f32.vlgmr.msra.gmra.mrb[0].mxu1 %vm351_vm0, %v858_v37  ;;  %3417 = vmatpush3.bf16.msra.mxu0 %v3414_v33  ;;  %v1009_v59 = vcombine.low %v1001_v44, %v1008_v22  ;;  %v2302_v33 = vrot.slane %v2288_v3, %v3576_v23  ;;  %v1128_v31 = vcombine.low %v3840_v26, %v3691_v9  ;;  %v2976_v44 = vld [vmem:[%s4277_s1 + $0xd0] sm:$0xff]  ;;  %v2977_v3 = vld [vmem:[%s4277_s1 + $0xd8] sm:$0xff] }
  0x4b   : > { %3349 = vmatpush3.bf16.msra.mxu1 %v4006_v55  ;;  %3419 = vmatprep.subr.bf16.mxu0 %v3418_v36  ;;  %v2184_v12 = vrot.slane %v2170_v63, %v3576_v23  ;;  %v2303_v55 = vcombine.low %v3691_v9, %v2295_v56  ;;  %v2199_v25 = vrot.slane %v2192_v57, %v3576_v23 }
  0x4c   : > { %3351 = vmatprep.subr.bf16.mxu1 %v3350_v32  ;;  %3190 = vmatprep.mubr.msk.f32.mxu1 %vm351_vm0, %v1009_v59  ;;  %v1023_v37 = vrot.slane %v1016_v0, %v3576_v23  ;;  %v3358_v29 = vpack.c.bf16 %v2971_v52, %v2970_v2  ;;  %v2304_v54 = vcombine.low %v3861_v34, %v2302_v33 }
  0x4d   : > { %v2185_v41 = vcombine.low %v2177_v58, %v2184_v12  ;;  %v2311_v9 = vrot.slane %v2303_v55, %v3576_v23  ;;  %v4125_v26 = vpack.c.bf16 %v3025_v5, %v3024_v49  ;;  %v1119_v19 = vrot.slane %v1111_v53, %v3576_v23  ;;  %v3032_v49 = vld [vmem:[%s4277_s1 + $0x1e8] sm:$0xff]  ;;  %v2981_v53 = vld [vmem:[%s4277_s1 + $0xe0] sm:$0xff] }
  0x4e   : > { %v2318_v60 = vrot.slane %v2304_v54, %v3576_v23  ;;  %v2326_v27 = vrot.slane %v4100_v17, %v3576_v23  ;;  %v1142_v48 = vrot.slane %v1128_v31, %v3576_v23  ;;  %v3362_v15 = vpack.c.bf16 %v2975_v13, %v2974_v61  ;;  %v2982_v31 = vld [vmem:[%s4277_s1 + $0xe8] sm:$0xff] }
  0x4f   : > { %3353 = vmatpush3.bf16.msra.mxu1 %v3350_v32  ;;  %3278 = vmatprep.mubr.msk.f32.mxu0 %vm351_vm0, %v2185_v41  ;;  %v1127_v34 = vcombine.low %v3718_v21, %v1119_v19  ;;  %v2435_v22 = vcombine.low %v3703_v14, %v3688_v8  ;;  %v3028_v62 = vcombine.high %v4035_v45, %v4042_v51 }
  0x50   : > { %3355 = vmatprep.subr.bf16.mxu1 %v3354_v35  ;;  %3279 = vmatmul.mubr.msk.f32.vlgmr.msra.gmra.mrb[0].mxu0 %vm351_vm0, %v2199_v25  ;;  %v2319_v32 = vcombine.low %v2311_v9, %v2318_v60  ;;  %v1150_v0 = vrot.slane %v3834_v11, %v3576_v23  ;;  %v2415_v50 = vcombine.high %v4002_v16, %v4002_v16  ;;  %v3026_v11 = vld [vmem:[%s4277_s1 + $0x1d0] sm:$0xff] }
  0x51   : > { %v1276_v57 = vcombine.low %v3941_v46, %v3767_v4  ;;  %3421 = vmatpush3.bf16.msra.mxu0 %v3418_v36  ;;  %v1135_v8 = vrot.slane %v1127_v34, %v3576_v23  ;;  %v2443_v21 = vrot.slane %v2435_v22, %v3576_v23  ;;  %v2450_v45 = vrot.slane %v3028_v62, %v3576_v23  ;;  %v3027_v46 = vld [vmem:[%s4277_s1 + $0x1d8] sm:$0xff]  ;;  %v2983_v9 = vld [vmem:[%s4277_s1 + $0xf0] sm:$0xff] }
  0x52   : > { %3191 = vmatmul.mubr.msk.f32.vlgmr.msra.gmra.mrb[0].mxu1 %vm351_vm0, %v1023_v37  ;;  %3423 = vmatprep.subr.bf16.mxu0 %v4083_v38  ;;  %v2422_v16 = vrot.slane %v2415_v50, %v3576_v23  ;;  %v1283_v51 = vrot.slane %v1275_v47, %v3576_v23  ;;  %v2333_v20 = vrot.slane %v2326_v27, %v3576_v23 }
  0x53   : > { %3357 = vmatpush3.bf16.msra.mxu1 %v3354_v35  ;;  %v1290_v36 = vrot.slane %v1276_v57, %v3576_v23  ;;  %3289 = vmatprep.mubr.msk.f32.mxu0 %vm351_vm0, %v2319_v32  ;;  %v1143_v35 = vcombine.low %v1135_v8, %v1142_v48  ;;  %v2451_v63 = vcombine.low %v3767_v4, %v2443_v21 }
  0x54   : > { %3359 = vmatprep.subr.bf16.mxu1 %v3358_v29  ;;  %v2452_v58 = vcombine.low %v3958_v24, %v2450_v45  ;;  %v1157_v30 = vrot.slane %v1150_v0, %v3576_v23  ;;  %v2429_v47 = vrot.slane %v2422_v16, %v3576_v23  ;;  %v3430_v2 = vpack.c.bf16 %v3027_v46, %v3026_v11  ;;  %v3037_v46 = vld [vmem:[%s4278_s2] ss:$0 sm:$0xff] }
  0x55   : > { %3425 = vmatpush3.bf16.msra.mxu0 %v4083_v38  ;;  %3201 = vmatprep.mubr.msk.f32.mxu1 %vm351_vm0, %v1143_v35  ;;  %v2459_v52 = vrot.slane %v2451_v63, %v3576_v23  ;;  %v3366_v4 = vpack.c.bf16 %v2977_v3, %v2976_v44  ;;  %v1291_v24 = vcombine.low %v1283_v51, %v1290_v36  ;;  %v3031_v38 = vld [vmem:[%s4277_s1 + $0x1e0] sm:$0xff] }
  0x56   : > { %v2466_v56 = vrot.slane %v2452_v58, %v3576_v23  ;;  %3427 = vmatprep.subr.bf16.mxu0 %v4125_v26  ;;  %v1298_v59 = vrot.slane %v3703_v14, %v3576_v23  ;;  %v2576_v5 = vcombine.low %v3944_v7, %v3775_v10  ;;  %v2577_v12 = vcombine.low %v3868_v40, %v3963_v43  ;;  %v3038_v36 = vld [vmem:[%s4279_s3] ss:$0 sm:$0xff] }
  0x57   : > { %3361 = vmatpush3.bf16.msra.mxu1 %v3358_v29  ;;  %v2578_v55 = vcombine.low %v4100_v17, %v2429_v47  ;;  %v2474_v14 = vrot.slane %v2429_v47, %v3576_v23  ;;  %v2563_v61 = vcombine.high %v2422_v16, %v2422_v16  ;;  %v1400_v10 = vcombine.low %v3999_v1, %v3741_v39  ;;  %v3034_v1 = vld [vmem:[%s4277_s1 + $0x1f8] sm:$0xff] }
  0x58   : > { %3363 = vmatprep.subr.bf16.mxu1 %v3362_v15  ;;  %v2467_v33 = vcombine.low %v2459_v52, %v2466_v56  ;;  %3290 = vmatmul.mubr.msk.f32.vlgmr.msra.gmra.mrb[0].mxu0 %vm351_vm0, %v2333_v20  ;;  %v1401_v40 = vcombine.low %v3826_v6, %v3933_v18  ;;  %v2585_v43 = vrot.slane %v2576_v5, %v3576_v23  ;;  %v3033_v18 = vld [vmem:[%s4277_s1 + $0x1f0] sm:$0xff] }
  0x59   : > { %3429 = vmatpush3.bf16.msra.mxu0 %v4125_v26  ;;  %v2592_v17 = vrot.slane %v2577_v12, %v3576_v23  ;;  %v2599_v13 = vrot.slane %v2578_v55, %v3576_v23  ;;  %v3434_v25 = vpack.c.bf16 %v3032_v49, %v3031_v38  ;;  %v1409_v37 = vrot.slane %v1400_v10, %v3576_v23  ;;  %v2984_v26 = vld [vmem:[%s4277_s1 + $0xf8] sm:$0xff] }
  0x5a   : > { %3202 = vmatmul.mubr.msk.f32.vlgmr.msra.gmra.mrb[0].mxu1 %vm351_vm0, %v1157_v30  ;;  %3431 = vmatprep.subr.bf16.mxu0 %v3430_v2  ;;  %v1416_v39 = vrot.slane %v1401_v40, %v3576_v23  ;;  %v3370_v6 = vpack.c.bf16 %v2982_v31, %v2981_v53  ;;  %v2600_v29 = vcombine.low %v3876_v42, %v2585_v43 }
  0x5b   : > { %3365 = vmatpush3.bf16.msra.mxu1 %v3362_v15  ;;  %3300 = vmatprep.mubr.msk.f32.mxu0 %vm351_vm0, %v2467_v33  ;;  %v2601_v54 = vcombine.low %v2592_v17, %v2599_v13  ;;  %v2481_v41 = vrot.slane %v2474_v14, %v3576_v23  ;;  %v2570_v19 = vrot.slane %v2563_v61, %v3576_v23 }
  0x5c   : > { %3367 = vmatprep.subr.bf16.mxu1 %v3366_v4  ;;  %3212 = vmatprep.mubr.msk.f32.mxu1 %vm351_vm0, %v1291_v24  ;;  %v1424_v60 = vcombine.low %v3910_v28, %v1409_v37  ;;  %v1425_v27 = vcombine.low %v1416_v39, %v3876_v42  ;;  %v1305_v48 = vrot.slane %v1298_v59, %v3576_v23 }
  0x5d   : > { %3433 = vmatpush3.bf16.msra.mxu0 %v3430_v2  ;;  %v2608_v15 = vrot.slane %v2600_v29, %v3576_v23  ;;  %v2615_v34 = vrot.slane %v2601_v54, %v3576_v23  ;;  %v3438_v22 = vpack.c.bf16 %v3034_v1, %v3033_v18  ;;  %v3374_v0 = vpack.c.bf16 %v2984_v26, %v2983_v9 }
  0x5e   : > { %3435 = vmatprep.subr.bf16.mxu0 %v3434_v25  ;;  %v1432_v62 = vrot.slane %v1424_v60, %v3576_v23  ;;  %v1439_v32 = vrot.slane %v1425_v27, %v3576_v23  ;;  %v2623_v42 = vrot.slane %v2570_v19, %v3576_v23  ;;  %v1447_v57 = vrot.slane %v3944_v7, %v3576_v23 }
  0x5f   : > { %3369 = vmatpush3.bf16.msra.mxu1 %v3366_v4  ;;  %v2616_v50 = vcombine.low %v2608_v15, %v2615_v34 }
  0x60   : > { %3371 = vmatprep.subr.bf16.mxu1 %v3370_v6  ;;  %3301 = vmatmul.mubr.msk.f32.vlgmr.msra.gmra.mrb[0].mxu0 %vm351_vm0, %v2481_v41  ;;  %v1440_v28 = vcombine.low %v1432_v62, %v1439_v32  ;;  %v2630_v8 = vrot.slane %v2623_v42, %v3576_v23  ;;  %v1454_v21 = vrot.slane %v1447_v57, %v3576_v23 }
  0x61   : > { %3437 = vmatpush3.bf16.msra.mxu0 %v3434_v25  ;;  %3311 = vmatprep.mubr.msk.f32.mxu0 %vm351_vm0, %v2616_v50 }
  0x62   : > { %3213 = vmatmul.mubr.msk.f32.vlgmr.msra.gmra.mrb[0].mxu1 %vm351_vm0, %v1305_v48  ;;  %3439 = vmatprep.subr.bf16.mxu0 %v3438_v22 }
  0x63   : > { %3373 = vmatpush3.bf16.msra.mxu1 %v3370_v6  ;;  %3223 = vmatprep.mubr.msk.f32.mxu1 %vm351_vm0, %v1440_v28 }
  0x64   : > { %3375 = vmatprep.subr.bf16.mxu1 %v3374_v0 }
  0x65   : > { %3441 = vmatpush3.bf16.msra.mxu0 %v3438_v22 }
  0x67   : > { %3377 = vmatpush3.bf16.msra.mxu1 %v3374_v0 }
  0x68   : > { %3312 = vmatmul.mubr.msk.f32.vlgmr.msra.gmra.mrb[0].mxu0 %vm351_vm0, %v2630_v8 }
  0x6a   : > { %3224 = vmatmul.mubr.msk.f32.vlgmr.msra.gmra.mrb[0].mxu1 %vm351_vm0, %v1454_v21 }
 0x13b   : > { %v3313_v45 = vpop.f32.mrb[0].mxu0 }
 0x13c   : > { %v2701_v11 = vpop.f32.mrb[1].mxu0 }
 0x13d   : > { %v3225_v7 = vpop.f32.mrb[0].mxu1 }
 0x13e   : > { %v3442_v16 = vadd.f32 %v3313_v45, %v3225_v7  ;;  %v1525_v51 = vpop.f32.mrb[1].mxu1 }
 0x13f   : > { %v3443_v35 = vadd.f32 %v2701_v11, %v1525_v51 }
 0x140   : > { %v2720_v44 = vmul.f32 %v3442_v16, %v3037_v46 }
 0x141   : > { %v2719_v3 = vmul.f32 %v3443_v35, %v3037_v46 }
 0x142   : > { %v2729_v63 = vadd.f32 %v3038_v36, %v2720_v44 }
 0x143   : > { %v2728_v58 = vadd.f32 %v3038_v36, %v2719_v3 }
 0x144   : > { %vm2731_vm1 = vcmp.ge.f32.partialorder %v2729_v63, 0.0  ;;  %v2733_v20 = vmul.f32 0.2, %v2729_v63 }
 0x145   : > { %vm2730_vm2 = vcmp.ge.f32.partialorder %v2728_v58, 0.0  ;;  %v2732_v30 = vmul.f32 0.2, %v2728_v58 }
 0x146   : > { %v2735_v47 = vsel %vm2731_vm1, %v2729_v63, %v2733_v20 }
 0x147   : > { %v2734_v2 = vsel %vm2730_vm2, %v2728_v58, %v2732_v30  ;;  %v2793_v4 = vrot.slane %v2735_v47, %v3576_v23 }
 0x148   : > { %v2738_v52 = vcombine.high %v2734_v2, %v2734_v2  ;;  %v2745_v56 = vrot.slane %v2734_v2, %v3576_v23 }
 0x149   : > { %v2800_v12 = vrot.slane %v2793_v4, %v3576_v23 }
 0x14a   : > { %v2752_v24 = vrot.slane %v2738_v52, %v3576_v23  ;;  %v2753_v59 = vcombine.high %v2745_v56, %v2745_v56  ;;  %v2761_v33 = vrot.slane %v2745_v56, %v3576_v23 }
 0x14b   : > { %v2861_v17 = vrot.slane %v2800_v12, %v3576_v23 }
 0x14c   : > { %v2754_v38 = vcombine.high %v2752_v24, %v2752_v24  ;;  %v2775_v49 = vrot.slane %v2753_v59, %v3576_v23  ;;  %v2783_v5 = vcombine.high %v2761_v33, %v2761_v33  ;;  %v2768_v55 = vrot.slane %v2752_v24, %v3576_v23 }
 0x14e   : > { %v2782_v14 = vrot.slane %v2754_v38, %v3576_v23  ;;  %v2785_v53 = vcombine.high %v2775_v49, %v2775_v49  ;;  %v2801_v31 = vcombine.low %v2761_v33, %v2775_v49  ;;  %v2815_v10 = vrot.slane %v2783_v5, %v3576_v23 }
 0x150   : > { %v2808_v61 = vrot.slane %v2801_v31, %v3576_v23  ;;  %v2824_v40 = vcombine.low %v2785_v53, %v2768_v55  ;;  %v3039_v43 = vcombine.high %v2768_v55, %v2782_v14  ;;  %v2838_v37 = vrot.slane %v2782_v14, %v3576_v23 }
 0x152   : > { %v2816_v13 = vcombine.low %v2808_v61, %v2815_v10  ;;  %v2831_v25 = vrot.slane %v2824_v40, %v3576_v23  ;;  %v2854_v39 = vrot.slane %v3039_v43, %v3576_v23 }
 0x154   : > { %v2823_v6 = vrot.slane %v2816_v13, %v3576_v23  ;;  %v2839_v18 = vcombine.low %v2831_v25, %v2838_v37  ;;  %v2862_v1 = vcombine.low %v2854_v39, %v2861_v17 }
 0x156   : > { %v2846_v29 = vrot.slane %v2839_v18, %v3576_v23  ;;  %v2869_v54 = vrot.slane %v2862_v1, %v3576_v23  ;;  %2874 = vst.msk [vmem:[%s197_s11] sm:$0x7] %vm2873_vm3, %v2823_v6 }
 0x158   : > { %2875 = vst.msk [vmem:[%s197_s11 + $0x4] sm:$0x7] %vm2873_vm3, %v2846_v29  ;;  %2876 = vst.msk [vmem:[%s197_s11 + $0x8] sm:$0x7] %vm2873_vm3, %v2869_v54 }
 0x159 PF: > { %s14_s15 = sadd.s32 1, %s3495_s15  }
 0x15a   : > { %p11_p4 = scmp.ge.s32.totalorder %s14_s15, 4  }
 0x15c   :  { %13 = sbr.rel (!%p11_p4) target bundleno = 1 (0x1), region = 81 }

</bundles_post_ra>
